<compile_context>
chip_gen: v5e
topology: v5e:2x2
jax: 0.10.0
libtpu: 0.0.40
codegen_flags: <defaults>
</compile_context>

<pallas_src>
import jax
import jax.numpy as jnp
from jax.experimental import pallas as pl
from jax.experimental.pallas import tpu as pltpu

Z_DIM = 64
H1, H2, H3 = 256, 512, 1024
IMG_DIM = 28 * 28        # 784


def _round_up(x, m):
    return (x + m - 1) // m * m


def _generator_kernel(x_ref,
                      w1_ref, b1_ref,
                      w2_ref, b2_ref,
                      w3_ref, b3_ref,
                      w4_ref, b4_ref,
                      o_ref):
    """Fused 4-layer MLP on one batch tile: (Linear+ReLU) x3 then Linear+Tanh."""
    h = jnp.dot(x_ref[...], w1_ref[...], preferred_element_type=jnp.float32)
    h = jnp.maximum(h + b1_ref[...], 0.0).astype(jnp.bfloat16)

    h = jnp.dot(h, w2_ref[...], preferred_element_type=jnp.float32)
    h = jnp.maximum(h + b2_ref[...], 0.0).astype(jnp.bfloat16)

    h = jnp.dot(h, w3_ref[...], preferred_element_type=jnp.float32)
    h = jnp.maximum(h + b3_ref[...], 0.0).astype(jnp.bfloat16)

    h = jnp.dot(h, w4_ref[...], preferred_element_type=jnp.float32)
    o_ref[...] = jnp.tanh(h + b4_ref[...]).astype(o_ref.dtype)


def prepare_params(params):
    """ONE-TIME parameter prep (hoisted out of the forward pass):
    bf16 weights (MXU-native), fp32 (1, N) biases.  Reuse across calls."""
    prepped = {}
    for i in range(1, 5):
        prepped[f"w{i}"] = params[f"w{i}"].astype(jnp.bfloat16)
        prepped[f"b{i}"] = params[f"b{i}"].reshape(1, -1).astype(jnp.float32)
    return prepped


def _choose_tiling(B, batch_tile):
    bt = batch_tile
    if B >= 1024:
        bt = max(bt, 512)                 # fewer grid steps / writeback DMAs
    bt = min(bt, _round_up(B, 16))        # bf16 sublane pack is 16, not 8
    steps = -(-B // bt)
    # v7x shards the "parallel" batch axis across 2 TensorCores: keep the step
    # count even so neither core idles (padded rows are sliced off afterwards).
    if steps > 1 and steps % 2 == 1:
        steps += 1
    return bt, steps * bt


def generator_forward(x, p, *, batch_tile=256):
    """x: (B, Z_DIM) float32/bf16.  p: output of prepare_params().
    Returns (B, 784) bfloat16 in [-1, 1]."""
    B, zd = x.shape
    assert zd == Z_DIM, zd
    bt, B_pad = _choose_tiling(B, batch_tile)

    xp = x.astype(jnp.bfloat16)
    if B_pad != B:
        xp = jnp.pad(xp, ((0, B_pad - B), (0, 0)))

    full = lambda shape: pl.BlockSpec(shape, lambda i: (0, 0))

    out = pl.pallas_call(
        _generator_kernel,
        out_shape=jax.ShapeDtypeStruct((B_pad, IMG_DIM), jnp.bfloat16),
        grid_spec=pltpu.PrefetchScalarGridSpec(
            num_scalar_prefetch=0,
            grid=(B_pad // bt,),
            in_specs=[
                pl.BlockSpec((bt, Z_DIM), lambda i: (i, 0)),
                full((Z_DIM, H1)),    full((1, H1)),
                full((H1, H2)),       full((1, H2)),
                full((H2, H3)),       full((1, H3)),
                full((H3, IMG_DIM)),  full((1, IMG_DIM)),
            ],
            out_specs=pl.BlockSpec((bt, IMG_DIM), lambda i: (i, 0)),
        ),
        compiler_params=pltpu.CompilerParams(
            dimension_semantics=("parallel",),
            vmem_limit_bytes=32 << 20,
        ),
    )(xp, p["w1"], p["b1"], p["w2"], p["b2"], p["w3"], p["b3"], p["w4"], p["b4"])

    # Row-only slice (no column slice: output width is the true 784).
    return out if B_pad == B else out[:B]


def init_params(key):
    """Deterministic init mimicking nn.Linear default:
    U(-1/sqrt(fan_in), 1/sqrt(fan_in)) for weight and bias.  Stored fp32."""
    dims = [(Z_DIM, H1), (H1, H2), (H2, H3), (H3, IMG_DIM)]
    params = {}
    for idx, (fan_in, fan_out) in enumerate(dims, start=1):
        key, kw, kb = jax.random.split(key, 3)
        bound = 1.0 / jnp.sqrt(float(fan_in))
        params[f"w{idx}"] = jax.random.uniform(
            kw, (fan_in, fan_out), jnp.float32, minval=-bound, maxval=bound)
        params[f"b{idx}"] = jax.random.uniform(
            kb, (fan_out,), jnp.float32, minval=-bound, maxval=bound)
    return params


def reference_forward(x, p, *, bf16=True):
    """Pure-JAX reference.  bf16=True mirrors the kernel's precision recipe."""
    cast = (lambda a: a.astype(jnp.bfloat16)) if bf16 else (lambda a: a)
    h = cast(x)
    for i in (1, 2, 3):
        h = jnp.dot(h, cast(p[f"w{i}"]),
                    preferred_element_type=jnp.float32) + p[f"b{i}"][None, :]
        h = cast(jnp.maximum(h, 0.0))
    h = jnp.dot(h, cast(p["w4"]),
                preferred_element_type=jnp.float32) + p["b4"][None, :]
    return jnp.tanh(h)


if __name__ == "__main__":
    key = jax.random.PRNGKey(0)
    key, kx1, kx2 = jax.random.split(key, 3)
    params = init_params(key)
    prepped = prepare_params(params)            # one-time, reused below

    fwd = jax.jit(generator_forward)

    # Case 1: small aligned batch (single grid step).
    B1 = 16
    x1 = jax.random.normal(kx1, (B1, Z_DIM), jnp.float32)
    out1 = jax.block_until_ready(fwd(x1, prepped))
    assert out1.shape == (B1, IMG_DIM), out1.shape
    ref1_bf16 = reference_forward(x1, params, bf16=True)
    ref1_f32 = reference_forward(x1, params, bf16=False)
    assert jnp.allclose(out1.astype(jnp.float32), ref1_bf16, atol=1.5e-2), \
        "mismatch vs bf16 reference"
    assert jnp.allclose(out1.astype(jnp.float32), ref1_f32, atol=7e-2), \
        "mismatch vs fp32 reference"

    # Case 2: ragged batch -> exercises the batch-padding / row-slice path.
    B2 = 10
    x2 = jax.random.normal(kx2, (B2, Z_DIM), jnp.float32)
    out2 = jax.block_until_ready(fwd(x2, prepped))
    assert out2.shape == (B2, IMG_DIM), out2.shape
    ref2 = reference_forward(x2, params, bf16=True)
    assert jnp.allclose(out2.astype(jnp.float32), ref2, atol=1.5e-2), \
        "mismatch vs bf16 reference (ragged)"

    print("KERNEL_OK")
</pallas_src>

<mosaic_0001>
module attributes {stable_mosaic.version = 11 : i64} {
  func.func @_generator_kernel(%arg0: i32, %arg1: memref<16x64xbf16, #tpu.memory_space<vmem>>, %arg2: memref<64x256xbf16, #tpu.memory_space<vmem>>, %arg3: memref<1x256xf32, #tpu.memory_space<vmem>>, %arg4: memref<256x512xbf16, #tpu.memory_space<vmem>>, %arg5: memref<1x512xf32, #tpu.memory_space<vmem>>, %arg6: memref<512x1024xbf16, #tpu.memory_space<vmem>>, %arg7: memref<1x1024xf32, #tpu.memory_space<vmem>>, %arg8: memref<1024x784xbf16, #tpu.memory_space<vmem>>, %arg9: memref<1x784xf32, #tpu.memory_space<vmem>>, %arg10: memref<16x784xbf16, #tpu.memory_space<vmem>>) attributes {dimension_semantics = [#tpu.dimension_semantics<parallel>], iteration_bounds = array<i64: 1>, scalar_prefetch = 0 : i64, scratch_operands = 0 : i64, tpu.core_type = #tpu.core_type<tc>, window_params = [{transform_indices = @transform_0, window_bounds = array<i64: 16, 64>}, {pipeline_mode = #tpu.pipeline_mode<synchronous>, transform_indices = @transform_1, window_bounds = array<i64: 64, 256>}, {pipeline_mode = #tpu.pipeline_mode<synchronous>, transform_indices = @transform_2, window_bounds = array<i64: 1, 256>}, {pipeline_mode = #tpu.pipeline_mode<synchronous>, transform_indices = @transform_3, window_bounds = array<i64: 256, 512>}, {pipeline_mode = #tpu.pipeline_mode<synchronous>, transform_indices = @transform_4, window_bounds = array<i64: 1, 512>}, {pipeline_mode = #tpu.pipeline_mode<synchronous>, transform_indices = @transform_5, window_bounds = array<i64: 512, 1024>}, {pipeline_mode = #tpu.pipeline_mode<synchronous>, transform_indices = @transform_6, window_bounds = array<i64: 1, 1024>}, {pipeline_mode = #tpu.pipeline_mode<synchronous>, transform_indices = @transform_7, window_bounds = array<i64: 1024, 784>}, {pipeline_mode = #tpu.pipeline_mode<synchronous>, transform_indices = @transform_8, window_bounds = array<i64: 1, 784>}, {transform_indices = @transform_9, window_bounds = array<i64: 16, 784>}]} {
    %c0 = arith.constant 0 : index
    %c0_0 = arith.constant 0 : index
    %0 = vector.load %arg1[%c0, %c0_0] : memref<16x64xbf16, #tpu.memory_space<vmem>>, vector<16x64xbf16>
    %c0_1 = arith.constant 0 : index
    %c0_2 = arith.constant 0 : index
    %1 = vector.load %arg2[%c0_1, %c0_2] : memref<64x256xbf16, #tpu.memory_space<vmem>>, vector<64x256xbf16>
    %cst = arith.constant dense<0.000000e+00> : vector<16x256xf32>
    %2 = tpu.matmul %0, %1, %cst {dimension_numbers = #tpu.dot_dimension_numbers<[1], [0], [0], [1], [0, 0, 1, 1], [], []>} : vector<16x64xbf16>, vector<64x256xbf16>, vector<16x256xf32> -> vector<16x256xf32>
    %c0_3 = arith.constant 0 : index
    %c0_4 = arith.constant 0 : index
    %3 = vector.load %arg3[%c0_3, %c0_4] : memref<1x256xf32, #tpu.memory_space<vmem>>, vector<1x256xf32>
    %4 = vector.broadcast %3 : vector<1x256xf32> to vector<16x256xf32>
    %5 = arith.addf %2, %4 : vector<16x256xf32>
    %cst_5 = arith.constant 0.000000e+00 : f32
    %6 = vector.broadcast %cst_5 : f32 to vector<16x256xf32>
    %7 = arith.maximumf %5, %6 : vector<16x256xf32>
    %8 = arith.truncf %7 : vector<16x256xf32> to vector<16x256xbf16>
    %c0_6 = arith.constant 0 : index
    %c0_7 = arith.constant 0 : index
    %9 = vector.load %arg4[%c0_6, %c0_7] : memref<256x512xbf16, #tpu.memory_space<vmem>>, vector<256x512xbf16>
    %cst_8 = arith.constant dense<0.000000e+00> : vector<16x512xf32>
    %10 = tpu.matmul %8, %9, %cst_8 {dimension_numbers = #tpu.dot_dimension_numbers<[1], [0], [0], [1], [0, 0, 1, 1], [], []>} : vector<16x256xbf16>, vector<256x512xbf16>, vector<16x512xf32> -> vector<16x512xf32>
    %c0_9 = arith.constant 0 : index
    %c0_10 = arith.constant 0 : index
    %11 = vector.load %arg5[%c0_9, %c0_10] : memref<1x512xf32, #tpu.memory_space<vmem>>, vector<1x512xf32>
    %12 = vector.broadcast %11 : vector<1x512xf32> to vector<16x512xf32>
    %13 = arith.addf %10, %12 : vector<16x512xf32>
    %cst_11 = arith.constant 0.000000e+00 : f32
    %14 = vector.broadcast %cst_11 : f32 to vector<16x512xf32>
    %15 = arith.maximumf %13, %14 : vector<16x512xf32>
    %16 = arith.truncf %15 : vector<16x512xf32> to vector<16x512xbf16>
    %c0_12 = arith.constant 0 : index
    %c0_13 = arith.constant 0 : index
    %17 = vector.load %arg6[%c0_12, %c0_13] : memref<512x1024xbf16, #tpu.memory_space<vmem>>, vector<512x1024xbf16>
    %cst_14 = arith.constant dense<0.000000e+00> : vector<16x1024xf32>
    %18 = tpu.matmul %16, %17, %cst_14 {dimension_numbers = #tpu.dot_dimension_numbers<[1], [0], [0], [1], [0, 0, 1, 1], [], []>} : vector<16x512xbf16>, vector<512x1024xbf16>, vector<16x1024xf32> -> vector<16x1024xf32>
    %c0_15 = arith.constant 0 : index
    %c0_16 = arith.constant 0 : index
    %19 = vector.load %arg7[%c0_15, %c0_16] : memref<1x1024xf32, #tpu.memory_space<vmem>>, vector<1x1024xf32>
    %20 = vector.broadcast %19 : vector<1x1024xf32> to vector<16x1024xf32>
    %21 = arith.addf %18, %20 : vector<16x1024xf32>
    %cst_17 = arith.constant 0.000000e+00 : f32
    %22 = vector.broadcast %cst_17 : f32 to vector<16x1024xf32>
    %23 = arith.maximumf %21, %22 : vector<16x1024xf32>
    %24 = arith.truncf %23 : vector<16x1024xf32> to vector<16x1024xbf16>
    %c0_18 = arith.constant 0 : index
    %c0_19 = arith.constant 0 : index
    %25 = vector.load %arg8[%c0_18, %c0_19] : memref<1024x784xbf16, #tpu.memory_space<vmem>>, vector<1024x784xbf16>
    %cst_20 = arith.constant dense<0.000000e+00> : vector<16x784xf32>
    %26 = tpu.matmul %24, %25, %cst_20 {dimension_numbers = #tpu.dot_dimension_numbers<[1], [0], [0], [1], [0, 0, 1, 1], [], []>} : vector<16x1024xbf16>, vector<1024x784xbf16>, vector<16x784xf32> -> vector<16x784xf32>
    %c0_21 = arith.constant 0 : index
    %c0_22 = arith.constant 0 : index
    %27 = vector.load %arg9[%c0_21, %c0_22] : memref<1x784xf32, #tpu.memory_space<vmem>>, vector<1x784xf32>
    %28 = vector.broadcast %27 : vector<1x784xf32> to vector<16x784xf32>
    %29 = arith.addf %26, %28 : vector<16x784xf32>
    %30 = math.tanh %29 : vector<16x784xf32>
    %31 = arith.truncf %30 : vector<16x784xf32> to vector<16x784xbf16>
    %c0_23 = arith.constant 0 : index
    %c0_24 = arith.constant 0 : index
    %32 = vector.load %arg10[%c0_23, %c0_24] : memref<16x784xbf16, #tpu.memory_space<vmem>>, vector<16x784xbf16>
    tpu.vector_store %arg10[%c0_23, %c0_24], %31 {strides = array<i32>} : memref<16x784xbf16, #tpu.memory_space<vmem>>, vector<16x784xbf16>,
    return
  }
  func.func @transform_0(%arg0: i32) -> (i32, i32) {
    %c0_i32 = arith.constant 0 : i32
    %c0_i32_0 = arith.constant 0 : i32
    return %arg0, %c0_i32 : i32, i32
  }
  func.func @transform_1(%arg0: i32) -> (i32, i32) {
    %c0_i32 = arith.constant 0 : i32
    %c0_i32_0 = arith.constant 0 : i32
    %c0_i32_1 = arith.constant 0 : i32
    return %c0_i32, %c0_i32_0 : i32, i32
  }
  func.func @transform_2(%arg0: i32) -> (i32, i32) {
    %c0_i32 = arith.constant 0 : i32
    %c0_i32_0 = arith.constant 0 : i32
    %c0_i32_1 = arith.constant 0 : i32
    return %c0_i32, %c0_i32_0 : i32, i32
  }
  func.func @transform_3(%arg0: i32) -> (i32, i32) {
    %c0_i32 = arith.constant 0 : i32
    %c0_i32_0 = arith.constant 0 : i32
    %c0_i32_1 = arith.constant 0 : i32
    return %c0_i32, %c0_i32_0 : i32, i32
  }
  func.func @transform_4(%arg0: i32) -> (i32, i32) {
    %c0_i32 = arith.constant 0 : i32
    %c0_i32_0 = arith.constant 0 : i32
    %c0_i32_1 = arith.constant 0 : i32
    return %c0_i32, %c0_i32_0 : i32, i32
  }
  func.func @transform_5(%arg0: i32) -> (i32, i32) {
    %c0_i32 = arith.constant 0 : i32
    %c0_i32_0 = arith.constant 0 : i32
    %c0_i32_1 = arith.constant 0 : i32
    return %c0_i32, %c0_i32_0 : i32, i32
  }
  func.func @transform_6(%arg0: i32) -> (i32, i32) {
    %c0_i32 = arith.constant 0 : i32
    %c0_i32_0 = arith.constant 0 : i32
    %c0_i32_1 = arith.constant 0 : i32
    return %c0_i32, %c0_i32_0 : i32, i32
  }
  func.func @transform_7(%arg0: i32) -> (i32, i32) {
    %c0_i32 = arith.constant 0 : i32
    %c0_i32_0 = arith.constant 0 : i32
    %c0_i32_1 = arith.constant 0 : i32
    return %c0_i32, %c0_i32_0 : i32, i32
  }
  func.func @transform_8(%arg0: i32) -> (i32, i32) {
    %c0_i32 = arith.constant 0 : i32
    %c0_i32_0 = arith.constant 0 : i32
    %c0_i32_1 = arith.constant 0 : i32
    return %c0_i32, %c0_i32_0 : i32, i32
  }
  func.func @transform_9(%arg0: i32) -> (i32, i32) {
    %c0_i32 = arith.constant 0 : i32
    %c0_i32_0 = arith.constant 0 : i32
    return %arg0, %c0_i32 : i32, i32
  }
}

</mosaic_0001>

<bundles_post_ra>
// kernel: generator_forward.1
= control target key start
LH: loop header
LB: loop body
LE: loop exit
PB: predicated region body
PF: predicated region fallthrough
CT: control target
= control target key end

     0   :  { %vm95_vm0 = vcmask 523264   ;;  %s15359_s0 = inlined_call_operand.vmem [shape: bf16[16,64], index: 0, kind: input, shape index: {}]   ;;  %s15360_s1 = inlined_call_operand.vmem [shape: bf16[64,256], index: 1, kind: input, shape index: {}]   ;;  %s15361_s2 = inlined_call_operand.vmem [shape: f32[1,256], index: 2, kind: input, shape index: {}]   ;;  %s15362_s3 = inlined_call_operand.vmem [shape: bf16[256,512], index: 3, kind: input, shape index: {}]   ;;  %s15363_s4 = inlined_call_operand.vmem [shape: f32[1,512], index: 4, kind: input, shape index: {}]   ;;  %s15364_s5 = inlined_call_operand.vmem [shape: bf16[512,1024], index: 5, kind: input, shape index: {}]   ;;  %s15365_s6 = inlined_call_operand.vmem [shape: f32[1,1024], index: 6, kind: input, shape index: {}]   ;;  %s15366_s7 = inlined_call_operand.vmem [shape: bf16[1024,784], index: 7, kind: input, shape index: {}]   ;;  %s15367_s8 = inlined_call_operand.vmem [shape: f32[1,784], index: 8, kind: input, shape index: {}]   ;;  %s15368_s9 = inlined_call_operand.hbm [shape: bf16[16,784], index: 9, kind: output, shape index: {}]  }
   0x1   :  { %v6372_v0 = vld [vmem:[%s15360_s1 + $0x30] sm:$0xf]  ;;  %v9460_v1 = vld [vmem:[%s15360_s1 + $0x34] sm:$0xf0]  ;;  %v9459_v2 = vld [vmem:[%s15360_s1 + $0x34] sm:$0xf] }
   0x2   :  { %v6373_v3 = vor.u32 %v9460_v1, %v6372_v0  ;;  %v6374_v4 = vld [vmem:[%s15360_s1 + $0x38] sm:$0xf0]  ;;  %v6364_v5 = vld [vmem:[%s15360_s1 + $0x20] sm:$0xf]  ;;  %v9458_v6 = vld [vmem:[%s15360_s1 + $0x24] sm:$0xf0] }
   0x3   :  { %v6377_v7 = vor.u32 %v9459_v2, %v6374_v4  ;;  %v9457_v8 = vld [vmem:[%s15360_s1 + $0x24] sm:$0xf]  ;;  %v6366_v9 = vld [vmem:[%s15360_s1 + $0x28] sm:$0xf0]  ;;  %v6365_v10 = vor.u32 %v9458_v6, %v6364_v5  ;;  %v6356_v12 = vld [vmem:[%s15360_s1 + $0x10] sm:$0xf] }
   0x4   :  { %103 = vmatpush.bf16.msra.mxu0 %v6373_v3  ;;  %v6369_v11 = vor.u32 %v9457_v8, %v6366_v9  ;;  %v9456_v13 = vld [vmem:[%s15360_s1 + $0x14] sm:$0xf0]  ;;  %v9455_v14 = vld [vmem:[%s15360_s1 + $0x14] sm:$0xf]  ;;  %v6358_v15 = vld [vmem:[%s15360_s1 + $0x18] sm:$0xf0] }
   0x5   :  { %117 = vmatpush.bf16.msra.mxu1 %v6377_v7  ;;  %v6494_v16 = vld [vmem:[%s15362_s3 + $0xe0] sm:$0xf]  ;;  %v9491_v18 = vld [vmem:[%s15362_s3 + $0xec] sm:$0xf0]  ;;  %v6357_v21 = vor.u32 %v9456_v13, %v6356_v12  ;;  %v9454_v22 = vld [vmem:[%s15360_s1 + $0x4] sm:$0xf0]  ;;  %v6361_v27 = vor.u32 %v9455_v14, %v6358_v15 }
   0x6   :  { %v6348_v17 = vld [vmem:[%s15360_s1] sm:$0xf]  ;;  %v9523_v20 = vld [vmem:[%s15362_s3 + $0x1ec] sm:$0xf0]  ;;  %v9453_v23 = vld [vmem:[%s15360_s1 + $0x4] sm:$0xf]  ;;  %v6495_v25 = vor.u32 %v9491_v18, %v6494_v16 }
   0x7   :  { %v6622_v19 = vld [vmem:[%s15362_s3 + $0x1e0] sm:$0xf]  ;;  %v6350_v24 = vld [vmem:[%s15360_s1 + $0x8] sm:$0xf0]  ;;  %v9489_v28 = vld [vmem:[%s15362_s3 + $0xe4] sm:$0xf]  ;;  %v6349_v38 = vor.u32 %v9454_v22, %v6348_v17 }
   0x8   :  { %104 = vmatpush.bf16.msra.mxu0 %v6365_v10  ;;  %v6623_v26 = vor.u32 %v9523_v20, %v6622_v19  ;;  %v6478_v29 = vld [vmem:[%s15362_s3 + $0xc0] sm:$0xf]  ;;  %v9487_v30 = vld [vmem:[%s15362_s3 + $0xcc] sm:$0xf0]  ;;  %527 = vmatpush.bf16.msra.mxu2 %v6495_v25  ;;  %v6496_v31 = vld [vmem:[%s15362_s3 + $0xf0] sm:$0xf0]  ;;  %v6353_v42 = vor.u32 %v9453_v23, %v6350_v24 }
   0x9   :  { %118 = vmatpush.bf16.msra.mxu1 %v6369_v11  ;;  %v6479_v32 = vor.u32 %v9487_v30, %v6478_v29  ;;  %v6606_v33 = vld [vmem:[%s15362_s3 + $0x1c0] sm:$0xf]  ;;  %v9519_v34 = vld [vmem:[%s15362_s3 + $0x1cc] sm:$0xf0]  ;;  %v9521_v35 = vld [vmem:[%s15362_s3 + $0x1e4] sm:$0xf]  ;;  %v6499_v44 = vor.u32 %v9489_v28, %v6496_v31 }
   0xa   :  { %541 = vmatpush.bf16.msra.mxu3 %v6623_v26  ;;  %v6624_v36 = vld [vmem:[%s15362_s3 + $0x1f0] sm:$0xf0]  ;;  %v6607_v37 = vor.u32 %v9519_v34, %v6606_v33  ;;  %v6462_v39 = vld [vmem:[%s15362_s3 + $0xa0] sm:$0xf]  ;;  %v9483_v40 = vld [vmem:[%s15362_s3 + $0xac] sm:$0xf0] }
   0xb   :  { %v6590_v41 = vld [vmem:[%s15362_s3 + $0x1a0] sm:$0xf]  ;;  %v9515_v45 = vld [vmem:[%s15362_s3 + $0x1ac] sm:$0xf0]  ;;  %v6627_v46 = vor.u32 %v9521_v35, %v6624_v36  ;;  %v9485_v47 = vld [vmem:[%s15362_s3 + $0xc4] sm:$0xf]  ;;  %v6463_v50 = vor.u32 %v9483_v40, %v6462_v39 }
   0xc   :  { %105 = vmatpush.bf16.msra.mxu0 %v6357_v21  ;;  %v9452_v43 = vld [vmem:[%s15359_s0] sm:$0xff]  ;;  %528 = vmatpush.bf16.msra.mxu2 %v6479_v32  ;;  %v6480_v48 = vld [vmem:[%s15362_s3 + $0xd0] sm:$0xf0]  ;;  %v6591_v52 = vor.u32 %v9515_v45, %v6590_v41  ;;  %v9479_v54 = vld [vmem:[%s15362_s3 + $0x8c] sm:$0xf0] }
   0xd   :  { %119 = vmatpush.bf16.msra.mxu1 %v6361_v27  ;;  %v9517_v49 = vld [vmem:[%s15362_s3 + $0x1c4] sm:$0xf]  ;;  %v6608_v51 = vld [vmem:[%s15362_s3 + $0x1d0] sm:$0xf0]  ;;  %v6446_v53 = vld [vmem:[%s15362_s3 + $0x80] sm:$0xf]  ;;  %v6483_v57 = vor.u32 %v9485_v47, %v6480_v48 }
   0xe   :  { %542 = vmatpush.bf16.msra.mxu3 %v6607_v37  ;;  %v6574_v55 = vld [vmem:[%s15362_s3 + $0x180] sm:$0xf]  ;;  %v9511_v56 = vld [vmem:[%s15362_s3 + $0x18c] sm:$0xf0]  ;;  %v6611_v58 = vor.u32 %v9517_v49, %v6608_v51  ;;  %v9481_v59 = vld [vmem:[%s15362_s3 + $0xa4] sm:$0xf]  ;;  %v6447_v62 = vor.u32 %v9479_v54, %v6446_v53 }
   0xf   :  { %v6464_v60 = vld [vmem:[%s15362_s3 + $0xb0] sm:$0xf0]  ;;  %v9513_v61 = vld [vmem:[%s15362_s3 + $0x1a4] sm:$0xf]  ;;  %v6575_v0 = vor.u32 %v9511_v56, %v6574_v55  ;;  %v6430_v1 = vld [vmem:[%s15362_s3 + $0x60] sm:$0xf] }
  0x10   :  { %106 = vmatpush.bf16.msra.mxu0 %v6349_v38  ;;  %529 = vmatpush.bf16.msra.mxu2 %v6463_v50  ;;  %v6592_v63 = vld [vmem:[%s15362_s3 + $0x1b0] sm:$0xf0]  ;;  %v9475_v2 = vld [vmem:[%s15362_s3 + $0x6c] sm:$0xf0]  ;;  %v6558_v3 = vld [vmem:[%s15362_s3 + $0x160] sm:$0xf]  ;;  %v6467_v5 = vor.u32 %v9481_v59, %v6464_v60 }
  0x11   :  { %120 = vmatpush.bf16.msra.mxu1 %v6353_v42  ;;  %v9507_v4 = vld [vmem:[%s15362_s3 + $0x16c] sm:$0xf0]  ;;  %v6595_v6 = vor.u32 %v9513_v61, %v6592_v63  ;;  %v9477_v7 = vld [vmem:[%s15362_s3 + $0x84] sm:$0xf]  ;;  %v6448_v8 = vld [vmem:[%s15362_s3 + $0x90] sm:$0xf0]  ;;  %v6431_v10 = vor.u32 %v9475_v2, %v6430_v1 }
  0x12   :  { %543 = vmatpush.bf16.msra.mxu3 %v6591_v52  ;;  %v9509_v9 = vld [vmem:[%s15362_s3 + $0x184] sm:$0xf]  ;;  %v6576_v11 = vld [vmem:[%s15362_s3 + $0x190] sm:$0xf0]  ;;  %v6559_v12 = vor.u32 %v9507_v4, %v6558_v3  ;;  %v6414_v13 = vld [vmem:[%s15362_s3 + $0x40] sm:$0xf]  ;;  %v6451_v17 = vor.u32 %v9477_v7, %v6448_v8 }
  0x13   :  { %6378 = vmatmul.msk.bf16.vlgmr.msra.gmra.mxu0 %vm95_vm0, %v9452_v43  ;;  %v9471_v14 = vld [vmem:[%s15362_s3 + $0x4c] sm:$0xf0]  ;;  %v6542_v15 = vld [vmem:[%s15362_s3 + $0x140] sm:$0xf]  ;;  %v6579_v18 = vor.u32 %v9509_v9, %v6576_v11  ;;  %v9473_v19 = vld [vmem:[%s15362_s3 + $0x64] sm:$0xf] }
  0x14   :  { %555 = vmatpush.bf16.msrb.mxu0 %v6499_v44  ;;  %6379 = vmatmul.msk.bf16.vlgmr.msra.gmra.mxu1 %vm95_vm0, %v9452_v43  ;;  %v9503_v16 = vld [vmem:[%s15362_s3 + $0x14c] sm:$0xf0]  ;;  %v6432_v20 = vld [vmem:[%s15362_s3 + $0x70] sm:$0xf0]  ;;  %v9505_v21 = vld [vmem:[%s15362_s3 + $0x164] sm:$0xf]  ;;  %v6415_v22 = vor.u32 %v9471_v14, %v6414_v13 }
  0x15   :  { %569 = vmatpush.bf16.msrb.mxu1 %v6627_v46  ;;  %530 = vmatpush.bf16.msra.mxu2 %v6447_v62  ;;  %v6560_v23 = vld [vmem:[%s15362_s3 + $0x170] sm:$0xf0]  ;;  %v6543_v24 = vor.u32 %v9503_v16, %v6542_v15  ;;  %v6398_v25 = vld [vmem:[%s15362_s3 + $0x20] sm:$0xf]  ;;  %v9467_v26 = vld [vmem:[%s15362_s3 + $0x2c] sm:$0xf0] }
  0x16   :  { %544 = vmatpush.bf16.msra.mxu3 %v6575_v0  ;;  %v6526_v27 = vld [vmem:[%s15362_s3 + $0x120] sm:$0xf]  ;;  %v9499_v28 = vld [vmem:[%s15362_s3 + $0x12c] sm:$0xf0] }
  0x18   :  { %556 = vmatpush.bf16.msrb.mxu0 %v6483_v57 }
  0x19   :  { %570 = vmatpush.bf16.msrb.mxu1 %v6611_v58  ;;  %531 = vmatpush.bf16.msra.mxu2 %v6431_v10 }
  0x1a   :  { %545 = vmatpush.bf16.msra.mxu3 %v6559_v12 }
  0x1c   :  { %557 = vmatpush.bf16.msrb.mxu0 %v6467_v5 }
  0x1d   :  { %571 = vmatpush.bf16.msrb.mxu1 %v6595_v6 }
  0x1e   :  { %14 = vsyncpa [#allocation3], 0  ;;  %v6435_v29 = vor.u32 %v9473_v19, %v6432_v20  ;;  %v6563_v30 = vor.u32 %v9505_v21, %v6560_v23  ;;  %532 = vmatpush.bf16.msra.mxu2 %v6415_v22  ;;  %v9469_v31 = vld [vmem:[%s15362_s3 + $0x44] sm:$0xf]  ;;  %v6416_v32 = vld [vmem:[%s15362_s3 + $0x50] sm:$0xf0]  ;;  %v6399_v34 = vor.u32 %v9467_v26, %v6398_v25  ;;  %546 = vmatpush.bf16.msra.mxu3 %v6543_v24 }
  0x1f   :  { %v9501_v33 = vld [vmem:[%s15362_s3 + $0x144] sm:$0xf]  ;;  %v6544_v35 = vld [vmem:[%s15362_s3 + $0x150] sm:$0xf0]  ;;  %v6527_v36 = vor.u32 %v9499_v28, %v6526_v27  ;;  %v6382_v37 = vld [vmem:[%s15362_s3] sm:$0xf]  ;;  %v6419_v41 = vor.u32 %v9469_v31, %v6416_v32 }
  0x20   :  { %558 = vmatpush.bf16.msrb.mxu0 %v6451_v17  ;;  %v9463_v38 = vld [vmem:[%s15362_s3 + $0xc] sm:$0xf0]  ;;  %v6510_v39 = vld [vmem:[%s15362_s3 + $0x100] sm:$0xf]  ;;  %v6547_v42 = vor.u32 %v9501_v33, %v6544_v35  ;;  %v9465_v43 = vld [vmem:[%s15362_s3 + $0x24] sm:$0xf] }
  0x21   :  { %572 = vmatpush.bf16.msrb.mxu1 %v6579_v18  ;;  %v9495_v40 = vld [vmem:[%s15362_s3 + $0x10c] sm:$0xf0]  ;;  %v6400_v44 = vld [vmem:[%s15362_s3 + $0x30] sm:$0xf0]  ;;  %v6383_v45 = vor.u32 %v9463_v38, %v6382_v37  ;;  %v9497_v46 = vld [vmem:[%s15362_s3 + $0x124] sm:$0xf] }
  0x22   :  { %533 = vmatpush.bf16.msra.mxu2 %v6399_v34  ;;  %547 = vmatpush.bf16.msra.mxu3 %v6527_v36  ;;  %v6528_v47 = vld [vmem:[%s15362_s3 + $0x130] sm:$0xf0]  ;;  %v6511_v48 = vor.u32 %v9495_v40, %v6510_v39  ;;  %v6403_v49 = vor.u32 %v9465_v43, %v6400_v44  ;;  %v9461_v51 = vld [vmem:[%s15362_s3 + $0x4] sm:$0xf]  ;;  %v6502_v57 = vld [vmem:[%s15362_s3 + $0xe8] sm:$0xf] }
  0x23   :  { %v6531_v50 = vor.u32 %v9497_v46, %v6528_v47  ;;  %v6384_v52 = vld [vmem:[%s15362_s3 + $0x10] sm:$0xf0]  ;;  %v9493_v53 = vld [vmem:[%s15362_s3 + $0x104] sm:$0xf]  ;;  %v9492_v58 = vld [vmem:[%s15362_s3 + $0xf4] sm:$0xf0] }
  0x24   :  { %559 = vmatpush.bf16.msrb.mxu0 %v6435_v29  ;;  %v6512_v54 = vld [vmem:[%s15362_s3 + $0x110] sm:$0xf0]  ;;  %v6387_v55 = vor.u32 %v9461_v51, %v6384_v52  ;;  %v6630_v59 = vld [vmem:[%s15362_s3 + $0x1e8] sm:$0xf]  ;;  %v6503_v60 = vor.u32 %v9492_v58, %v6502_v57  ;;  %v9524_v61 = vld [vmem:[%s15362_s3 + $0x1f4] sm:$0xf0] }
  0x25   :  { %573 = vmatpush.bf16.msrb.mxu1 %v6563_v30  ;;  %v6515_v56 = vor.u32 %v9493_v53, %v6512_v54  ;;  %v9490_v62 = vld [vmem:[%s15362_s3 + $0xec] sm:$0xf]  ;;  %v6504_v63 = vld [vmem:[%s15362_s3 + $0xf8] sm:$0xf0]  ;;  %v6631_v0 = vor.u32 %v9524_v61, %v6630_v59  ;;  %v6486_v5 = vld [vmem:[%s15362_s3 + $0xc8] sm:$0xf] }
  0x26   :  { %534 = vmatpush.bf16.msra.mxu2 %v6383_v45  ;;  %548 = vmatpush.bf16.msra.mxu3 %v6511_v48  ;;  %v6507_v1 = vor.u32 %v9490_v62, %v6504_v63  ;;  %v9522_v2 = vld [vmem:[%s15362_s3 + $0x1ec] sm:$0xf]  ;;  %v6632_v3 = vld [vmem:[%s15362_s3 + $0x1f8] sm:$0xf0]  ;;  %v9488_v6 = vld [vmem:[%s15362_s3 + $0xd4] sm:$0xf0] }
  0x27   :  { %v6635_v4 = vor.u32 %v9522_v2, %v6632_v3  ;;  %v6487_v7 = vor.u32 %v9488_v6, %v6486_v5  ;;  %v6614_v8 = vld [vmem:[%s15362_s3 + $0x1c8] sm:$0xf]  ;;  %v9520_v9 = vld [vmem:[%s15362_s3 + $0x1d4] sm:$0xf0]  ;;  %v9486_v10 = vld [vmem:[%s15362_s3 + $0xcc] sm:$0xf] }
  0x28   :  { %560 = vmatpush.bf16.msrb.mxu0 %v6419_v41  ;;  %v6615_v11 = vor.u32 %v9520_v9, %v6614_v8  ;;  %v6488_v12 = vld [vmem:[%s15362_s3 + $0xd8] sm:$0xf0]  ;;  %v9518_v13 = vld [vmem:[%s15362_s3 + $0x1cc] sm:$0xf]  ;;  %v6470_v17 = vld [vmem:[%s15362_s3 + $0xa8] sm:$0xf] }
  0x29   :  { %574 = vmatpush.bf16.msrb.mxu1 %v6547_v42  ;;  %v6616_v14 = vld [vmem:[%s15362_s3 + $0x1d8] sm:$0xf0]  ;;  %v6491_v15 = vor.u32 %v9486_v10, %v6488_v12  ;;  %v9484_v18 = vld [vmem:[%s15362_s3 + $0xb4] sm:$0xf0]  ;;  %v6598_v19 = vld [vmem:[%s15362_s3 + $0x1a8] sm:$0xf] }
  0x2a   :  { %583 = vmatpush.bf16.msrb.mxu2 %v6503_v60  ;;  %597 = vmatpush.bf16.msrb.mxu3 %v6631_v0  ;;  %v6619_v16 = vor.u32 %v9518_v13, %v6616_v14  ;;  %v6471_v20 = vor.u32 %v9484_v18, %v6470_v17  ;;  %v9516_v21 = vld [vmem:[%s15362_s3 + $0x1b4] sm:$0xf0]  ;;  %v9482_v22 = vld [vmem:[%s15362_s3 + $0xac] sm:$0xf]  ;;  %v6472_v23 = vld [vmem:[%s15362_s3 + $0xb8] sm:$0xf0] }
  0x2b   :  { %v6599_v24 = vor.u32 %v9516_v21, %v6598_v19  ;;  %v6475_v25 = vor.u32 %v9482_v22, %v6472_v23  ;;  %v9514_v26 = vld [vmem:[%s15362_s3 + $0x1ac] sm:$0xf]  ;;  %v6600_v27 = vld [vmem:[%s15362_s3 + $0x1b8] sm:$0xf0]  ;;  %v6454_v29 = vld [vmem:[%s15362_s3 + $0x88] sm:$0xf] }
  0x2c   :  { %561 = vmatpush.bf16.msrb.mxu0 %v6403_v49  ;;  %v6603_v28 = vor.u32 %v9514_v26, %v6600_v27  ;;  %v9480_v30 = vld [vmem:[%s15362_s3 + $0x94] sm:$0xf0]  ;;  %v6582_v31 = vld [vmem:[%s15362_s3 + $0x188] sm:$0xf]  ;;  %v9478_v34 = vld [vmem:[%s15362_s3 + $0x8c] sm:$0xf] }
  0x2d   :  { %575 = vmatpush.bf16.msrb.mxu1 %v6531_v50  ;;  %v6455_v32 = vor.u32 %v9480_v30, %v6454_v29  ;;  %v9512_v33 = vld [vmem:[%s15362_s3 + $0x194] sm:$0xf0]  ;;  %v6456_v35 = vld [vmem:[%s15362_s3 + $0x98] sm:$0xf0]  ;;  %v9510_v38 = vld [vmem:[%s15362_s3 + $0x18c] sm:$0xf] }
  0x2e   :  { %584 = vmatpush.bf16.msrb.mxu2 %v6487_v7  ;;  %598 = vmatpush.bf16.msrb.mxu3 %v6615_v11  ;;  %v6583_v36 = vor.u32 %v9512_v33, %v6582_v31  ;;  %v6459_v37 = vor.u32 %v9478_v34, %v6456_v35  ;;  %v6584_v39 = vld [vmem:[%s15362_s3 + $0x198] sm:$0xf0]  ;;  %v6438_v41 = vld [vmem:[%s15362_s3 + $0x68] sm:$0xf]  ;;  %v9476_v42 = vld [vmem:[%s15362_s3 + $0x74] sm:$0xf0] }
  0x2f   :  { %v6587_v40 = vor.u32 %v9510_v38, %v6584_v39  ;;  %v6566_v43 = vld [vmem:[%s15362_s3 + $0x168] sm:$0xf]  ;;  %v6439_v44 = vor.u32 %v9476_v42, %v6438_v41  ;;  %v9508_v45 = vld [vmem:[%s15362_s3 + $0x174] sm:$0xf0]  ;;  %v9474_v46 = vld [vmem:[%s15362_s3 + $0x6c] sm:$0xf] }
  0x30   :  { %562 = vmatpush.bf16.msrb.mxu0 %v6387_v55  ;;  %v6440_v47 = vld [vmem:[%s15362_s3 + $0x78] sm:$0xf0]  ;;  %v6567_v48 = vor.u32 %v9508_v45, %v6566_v43  ;;  %v9506_v50 = vld [vmem:[%s15362_s3 + $0x16c] sm:$0xf]  ;;  %v6422_v52 = vld [vmem:[%s15362_s3 + $0x48] sm:$0xf] }
  0x31   :  { %576 = vmatpush.bf16.msrb.mxu1 %v6515_v56  ;;  %v6443_v49 = vor.u32 %v9474_v46, %v6440_v47  ;;  %v6568_v51 = vld [vmem:[%s15362_s3 + $0x178] sm:$0xf0]  ;;  %v9472_v54 = vld [vmem:[%s15362_s3 + $0x54] sm:$0xf0]  ;;  %v6550_v55 = vld [vmem:[%s15362_s3 + $0x148] sm:$0xf] }
  0x32   :  { %585 = vmatpush.bf16.msrb.mxu2 %v6471_v20  ;;  %599 = vmatpush.bf16.msrb.mxu3 %v6599_v24  ;;  %v6571_v53 = vor.u32 %v9506_v50, %v6568_v51  ;;  %v9504_v56 = vld [vmem:[%s15362_s3 + $0x154] sm:$0xf0]  ;;  %v6423_v57 = vor.u32 %v9472_v54, %v6422_v52  ;;  %v9470_v59 = vld [vmem:[%s15362_s3 + $0x4c] sm:$0xf]  ;;  %v6424_v60 = vld [vmem:[%s15362_s3 + $0x58] sm:$0xf0] }
  0x33   :  { %v6551_v58 = vor.u32 %v9504_v56, %v6550_v55  ;;  %v9502_v61 = vld [vmem:[%s15362_s3 + $0x14c] sm:$0xf]  ;;  %v6427_v62 = vor.u32 %v9470_v59, %v6424_v60  ;;  %v6552_v63 = vld [vmem:[%s15362_s3 + $0x158] sm:$0xf0]  ;;  %v6406_v0 = vld [vmem:[%s15362_s3 + $0x28] sm:$0xf] }
  0x34   :  { %611 = vmatpush.bf16.msra.mxu0 %v6507_v1  ;;  %v9468_v1 = vld [vmem:[%s15362_s3 + $0x34] sm:$0xf0]  ;;  %v6555_v2 = vor.u32 %v9502_v61, %v6552_v63  ;;  %v6534_v3 = vld [vmem:[%s15362_s3 + $0x128] sm:$0xf]  ;;  %v9466_v5 = vld [vmem:[%s15362_s3 + $0x2c] sm:$0xf] }
  0x35   :  { %625 = vmatpush.bf16.msra.mxu1 %v6635_v4  ;;  %v9500_v4 = vld [vmem:[%s15362_s3 + $0x134] sm:$0xf0]  ;;  %v6407_v6 = vor.u32 %v9468_v1, %v6406_v0  ;;  %v6408_v7 = vld [vmem:[%s15362_s3 + $0x38] sm:$0xf0]  ;;  %v9498_v8 = vld [vmem:[%s15362_s3 + $0x12c] sm:$0xf] }
  0x36   :  { %586 = vmatpush.bf16.msrb.mxu2 %v6455_v32  ;;  %600 = vmatpush.bf16.msrb.mxu3 %v6583_v36  ;;  %v6536_v9 = vld [vmem:[%s15362_s3 + $0x138] sm:$0xf0]  ;;  %v6535_v10 = vor.u32 %v9500_v4, %v6534_v3  ;;  %v6390_v11 = vld [vmem:[%s15362_s3 + $0x8] sm:$0xf]  ;;  %v9464_v12 = vld [vmem:[%s15362_s3 + $0x14] sm:$0xf0]  ;;  %v6411_v13 = vor.u32 %v9466_v5, %v6408_v7 }
  0x37   :  { %v6539_v14 = vor.u32 %v9498_v8, %v6536_v9  ;;  %v9462_v17 = vld [vmem:[%s15362_s3 + $0xc] sm:$0xf]  ;;  %v6392_v18 = vld [vmem:[%s15362_s3 + $0x18] sm:$0xf0]  ;;  %v6391_v21 = vor.u32 %v9464_v12, %v6390_v11  ;;  %v7118_v35 = vld [vmem:[%s15364_s5 + $0x3c0] sm:$0xf] }
  0x38   :  { %612 = vmatpush.bf16.msra.mxu0 %v6491_v15  ;;  %v6518_v15 = vld [vmem:[%s15362_s3 + $0x108] sm:$0xf]  ;;  %v9494_v19 = vld [vmem:[%s15362_s3 + $0x10c] sm:$0xf]  ;;  %v6520_v20 = vld [vmem:[%s15362_s3 + $0x118] sm:$0xf0]  ;;  %v6395_v23 = vor.u32 %v9462_v17, %v6392_v18 }
  0x39   :  { %626 = vmatpush.bf16.msra.mxu1 %v6619_v16  ;;  %v9496_v16 = vld [vmem:[%s15362_s3 + $0x114] sm:$0xf0]  ;;  %v6523_v24 = vor.u32 %v9494_v19, %v6520_v20  ;;  %v9649_v36 = vld [vmem:[%s15364_s5 + $0x3dc] sm:$0xf0]  ;;  %vm6318_vm1 = vcmask 125952   ;;  %s6330_s19 = sshll.u32 %s15368_s9, 4  ;;  %s6331_s19 = int_to_ptr.hbm [resolvable:$true] %s6330_s19 }
  0x3a   :  { %587 = vmatpush.bf16.msrb.mxu2 %v6439_v44  ;;  %601 = vmatpush.bf16.msrb.mxu3 %v6567_v48  ;;  %v6519_v22 = vor.u32 %v9496_v16, %v6518_v15  ;;  %v9585_v39 = vld [vmem:[%s15364_s5 + $0x1dc] sm:$0xf0]  ;;  %s10289_s20 = smov 448   ;;  %s10290_s21 = smov 28  }
  0x3b   :  { %v9777_v41 = vld [vmem:[%s15364_s5 + $0x7dc] sm:$0xf0] }
  0x3c   :  { %613 = vmatpush.bf16.msra.mxu0 %v6475_v25  ;;  %v44_v25 = vld [vmem:[%s15361_s2] sm:$0x3] }
  0x3d   :  { %627 = vmatpush.bf16.msra.mxu1 %v6603_v28  ;;  %v46_v28 = vperm.slane %v44_v25, 0  ;;  %v47_v29 = vperm.slane %v44_v25, 1  ;;  %v7374_v44 = vld [vmem:[%s15364_s5 + $0x5c0] sm:$0xf] }
  0x3e   :  { %588 = vmatpush.bf16.msrb.mxu2 %v6423_v57  ;;  %602 = vmatpush.bf16.msrb.mxu3 %v6551_v58  ;;  %v9713_v45 = vld [vmem:[%s15364_s5 + $0x5dc] sm:$0xf0] }
  0x3f   :  { %v7086_v50 = vld [vmem:[%s15364_s5 + $0x380] sm:$0xf]  ;;  %v7375_v58 = vor.u32 %v9713_v45, %v7374_v44 }
  0x40   :  { %614 = vmatpush.bf16.msra.mxu0 %v6459_v37  ;;  %v6862_v37 = vld [vmem:[%s15364_s5 + $0x1c0] sm:$0xf] }
  0x41   :  { %628 = vmatpush.bf16.msra.mxu1 %v6587_v40  ;;  %v7630_v40 = vld [vmem:[%s15364_s5 + $0x7c0] sm:$0xf]  ;;  %v6863_v52 = vor.u32 %v9585_v39, %v6862_v37 }
  0x42   :  { %589 = vmatpush.bf16.msrb.mxu2 %v6407_v6  ;;  %603 = vmatpush.bf16.msrb.mxu3 %v6535_v10  ;;  %v9641_v51 = vld [vmem:[%s15364_s5 + $0x39c] sm:$0xf0]  ;;  %v7631_v56 = vor.u32 %v9777_v41, %v7630_v40 }
  0x43   :  { %v6830_v54 = vld [vmem:[%s15364_s5 + $0x180] sm:$0xf] }
  0x44   :  { %615 = vmatpush.bf16.msra.mxu0 %v6443_v49  ;;  %v7119_v49 = vor.u32 %v9649_v36, %v7118_v35  ;;  %v9577_v55 = vld [vmem:[%s15364_s5 + $0x19c] sm:$0xf0] }
  0x45   :  { %629 = vmatpush.bf16.msra.mxu1 %v6571_v53  ;;  %v7598_v57 = vld [vmem:[%s15364_s5 + $0x780] sm:$0xf]  ;;  %v6831_v1 = vor.u32 %v9577_v55, %v6830_v54 }
  0x46   :  { %590 = vmatpush.bf16.msrb.mxu2 %v6391_v21  ;;  %604 = vmatpush.bf16.msrb.mxu3 %v6519_v22  ;;  %v9769_v59 = vld [vmem:[%s15364_s5 + $0x79c] sm:$0xf0] }
  0x47   :  { %v7342_v60 = vld [vmem:[%s15364_s5 + $0x580] sm:$0xf]  ;;  %v7599_v4 = vor.u32 %v9769_v59, %v7598_v57  ;;  %v9645_v57 = vld [vmem:[%s15364_s5 + $0x3c4] sm:$0xf] }
  0x48   :  { %616 = vmatpush.bf16.msra.mxu0 %v6427_v62  ;;  %v9705_v61 = vld [vmem:[%s15364_s5 + $0x59c] sm:$0xf0]  ;;  %v7087_v62 = vor.u32 %v9641_v51, %v7086_v50 }
  0x49   :  { %630 = vmatpush.bf16.msra.mxu1 %v6555_v2  ;;  %v7054_v63 = vld [vmem:[%s15364_s5 + $0x340] sm:$0xf]  ;;  %v7343_v6 = vor.u32 %v9705_v61, %v7342_v60  ;;  %v7120_v61 = vld [vmem:[%s15364_s5 + $0x3e0] sm:$0xf0] }
  0x4a   :  { %v9633_v0 = vld [vmem:[%s15364_s5 + $0x35c] sm:$0xf0] }
  0x4b   :  { %v6798_v2 = vld [vmem:[%s15364_s5 + $0x140] sm:$0xf]  ;;  %v7055_v10 = vor.u32 %v9633_v0, %v7054_v63  ;;  %v6864_v63 = vld [vmem:[%s15364_s5 + $0x1e0] sm:$0xf0] }
  0x4c   :  { %617 = vmatpush.bf16.msra.mxu0 %v6411_v13  ;;  %v9569_v3 = vld [vmem:[%s15364_s5 + $0x15c] sm:$0xf0] }
  0x4d   :  { %631 = vmatpush.bf16.msra.mxu1 %v6539_v14  ;;  %v7566_v5 = vld [vmem:[%s15364_s5 + $0x740] sm:$0xf]  ;;  %v6799_v13 = vor.u32 %v9569_v3, %v6798_v2  ;;  %v7123_v2 = vor.u32 %v9645_v57, %v7120_v61  ;;  %v9637_v3 = vld [vmem:[%s15364_s5 + $0x384] sm:$0xf] }
  0x4e   :  { %v9761_v7 = vld [vmem:[%s15364_s5 + $0x75c] sm:$0xf0] }
  0x4f   :  { %v7310_v8 = vld [vmem:[%s15364_s5 + $0x540] sm:$0xf]  ;;  %v7567_v16 = vor.u32 %v9761_v7, %v7566_v5  ;;  %v7088_v5 = vld [vmem:[%s15364_s5 + $0x3a0] sm:$0xf0] }
  0x50   :  { %618 = vmatpush.bf16.msra.mxu0 %v6395_v23  ;;  %v9697_v9 = vld [vmem:[%s15364_s5 + $0x55c] sm:$0xf0]  ;;  %v6832_v7 = vld [vmem:[%s15364_s5 + $0x1a0] sm:$0xf0] }
  0x51   :  { %632 = vmatpush.bf16.msra.mxu1 %v6523_v24  ;;  %v7022_v11 = vld [vmem:[%s15364_s5 + $0x300] sm:$0xf]  ;;  %v7311_v18 = vor.u32 %v9697_v9, %v7310_v8  ;;  %v7091_v8 = vor.u32 %v9637_v3, %v7088_v5 }
  0x52   :  { %v9625_v12 = vld [vmem:[%s15364_s5 + $0x31c] sm:$0xf0] }
  0x53   :  { %v6766_v14 = vld [vmem:[%s15364_s5 + $0x100] sm:$0xf]  ;;  %v7023_v22 = vor.u32 %v9625_v12, %v7022_v11  ;;  %v7056_v11 = vld [vmem:[%s15364_s5 + $0x360] sm:$0xf0] }
  0x54   :  { %v9561_v15 = vld [vmem:[%s15364_s5 + $0x11c] sm:$0xf0] }
  0x55   :  { %v7534_v17 = vld [vmem:[%s15364_s5 + $0x700] sm:$0xf]  ;;  %v6767_v25 = vor.u32 %v9561_v15, %v6766_v14  ;;  %v7024_v14 = vld [vmem:[%s15364_s5 + $0x320] sm:$0xf0] }
  0x56   :  { %v9753_v19 = vld [vmem:[%s15364_s5 + $0x71c] sm:$0xf0] }
  0x57   :  { %v7278_v20 = vld [vmem:[%s15364_s5 + $0x500] sm:$0xf] }
  0x58   :  { %v9689_v21 = vld [vmem:[%s15364_s5 + $0x51c] sm:$0xf0] }
  0x59   :  { %v6990_v23 = vld [vmem:[%s15364_s5 + $0x2c0] sm:$0xf] }
  0x5a   :  { %v9617_v24 = vld [vmem:[%s15364_s5 + $0x2dc] sm:$0xf0] }
  0x5b   :  { %v6958_v35 = vld [vmem:[%s15364_s5 + $0x280] sm:$0xf] }
  0x5c   :  { %v9609_v37 = vld [vmem:[%s15364_s5 + $0x29c] sm:$0xf0] }
  0x5d   :  { %v9545_v39 = vld [vmem:[%s15364_s5 + $0x9c] sm:$0xf0]  ;;  %v6959_v44 = vor.u32 %v9609_v37, %v6958_v35  ;;  %v6768_v35 = vld [vmem:[%s15364_s5 + $0x120] sm:$0xf0] }
  0x5e   :  { %v6926_v45 = vld [vmem:[%s15364_s5 + $0x240] sm:$0xf]  ;;  %v9605_v37 = vld [vmem:[%s15364_s5 + $0x284] sm:$0xf] }
  0x5f   :  { %v7438_v51 = vld [vmem:[%s15364_s5 + $0x640] sm:$0xf] }
  0x60   :  { %v6894_v54 = vld [vmem:[%s15364_s5 + $0x200] sm:$0xf] }
  0x61   :  { %v9593_v55 = vld [vmem:[%s15364_s5 + $0x21c] sm:$0xf0] }
  0x62   :  { %v9529_v59 = vld [vmem:[%s15364_s5 + $0x1c] sm:$0xf0]  ;;  %v6895_v0 = vor.u32 %v9593_v55, %v6894_v54  ;;  %v9757_v54 = vld [vmem:[%s15364_s5 + $0x744] sm:$0xf] }
  0x90   :  { %v108_v26 = vpop.f32.mrf.mxu0 }
  0x91   :  { %v122_v27 = vpop.f32.mrf.mxu1  ;;  %v109_v30 = vadd.f32 %v108_v26, %v46_v28  ;;  %v6734_v26 = vld [vmem:[%s15364_s5 + $0xc0] sm:$0xf] }
  0x92   :  { %v123_v31 = vadd.f32 %v122_v27, %v47_v29  ;;  %v9553_v27 = vld [vmem:[%s15364_s5 + $0xdc] sm:$0xf0] }
  0x93   :  { %v127_v42 = vmax.f32 %v109_v30, 0.0  ;;  %v7279_v30 = vor.u32 %v9689_v21, %v7278_v20  ;;  %v6735_v36 = vor.u32 %v9553_v27, %v6734_v26  ;;  %v6800_v20 = vld [vmem:[%s15364_s5 + $0x160] sm:$0xf0] }
  0x94   :  { %v128_v46 = vmax.f32 %v123_v31, 0.0  ;;  %v9745_v31 = vld [vmem:[%s15364_s5 + $0x6dc] sm:$0xf0]  ;;  %v6992_v26 = vld [vmem:[%s15364_s5 + $0x2e0] sm:$0xf0] }
  0x95   :  { %v9773_v27 = vld [vmem:[%s15364_s5 + $0x7c4] sm:$0xf] }
  0x98   :  { %v110_v32 = vpop.f32.mrf.mxu0 }
  0x99   :  { %v111_v33 = vadd.f32 %v110_v32, %v46_v28  ;;  %v124_v34 = vpop.f32.mrf.mxu1  ;;  %v7535_v28 = vor.u32 %v9753_v19, %v7534_v17  ;;  %v7246_v32 = vld [vmem:[%s15364_s5 + $0x4c0] sm:$0xf]  ;;  %v9565_v19 = vld [vmem:[%s15364_s5 + $0x144] sm:$0xf] }
  0x9a   :  { %v125_v38 = vadd.f32 %v124_v34, %v47_v29  ;;  %v7502_v29 = vld [vmem:[%s15364_s5 + $0x6c0] sm:$0xf]  ;;  %v6991_v34 = vor.u32 %v9617_v24, %v6990_v23  ;;  %v6803_v21 = vor.u32 %v9565_v19, %v6800_v20  ;;  %v7280_v19 = vld [vmem:[%s15364_s5 + $0x520] sm:$0xf0] }
  0x9b   :  { %v129_v43 = vmax.f32 %v111_v33, 0.0  ;;  %v9681_v33 = vld [vmem:[%s15364_s5 + $0x4dc] sm:$0xf0]  ;;  %v7503_v40 = vor.u32 %v9745_v31, %v7502_v29  ;;  %v7632_v29 = vld [vmem:[%s15364_s5 + $0x7e0] sm:$0xf0] }
  0x9c   :  { %v130_v47 = vmax.f32 %v125_v38, 0.0  ;;  %v6702_v38 = vld [vmem:[%s15364_s5 + $0x80] sm:$0xf]  ;;  %v7247_v41 = vor.u32 %v9681_v33, %v7246_v32  ;;  %v7635_v32 = vor.u32 %v9773_v27, %v7632_v29  ;;  %v9725_v27 = vld [vmem:[%s15364_s5 + $0x644] sm:$0xf] }
  0x9d   :  { %v10805_v48 = vpack.c.bf16 %v129_v43, %v127_v42  ;;  %v7470_v42 = vld [vmem:[%s15364_s5 + $0x680] sm:$0xf] }
  0x9e   :  { %v10813_v53 = vpack.c.bf16 %v130_v47, %v128_v46  ;;  %v9737_v43 = vld [vmem:[%s15364_s5 + $0x69c] sm:$0xf0]  ;;  %v6703_v46 = vor.u32 %v9545_v39, %v6702_v38  ;;  %v6960_v38 = vld [vmem:[%s15364_s5 + $0x2a0] sm:$0xf0] }
  0x9f   :  { %535 = vmatmul.bf16.vlgmr.msra.gmra.mxu2 %v10805_v48  ;;  %563 = vmatmul.bf16.vlgmr.msrb.gmra.mxu0 %v10805_v48  ;;  %v9601_v47 = vld [vmem:[%s15364_s5 + $0x25c] sm:$0xf0]  ;;  %v7471_v50 = vor.u32 %v9737_v43, %v7470_v42  ;;  %v9765_v39 = vld [vmem:[%s15364_s5 + $0x784] sm:$0xf] }
  0xa0   :  { %549 = vmatmul.bf16.vlgmr.msra.gmra.mxu3 %v10813_v53  ;;  %577 = vmatmul.bf16.vlgmr.msrb.gmra.mxu1 %v10813_v53  ;;  %v9673_v17 = vld [vmem:[%s15364_s5 + $0x49c] sm:$0xf0] }
  0xa1   :  { %2219 = vmatpush.bf16.msra.mxu3 %v7119_v49  ;;  %2205 = vmatpush.bf16.msra.mxu2 %v6863_v52  ;;  %v9537_v49 = vld [vmem:[%s15364_s5 + $0x5c] sm:$0xf0] }
  0xa2   :  { %2247 = vmatpush.bf16.msrb.mxu1 %v7631_v56  ;;  %2233 = vmatpush.bf16.msrb.mxu0 %v7375_v58  ;;  %v9729_v52 = vld [vmem:[%s15364_s5 + $0x65c] sm:$0xf0] }
  0xa3   :  { %v6638_v58 = vld [vmem:[%s15364_s5] sm:$0xf]  ;;  %v7439_v60 = vor.u32 %v9729_v52, %v7438_v51  ;;  %v9597_v52 = vld [vmem:[%s15364_s5 + $0x244] sm:$0xf] }
  0xa4   :  { %v9721_v23 = vld [vmem:[%s15364_s5 + $0x61c] sm:$0xf0] }
  0xa5   :  { %2220 = vmatpush.bf16.msra.mxu3 %v7087_v62  ;;  %2206 = vmatpush.bf16.msra.mxu2 %v6831_v1  ;;  %v9581_v62 = vld [vmem:[%s15364_s5 + $0x1c4] sm:$0xf]  ;;  %v6639_v1 = vor.u32 %v9529_v59, %v6638_v58  ;;  %v9665_v31 = vld [vmem:[%s15364_s5 + $0x45c] sm:$0xf0] }
  0xa6   :  { %2248 = vmatpush.bf16.msrb.mxu1 %v7599_v4  ;;  %2234 = vmatpush.bf16.msrb.mxu0 %v7343_v6  ;;  %v6867_v4 = vor.u32 %v9581_v62, %v6864_v63  ;;  %v9573_v6 = vld [vmem:[%s15364_s5 + $0x184] sm:$0xf]  ;;  %v7150_v42 = vld [vmem:[%s15364_s5 + $0x400] sm:$0xf] }
  0xa7   :  { %v6835_v9 = vor.u32 %v9573_v6, %v6832_v7  ;;  %v9657_v43 = vld [vmem:[%s15364_s5 + $0x41c] sm:$0xf0]  ;;  %v9541_v58 = vld [vmem:[%s15364_s5 + $0x84] sm:$0xf] }
  0xa8   :  { %v6704_v59 = vld [vmem:[%s15364_s5 + $0xa0] sm:$0xf0] }
  0xa9   :  { %2221 = vmatpush.bf16.msra.mxu3 %v7055_v10  ;;  %2207 = vmatpush.bf16.msra.mxu2 %v6799_v13  ;;  %v9629_v10 = vld [vmem:[%s15364_s5 + $0x344] sm:$0xf]  ;;  %v6707_v61 = vor.u32 %v9541_v58, %v6704_v59 }
  0xaa   :  { %2249 = vmatpush.bf16.msrb.mxu1 %v7567_v16  ;;  %2235 = vmatpush.bf16.msrb.mxu0 %v7311_v18  ;;  %v7059_v12 = vor.u32 %v9629_v10, %v7056_v11  ;;  %v9621_v13 = vld [vmem:[%s15364_s5 + $0x304] sm:$0xf]  ;;  %v7214_v16 = vld [vmem:[%s15364_s5 + $0x480] sm:$0xf] }
  0xab   :  { %v7027_v15 = vor.u32 %v9621_v13, %v7024_v14  ;;  %v7215_v18 = vor.u32 %v9673_v17, %v7214_v16  ;;  %v7344_v62 = vld [vmem:[%s15364_s5 + $0x5a0] sm:$0xf0] }
  0xac   :  { %v9533_v6 = vld [vmem:[%s15364_s5 + $0x44] sm:$0xf] }
  0xad   :  { %2222 = vmatpush.bf16.msra.mxu3 %v7023_v22  ;;  %2208 = vmatpush.bf16.msra.mxu2 %v6767_v25  ;;  %v7406_v22 = vld [vmem:[%s15364_s5 + $0x600] sm:$0xf]  ;;  %v9613_v25 = vld [vmem:[%s15364_s5 + $0x2c4] sm:$0xf] }
  0xae   :  { %2250 = vmatpush.bf16.msrb.mxu1 %v7535_v28  ;;  %2236 = vmatpush.bf16.msrb.mxu0 %v7279_v30  ;;  %v7407_v24 = vor.u32 %v9721_v23, %v7406_v22  ;;  %v6995_v28 = vor.u32 %v9613_v25, %v6992_v26  ;;  %v7182_v30 = vld [vmem:[%s15364_s5 + $0x440] sm:$0xf]  ;;  %v6672_v7 = vld [vmem:[%s15364_s5 + $0x60] sm:$0xf0] }
  0xaf   :  { %591 = vmatmul.bf16.vlgmr.msrb.gmra.mxu2 %v10805_v48  ;;  %619 = vmatmul.bf16.vlgmr.msra.gmra.mxu0 %v10805_v48  ;;  %v6670_v48 = vld [vmem:[%s15364_s5 + $0x40] sm:$0xf]  ;;  %v7183_v33 = vor.u32 %v9665_v31, %v7182_v30  ;;  %v7312_v10 = vld [vmem:[%s15364_s5 + $0x560] sm:$0xf0] }
  0xb0   :  { %605 = vmatmul.bf16.vlgmr.msrb.gmra.mxu3 %v10813_v53  ;;  %633 = vmatmul.bf16.vlgmr.msra.gmra.mxu1 %v10813_v53  ;;  %v6927_v53 = vor.u32 %v9601_v47, %v6926_v45  ;;  %v6671_v56 = vor.u32 %v9537_v49, %v6670_v48  ;;  %v7151_v45 = vor.u32 %v9657_v43, %v7150_v42  ;;  %v6736_v47 = vld [vmem:[%s15364_s5 + $0xe0] sm:$0xf0] }
  0xb1   :  { %2223 = vmatpush.bf16.msra.mxu3 %v6991_v34  ;;  %2209 = vmatpush.bf16.msra.mxu2 %v6735_v36  ;;  %v9557_v34 = vld [vmem:[%s15364_s5 + $0x104] sm:$0xf] }
  0xb2   :  { %2251 = vmatpush.bf16.msrb.mxu1 %v7503_v40  ;;  %2237 = vmatpush.bf16.msrb.mxu0 %v7247_v41  ;;  %v6771_v36 = vor.u32 %v9557_v34, %v6768_v35  ;;  %v6963_v40 = vor.u32 %v9605_v37, %v6960_v38  ;;  %v7600_v41 = vld [vmem:[%s15364_s5 + $0x7a0] sm:$0xf0] }
  0xb3   :  { %v9709_v48 = vld [vmem:[%s15364_s5 + $0x5c4] sm:$0xf] }
  0xb4   :  { %v7504_v13 = vld [vmem:[%s15364_s5 + $0x6e0] sm:$0xf0] }
  0xb5   :  { %2224 = vmatpush.bf16.msra.mxu3 %v6959_v44  ;;  %2210 = vmatpush.bf16.msra.mxu2 %v6703_v46  ;;  %v7603_v44 = vor.u32 %v9765_v39, %v7600_v41  ;;  %v9549_v46 = vld [vmem:[%s15364_s5 + $0xc4] sm:$0xf] }
  0xb6   :  { %2252 = vmatpush.bf16.msrb.mxu1 %v7471_v50  ;;  %2238 = vmatpush.bf16.msrb.mxu0 %v7215_v18  ;;  %v6739_v49 = vor.u32 %v9549_v46, %v6736_v47  ;;  %v7376_v50 = vld [vmem:[%s15364_s5 + $0x5e0] sm:$0xf0] }
  0xb7   :  { %v7379_v51 = vor.u32 %v9709_v48, %v7376_v50  ;;  %v6640_v16 = vld [vmem:[%s15364_s5 + $0x20] sm:$0xf0] }
  0xb8   :  { %v9685_v17 = vld [vmem:[%s15364_s5 + $0x504] sm:$0xf] }
  0xb9   :  { %2225 = vmatpush.bf16.msra.mxu3 %v6927_v53  ;;  %2211 = vmatpush.bf16.msra.mxu2 %v6671_v56  ;;  %v6928_v53 = vld [vmem:[%s15364_s5 + $0x260] sm:$0xf0]  ;;  %v7283_v20 = vor.u32 %v9685_v17, %v7280_v19  ;;  %v9578_v19 = vld [vmem:[%s15364_s5 + $0x1a4] sm:$0xf0] }
  0xba   :  { %2253 = vmatpush.bf16.msrb.mxu1 %v7439_v60  ;;  %2239 = vmatpush.bf16.msrb.mxu0 %v7183_v33  ;;  %v6931_v55 = vor.u32 %v9597_v52, %v6928_v53  ;;  %v7568_v56 = vld [vmem:[%s15364_s5 + $0x760] sm:$0xf0]  ;;  %v11162_v33 = vld [vmem:[%s15363_s4] sm:$0xf] }
  0xbb   :  { %v7571_v57 = vor.u32 %v9757_v54, %v7568_v56  ;;  %v9701_v60 = vld [vmem:[%s15364_s5 + $0x584] sm:$0xf]  ;;  %v199_v48 = vperm.slane %v11162_v33, 0  ;;  %v7126_v56 = vld [vmem:[%s15364_s5 + $0x3c8] sm:$0xf] }
  0xbc   :  { %v7347_v63 = vor.u32 %v9701_v60, %v7344_v62  ;;  %v7472_v22 = vld [vmem:[%s15364_s5 + $0x6a0] sm:$0xf0] }
  0xbd   :  { %2226 = vmatpush.bf16.msra.mxu3 %v6895_v0  ;;  %2212 = vmatpush.bf16.msra.mxu2 %v6639_v1  ;;  %v9589_v0 = vld [vmem:[%s15364_s5 + $0x204] sm:$0xf] }
  0xbe   :  { %2254 = vmatpush.bf16.msrb.mxu1 %v7407_v24  ;;  %2240 = vmatpush.bf16.msrb.mxu0 %v7151_v45  ;;  %v6896_v1 = vld [vmem:[%s15364_s5 + $0x220] sm:$0xf0] }
  0xbf   :  { %v6899_v3 = vor.u32 %v9589_v0, %v6896_v1  ;;  %v9677_v24 = vld [vmem:[%s15364_s5 + $0x4c4] sm:$0xf] }
  0xc0   :  { %v7248_v25 = vld [vmem:[%s15364_s5 + $0x4e0] sm:$0xf0] }
  0xc1   :  { %2275 = vmatpush.bf16.msrb.mxu3 %v7123_v2  ;;  %2261 = vmatpush.bf16.msrb.mxu2 %v6867_v4  ;;  %v9749_v2 = vld [vmem:[%s15364_s5 + $0x704] sm:$0xf]  ;;  %v7251_v26 = vor.u32 %v9677_v24, %v7248_v25  ;;  %v7030_v24 = vld [vmem:[%s15364_s5 + $0x308] sm:$0xf] }
  0xc2   :  { %2303 = vmatpush.bf16.msra.mxu1 %v7635_v32  ;;  %2289 = vmatpush.bf16.msra.mxu0 %v7379_v51  ;;  %v7536_v4 = vld [vmem:[%s15364_s5 + $0x720] sm:$0xf0]  ;;  %v9626_v25 = vld [vmem:[%s15364_s5 + $0x324] sm:$0xf0] }
  0xc3   :  { %v7539_v5 = vor.u32 %v9749_v2, %v7536_v4  ;;  %v9669_v30 = vld [vmem:[%s15364_s5 + $0x484] sm:$0xf]  ;;  %v7094_v2 = vld [vmem:[%s15364_s5 + $0x388] sm:$0xf] }
  0xc4   :  { %v7216_v31 = vld [vmem:[%s15364_s5 + $0x4a0] sm:$0xf0] }
  0xc5   :  { %2276 = vmatpush.bf16.msrb.mxu3 %v7091_v8  ;;  %2262 = vmatpush.bf16.msrb.mxu2 %v6835_v9  ;;  %v6675_v8 = vor.u32 %v9533_v6, %v6672_v7  ;;  %v9693_v9 = vld [vmem:[%s15364_s5 + $0x544] sm:$0xf]  ;;  %v7219_v32 = vor.u32 %v9669_v30, %v7216_v31  ;;  %v202_v6 = vperm.slane %v11162_v33, 3  ;;  %v6806_v30 = vld [vmem:[%s15364_s5 + $0x148] sm:$0xf] }
  0xc6   :  { %2304 = vmatpush.bf16.msra.mxu1 %v7603_v44  ;;  %2290 = vmatpush.bf16.msra.mxu0 %v7347_v63  ;;  %v7315_v11 = vor.u32 %v9693_v9, %v7312_v10  ;;  %v9717_v34 = vld [vmem:[%s15364_s5 + $0x604] sm:$0xf]  ;;  %v9586_v9 = vld [vmem:[%s15364_s5 + $0x1e4] sm:$0xf0] }
  0xc7   :  { %v7408_v35 = vld [vmem:[%s15364_s5 + $0x620] sm:$0xf0]  ;;  %v9570_v31 = vld [vmem:[%s15364_s5 + $0x164] sm:$0xf0] }
  0xc8   :  { %v9661_v38 = vld [vmem:[%s15364_s5 + $0x444] sm:$0xf] }
  0xc9   :  { %2277 = vmatpush.bf16.msrb.mxu3 %v7059_v12  ;;  %2263 = vmatpush.bf16.msrb.mxu2 %v6803_v21  ;;  %v9741_v12 = vld [vmem:[%s15364_s5 + $0x6c4] sm:$0xf] }
  0xca   :  { %2305 = vmatpush.bf16.msra.mxu1 %v7571_v57  ;;  %v7507_v14 = vor.u32 %v9741_v12, %v7504_v13  ;;  %2291 = vmatpush.bf16.msra.mxu0 %v7315_v11  ;;  %v9733_v21 = vld [vmem:[%s15364_s5 + $0x684] sm:$0xf]  ;;  %v9650_v57 = vld [vmem:[%s15364_s5 + $0x3e4] sm:$0xf0] }
  0xcb   :  { %v7475_v23 = vor.u32 %v9733_v21, %v7472_v22  ;;  %v7184_v39 = vld [vmem:[%s15364_s5 + $0x460] sm:$0xf0]  ;;  %v7062_v13 = vld [vmem:[%s15364_s5 + $0x348] sm:$0xf]  ;;  %v201_v22 = vperm.slane %v11162_v33, 2 }
  0xcc   :  { %v7187_v42 = vor.u32 %v9661_v38, %v7184_v39  ;;  %v9653_v43 = vld [vmem:[%s15364_s5 + $0x404] sm:$0xf]  ;;  %v7638_v38 = vld [vmem:[%s15364_s5 + $0x7c8] sm:$0xf] }
  0xcd   :  { %2278 = vmatpush.bf16.msrb.mxu3 %v7027_v15  ;;  %2264 = vmatpush.bf16.msrb.mxu2 %v6771_v36  ;;  %v9525_v15 = vld [vmem:[%s15364_s5 + $0x4] sm:$0xf]  ;;  %v7411_v36 = vor.u32 %v9717_v34, %v7408_v35  ;;  %v6998_v34 = vld [vmem:[%s15364_s5 + $0x2c8] sm:$0xf] }
  0xce   :  { %2306 = vmatpush.bf16.msra.mxu1 %v7539_v5  ;;  %v6643_v18 = vor.u32 %v9525_v15, %v6640_v16  ;;  %2292 = vmatpush.bf16.msra.mxu0 %v7283_v20  ;;  %v7152_v44 = vld [vmem:[%s15364_s5 + $0x420] sm:$0xf0]  ;;  %v9778_v39 = vld [vmem:[%s15364_s5 + $0x7e4] sm:$0xf0] }
  0xcf   :  { %v7155_v46 = vor.u32 %v9653_v43, %v7152_v44  ;;  %v6774_v43 = vld [vmem:[%s15364_s5 + $0x108] sm:$0xf] }
  0xd0   :  { %v9562_v44 = vld [vmem:[%s15364_s5 + $0x124] sm:$0xf0] }
  0xd1   :  { %2279 = vmatpush.bf16.msrb.mxu3 %v6995_v28  ;;  %2265 = vmatpush.bf16.msrb.mxu2 %v6739_v49  ;;  %v7440_v28 = vld [vmem:[%s15364_s5 + $0x660] sm:$0xf0] }
  0xd2   :  { %2307 = vmatpush.bf16.msra.mxu1 %v7507_v14  ;;  %v7443_v29 = vor.u32 %v9725_v27, %v7440_v28  ;;  %2293 = vmatpush.bf16.msra.mxu0 %v7251_v26  ;;  %v9634_v14 = vld [vmem:[%s15364_s5 + $0x364] sm:$0xf0] }
  0xd3   :  { %v7063_v21 = vor.u32 %v9634_v14, %v7062_v13  ;;  %v9706_v13 = vld [vmem:[%s15364_s5 + $0x5a4] sm:$0xf0] }
  0xd5   :  { %2280 = vmatpush.bf16.msrb.mxu3 %v6963_v40  ;;  %2266 = vmatpush.bf16.msrb.mxu2 %v6707_v61  ;;  %v200_v40 = vperm.slane %v11162_v33, 1  ;;  %v7127_v61 = vor.u32 %v9650_v57, %v7126_v56  ;;  %v7031_v33 = vor.u32 %v9626_v25, %v7030_v24  ;;  %v6775_v56 = vor.u32 %v9562_v44, %v6774_v43  ;;  %v6742_v57 = vld [vmem:[%s15364_s5 + $0xc8] sm:$0xf]  ;;  %v7128_v24 = vld [vmem:[%s15364_s5 + $0x3e8] sm:$0xf0] }
  0xd6   :  { %2308 = vmatpush.bf16.msra.mxu1 %v7475_v23  ;;  %2294 = vmatpush.bf16.msra.mxu0 %v7219_v32  ;;  %v6678_v25 = vld [vmem:[%s15364_s5 + $0x48] sm:$0xf]  ;;  %v9582_v43 = vld [vmem:[%s15364_s5 + $0x1cc] sm:$0xf] }
  0xd7   :  { %v6872_v44 = vld [vmem:[%s15364_s5 + $0x1e8] sm:$0xf0] }
  0xd9   :  { %2281 = vmatpush.bf16.msrb.mxu3 %v6931_v55  ;;  %2267 = vmatpush.bf16.msrb.mxu2 %v6675_v8  ;;  %v6870_v8 = vld [vmem:[%s15364_s5 + $0x1c8] sm:$0xf] }
  0xda   :  { %2309 = vmatpush.bf16.msra.mxu1 %v7443_v29  ;;  %2295 = vmatpush.bf16.msra.mxu0 %v7187_v42  ;;  %v6871_v15 = vor.u32 %v9586_v9, %v6870_v8  ;;  %v6710_v9 = vld [vmem:[%s15364_s5 + $0x88] sm:$0xf] }
  0xdd   :  { %2282 = vmatpush.bf16.msrb.mxu3 %v6899_v3  ;;  %2268 = vmatpush.bf16.msrb.mxu2 %v6643_v18  ;;  %v9642_v3 = vld [vmem:[%s15364_s5 + $0x3a4] sm:$0xf0] }
  0xde   :  { %2310 = vmatpush.bf16.msra.mxu1 %v7411_v36  ;;  %2296 = vmatpush.bf16.msra.mxu0 %v7155_v46  ;;  %v7095_v10 = vor.u32 %v9642_v3, %v7094_v2  ;;  %v6838_v18 = vld [vmem:[%s15364_s5 + $0x188] sm:$0xf] }
  0xdf   :  { %v6839_v27 = vor.u32 %v9578_v19, %v6838_v18  ;;  %v9602_v2 = vld [vmem:[%s15364_s5 + $0x264] sm:$0xf0] }
  0xe0   :  { %v9594_v18 = vld [vmem:[%s15364_s5 + $0x224] sm:$0xf0] }
  0xe1   :  { %v7542_v19 = vld [vmem:[%s15364_s5 + $0x708] sm:$0xf] }
 0x11c   :  { %v564_v37 = vpop.f32.mrf.mxu0 }
 0x11d   :  { %v578_v41 = vpop.f32.mrf.mxu1  ;;  %v565_v45 = vadd.f32 %v564_v37, %v200_v40  ;;  %v9618_v37 = vld [vmem:[%s15364_s5 + $0x2e4] sm:$0xf0] }
 0x11e   :  { %v6999_v46 = vor.u32 %v9618_v37, %v6998_v34  ;;  %v7096_v37 = vld [vmem:[%s15364_s5 + $0x3a8] sm:$0xf0] }
 0x11f   :  { %v579_v51 = vadd.f32 %v578_v41, %v565_v45 }
 0x121   :  { %v640_v58 = vmax.f32 %v579_v51, 0.0 }
 0x122   :  { %v536_v47 = vpop.f32.mrf.mxu2 }
 0x123   :  { %v550_v49 = vpop.f32.mrf.mxu3  ;;  %v537_v54 = vadd.f32 %v536_v47, %v199_v48  ;;  %v7639_v47 = vor.u32 %v9778_v39, %v7638_v38  ;;  %v6646_v38 = vld [vmem:[%s15364_s5 + $0x8] sm:$0xf] }
 0x124   :  { %v566_v50 = vpop.f32.mrf.mxu0  ;;  %v9530_v39 = vld [vmem:[%s15364_s5 + $0x24] sm:$0xf0] }
 0x125   :  { %v567_v52 = vadd.f32 %v566_v50, %v200_v40  ;;  %v580_v53 = vpop.f32.mrf.mxu1  ;;  %v551_v62 = vadd.f32 %v550_v49, %v537_v54  ;;  %v6807_v40 = vor.u32 %v9570_v31, %v6806_v30  ;;  %v9770_v54 = vld [vmem:[%s15364_s5 + $0x7a4] sm:$0xf0] }
 0x127   :  { %v581_v55 = vadd.f32 %v580_v53, %v567_v52  ;;  %v639_v11 = vmax.f32 %v551_v62, 0.0  ;;  %v9610_v52 = vld [vmem:[%s15364_s5 + $0x2a4] sm:$0xf0] }
 0x128   :  { %v7606_v53 = vld [vmem:[%s15364_s5 + $0x788] sm:$0xf] }
 0x129   :  { %v644_v59 = vmax.f32 %v581_v55, 0.0 }
 0x12a   :  { %v538_v60 = vpop.f32.mrf.mxu2 }
 0x12b   :  { %v11190_v63 = vpack.c.bf16 %v644_v59, %v640_v58  ;;  %v539_v0 = vadd.f32 %v538_v60, %v199_v48  ;;  %v552_v1 = vpop.f32.mrf.mxu3  ;;  %v6966_v48 = vld [vmem:[%s15364_s5 + $0x288] sm:$0xf] }
 0x12c   :  { %v620_v4 = vpop.f32.mrf.mxu0  ;;  %v9554_v59 = vld [vmem:[%s15364_s5 + $0xe4] sm:$0xf0]  ;;  %v6967_v62 = vor.u32 %v9610_v52, %v6966_v48  ;;  %v6647_v48 = vor.u32 %v9530_v39, %v6646_v38  ;;  %v7064_v52 = vld [vmem:[%s15364_s5 + $0x368] sm:$0xf0] }
 0x12d   :  { %v553_v5 = vadd.f32 %v552_v1, %v539_v0  ;;  %v634_v7 = vpop.f32.mrf.mxu1  ;;  %2227 = vmatmul.bf16.vlgmr.msra.gmra.mxu3 %v11190_v63  ;;  %v621_v17 = vadd.f32 %v620_v4, %v202_v6  ;;  %v7382_v60 = vld [vmem:[%s15364_s5 + $0x5c8] sm:$0xf]  ;;  %v7607_v0 = vor.u32 %v9770_v54, %v7606_v53  ;;  %v6875_v53 = vor.u32 %v9582_v43, %v6872_v44  ;;  %v9758_v43 = vld [vmem:[%s15364_s5 + $0x74c] sm:$0xf] }
 0x12e   :  { %2331 = vmatpush.bf16.msra.mxu3 %v7127_v61  ;;  %v9714_v61 = vld [vmem:[%s15364_s5 + $0x5e4] sm:$0xf0]  ;;  %v7576_v44 = vld [vmem:[%s15364_s5 + $0x768] sm:$0xf0] }
 0x12f   :  { %v643_v12 = vmax.f32 %v553_v5, 0.0  ;;  %v635_v28 = vadd.f32 %v634_v7, %v621_v17  ;;  %v6934_v1 = vld [vmem:[%s15364_s5 + $0x248] sm:$0xf]  ;;  %v6743_v7 = vor.u32 %v9554_v59, %v6742_v57  ;;  %v7383_v8 = vor.u32 %v9714_v61, %v7382_v60  ;;  %v9574_v57 = vld [vmem:[%s15364_s5 + $0x18c] sm:$0xf] }
 0x130   :  { %v7574_v5 = vld [vmem:[%s15364_s5 + $0x748] sm:$0xf]  ;;  %v6935_v14 = vor.u32 %v9602_v2, %v6934_v1  ;;  %v7032_v1 = vld [vmem:[%s15364_s5 + $0x328] sm:$0xf0] }
 0x131   :  { %v11212_v16 = vpack.c.bf16 %v643_v12, %v639_v11  ;;  %v642_v41 = vmax.f32 %v635_v28, 0.0  ;;  %v9546_v11 = vld [vmem:[%s15364_s5 + $0xa4] sm:$0xf0] }
 0x132   :  { %2332 = vmatpush.bf16.msra.mxu3 %v7095_v10  ;;  %v592_v20 = vpop.f32.mrf.mxu2  ;;  %v7350_v12 = vld [vmem:[%s15364_s5 + $0x588] sm:$0xf] }
 0x133   :  { %v606_v23 = vpop.f32.mrf.mxu3  ;;  %2213 = vmatmul.bf16.vlgmr.msra.gmra.mxu2 %v11212_v16  ;;  %v593_v35 = vadd.f32 %v592_v20, %v201_v22  ;;  %v6902_v17 = vld [vmem:[%s15364_s5 + $0x208] sm:$0xf] }
 0x134   :  { %2317 = vmatpush.bf16.msra.mxu2 %v6871_v15  ;;  %v622_v26 = vpop.f32.mrf.mxu0  ;;  %v9754_v20 = vld [vmem:[%s15364_s5 + $0x724] sm:$0xf0] }
 0x135   :  { %v623_v29 = vadd.f32 %v622_v26, %v202_v6  ;;  %v636_v32 = vpop.f32.mrf.mxu1  ;;  %v607_v49 = vadd.f32 %v606_v23, %v593_v35  ;;  %v9762_v6 = vld [vmem:[%s15364_s5 + $0x764] sm:$0xf0]  ;;  %v9646_v23 = vld [vmem:[%s15364_s5 + $0x3cc] sm:$0xf]  ;;  %v7543_v30 = vor.u32 %v9754_v20, %v7542_v19 }
 0x136   :  { %2333 = vmatpush.bf16.msra.mxu3 %v7063_v21  ;;  %v7575_v15 = vor.u32 %v9762_v6, %v7574_v5  ;;  %v6711_v21 = vor.u32 %v9546_v11, %v6710_v9  ;;  %v9538_v26 = vld [vmem:[%s15364_s5 + $0x64] sm:$0xf0]  ;;  %v7131_v31 = vor.u32 %v9646_v23, %v7128_v24  ;;  %v9566_v6 = vld [vmem:[%s15364_s5 + $0x14c] sm:$0xf] }
 0x137   :  { %v637_v36 = vadd.f32 %v636_v32, %v623_v29  ;;  %v641_v3 = vmax.f32 %v607_v49, 0.0  ;;  %v9698_v28 = vld [vmem:[%s15364_s5 + $0x564] sm:$0xf0]  ;;  %v6903_v29 = vor.u32 %v9594_v18, %v6902_v17  ;;  %v6679_v34 = vor.u32 %v9538_v26, %v6678_v25  ;;  %v7640_v17 = vld [vmem:[%s15364_s5 + $0x7e8] sm:$0xf0] }
 0x138   :  { %2318 = vmatpush.bf16.msra.mxu2 %v6839_v27  ;;  %v7318_v27 = vld [vmem:[%s15364_s5 + $0x548] sm:$0xf]  ;;  %v6776_v23 = vld [vmem:[%s15364_s5 + $0x128] sm:$0xf0] }
 0x139   :  { %v646_v42 = vmax.f32 %v637_v36, 0.0  ;;  %v7510_v32 = vld [vmem:[%s15364_s5 + $0x6c8] sm:$0xf]  ;;  %v7319_v35 = vor.u32 %v9698_v28, %v7318_v27  ;;  %v9638_v36 = vld [vmem:[%s15364_s5 + $0x38c] sm:$0xf] }
 0x13a   :  { %2334 = vmatpush.bf16.msra.mxu3 %v7031_v33  ;;  %v594_v45 = vpop.f32.mrf.mxu2  ;;  %v9746_v33 = vld [vmem:[%s15364_s5 + $0x6e4] sm:$0xf0]  ;;  %v9606_v26 = vld [vmem:[%s15364_s5 + $0x28c] sm:$0xf] }
 0x13b   :  { %v11255_v50 = vpack.c.bf16 %v646_v42, %v642_v41  ;;  %v595_v51 = vadd.f32 %v594_v45, %v201_v22  ;;  %v608_v55 = vpop.f32.mrf.mxu3  ;;  %v7351_v22 = vor.u32 %v9706_v13, %v7350_v12  ;;  %v9690_v41 = vld [vmem:[%s15364_s5 + $0x524] sm:$0xf0]  ;;  %v7511_v42 = vor.u32 %v9746_v33, %v7510_v32  ;;  %v9614_v12 = vld [vmem:[%s15364_s5 + $0x2cc] sm:$0xf] }
 0x13c   :  { %2319 = vmatpush.bf16.msra.mxu2 %v6807_v40  ;;  %v7286_v40 = vld [vmem:[%s15364_s5 + $0x508] sm:$0xf]  ;;  %v7099_v45 = vor.u32 %v9638_v36, %v7096_v37  ;;  %v6968_v28 = vld [vmem:[%s15364_s5 + $0x2a8] sm:$0xf0] }
 0x13d   :  { %v609_v58 = vadd.f32 %v608_v55, %v595_v51  ;;  %2255 = vmatmul.bf16.vlgmr.msrb.gmra.mxu1 %v11255_v50  ;;  %2283 = vmatmul.bf16.vlgmr.msrb.gmra.mxu3 %v11190_v63  ;;  %v7287_v49 = vor.u32 %v9690_v41, %v7286_v40  ;;  %v9630_v51 = vld [vmem:[%s15364_s5 + $0x34c] sm:$0xf]  ;;  %v7254_v54 = vld [vmem:[%s15364_s5 + $0x4c8] sm:$0xf]  ;;  %v6971_v38 = vor.u32 %v9606_v26, %v6968_v28  ;;  %v7070_v26 = vld [vmem:[%s15364_s5 + $0x350] sm:$0xf] }
 0x13e   :  { %2335 = vmatpush.bf16.msra.mxu3 %v6999_v46  ;;  %2359 = vmatpush.bf16.msrb.mxu1 %v7639_v47  ;;  %v7478_v46 = vld [vmem:[%s15364_s5 + $0x688] sm:$0xf]  ;;  %v7067_v59 = vor.u32 %v9630_v51, %v7064_v52  ;;  %v9710_v36 = vld [vmem:[%s15364_s5 + $0x5cc] sm:$0xf] }
 0x13f   :  { %v645_v4 = vmax.f32 %v609_v58, 0.0  ;;  %v9738_v47 = vld [vmem:[%s15364_s5 + $0x6a4] sm:$0xf0]  ;;  %v6840_v58 = vld [vmem:[%s15364_s5 + $0x1a8] sm:$0xf0] }
 0x140   :  { %2320 = vmatpush.bf16.msra.mxu2 %v6775_v56  ;;  %v9682_v55 = vld [vmem:[%s15364_s5 + $0x4e4] sm:$0xf0]  ;;  %v7479_v56 = vor.u32 %v9738_v47, %v7478_v46  ;;  %v6843_v2 = vor.u32 %v9574_v57, %v6840_v58  ;;  %v7384_v37 = vld [vmem:[%s15364_s5 + $0x5e8] sm:$0xf0] }
 0x141   :  { %v11295_v10 = vpack.c.bf16 %v645_v4, %v641_v3  ;;  %v7446_v60 = vld [vmem:[%s15364_s5 + $0x648] sm:$0xf]  ;;  %v9598_v40 = vld [vmem:[%s15364_s5 + $0x24c] sm:$0xf]  ;;  %v7387_v46 = vor.u32 %v9710_v36, %v7384_v37 }
 0x142   :  { %2336 = vmatpush.bf16.msra.mxu3 %v6967_v62  ;;  %2360 = vmatpush.bf16.msrb.mxu1 %v7607_v0  ;;  %v9730_v61 = vld [vmem:[%s15364_s5 + $0x664] sm:$0xf0]  ;;  %v7255_v62 = vor.u32 %v9682_v55, %v7254_v54  ;;  %v9622_v0 = vld [vmem:[%s15364_s5 + $0x30c] sm:$0xf] }
 0x143   :  { %2241 = vmatmul.bf16.vlgmr.msrb.gmra.mxu0 %v11295_v10  ;;  %2269 = vmatmul.bf16.vlgmr.msrb.gmra.mxu2 %v11212_v16  ;;  %v7222_v3 = vld [vmem:[%s15364_s5 + $0x488] sm:$0xf]  ;;  %v7447_v5 = vor.u32 %v9730_v61, %v7446_v60  ;;  %v9542_v47 = vld [vmem:[%s15364_s5 + $0x8c] sm:$0xf]  ;;  %v7134_v60 = vld [vmem:[%s15364_s5 + $0x3d0] sm:$0xf] }
 0x144   :  { %2321 = vmatpush.bf16.msra.mxu2 %v6743_v7  ;;  %2345 = vmatpush.bf16.msrb.mxu0 %v7383_v8  ;;  %v9674_v4 = vld [vmem:[%s15364_s5 + $0x4a4] sm:$0xf0]  ;;  %v6808_v7 = vld [vmem:[%s15364_s5 + $0x168] sm:$0xf0]  ;;  %v7035_v8 = vor.u32 %v9622_v0, %v7032_v1  ;;  %v9651_v61 = vld [vmem:[%s15364_s5 + $0x3ec] sm:$0xf0] }
 0x145   :  { %v7414_v9 = vld [vmem:[%s15364_s5 + $0x608] sm:$0xf]  ;;  %v7223_v13 = vor.u32 %v9674_v4, %v7222_v3  ;;  %v6811_v18 = vor.u32 %v9566_v6, %v6808_v7  ;;  %v7352_v51 = vld [vmem:[%s15364_s5 + $0x5a8] sm:$0xf0] }
 0x146   :  { %2337 = vmatpush.bf16.msra.mxu3 %v6935_v14  ;;  %2361 = vmatpush.bf16.msrb.mxu1 %v7575_v15  ;;  %v9722_v11 = vld [vmem:[%s15364_s5 + $0x624] sm:$0xf0]  ;;  %v7000_v14 = vld [vmem:[%s15364_s5 + $0x2e8] sm:$0xf0] }
 0x147   :  { %v9774_v15 = vld [vmem:[%s15364_s5 + $0x7cc] sm:$0xf]  ;;  %v7190_v19 = vld [vmem:[%s15364_s5 + $0x448] sm:$0xf]  ;;  %v7003_v24 = vor.u32 %v9614_v12, %v7000_v14  ;;  %v9643_v12 = vld [vmem:[%s15364_s5 + $0x3ac] sm:$0xf0] }
 0x148   :  { %2322 = vmatpush.bf16.msra.mxu2 %v6711_v21  ;;  %2346 = vmatpush.bf16.msrb.mxu0 %v7351_v22  ;;  %v9666_v20 = vld [vmem:[%s15364_s5 + $0x464] sm:$0xf0]  ;;  %v7415_v21 = vor.u32 %v9722_v11, %v7414_v9  ;;  %v9558_v22 = vld [vmem:[%s15364_s5 + $0x10c] sm:$0xf]  ;;  %v7643_v25 = vor.u32 %v9774_v15, %v7640_v17  ;;  %v7102_v11 = vld [vmem:[%s15364_s5 + $0x390] sm:$0xf] }
 0x149   :  { %v7191_v27 = vor.u32 %v9666_v20, %v7190_v19  ;;  %v7158_v32 = vld [vmem:[%s15364_s5 + $0x408] sm:$0xf]  ;;  %v9590_v54 = vld [vmem:[%s15364_s5 + $0x20c] sm:$0xf]  ;;  %v6878_v19 = vld [vmem:[%s15364_s5 + $0x1d0] sm:$0xf] }
 0x14a   :  { %2338 = vmatpush.bf16.msra.mxu3 %v6903_v29  ;;  %2362 = vmatpush.bf16.msrb.mxu1 %v7543_v30  ;;  %v9766_v29 = vld [vmem:[%s15364_s5 + $0x78c] sm:$0xf]  ;;  %v9658_v33 = vld [vmem:[%s15364_s5 + $0x424] sm:$0xf0]  ;;  %v9587_v20 = vld [vmem:[%s15364_s5 + $0x1ec] sm:$0xf0] }
 0x14b   :  { %v7608_v30 = vld [vmem:[%s15364_s5 + $0x7a8] sm:$0xf0]  ;;  %v7159_v41 = vor.u32 %v9658_v33, %v7158_v32  ;;  %v6879_v28 = vor.u32 %v9587_v20, %v6878_v19  ;;  %v6846_v32 = vld [vmem:[%s15364_s5 + $0x190] sm:$0xf] }
 0x14c   :  { %2323 = vmatpush.bf16.msra.mxu2 %v6679_v34  ;;  %2347 = vmatpush.bf16.msrb.mxu0 %v7319_v35  ;;  %v9550_v34 = vld [vmem:[%s15364_s5 + $0xcc] sm:$0xf]  ;;  %v7611_v39 = vor.u32 %v9766_v29, %v7608_v30  ;;  %v9579_v33 = vld [vmem:[%s15364_s5 + $0x1ac] sm:$0xf0] }
 0x14d   :  { %2311 = vmatmul.bf16.vlgmr.msra.gmra.mxu1 %v11255_v50  ;;  %2339 = vmatmul.bf16.vlgmr.msra.gmra.mxu3 %v11190_v63  ;;  %v6744_v35 = vld [vmem:[%s15364_s5 + $0xe8] sm:$0xf0] }
 0x14e   :  { %2387 = vmatpush.bf16.msrb.mxu3 %v7131_v31  ;;  %2363 = vmatpush.bf16.msrb.mxu1 %v7511_v42  ;;  %v6779_v31 = vor.u32 %v9558_v22, %v6776_v23  ;;  %v6936_v42 = vld [vmem:[%s15364_s5 + $0x268] sm:$0xf0] }
 0x14f   :  { %v6939_v52 = vor.u32 %v9598_v40, %v6936_v42  ;;  %v6904_v55 = vld [vmem:[%s15364_s5 + $0x228] sm:$0xf0]  ;;  %v6847_v40 = vor.u32 %v9579_v33, %v6846_v32  ;;  %v9755_v32 = vld [vmem:[%s15364_s5 + $0x72c] sm:$0xf0] }
 0x150   :  { %2324 = vmatpush.bf16.msra.mxu2 %v6647_v48  ;;  %2348 = vmatpush.bf16.msrb.mxu0 %v7287_v49  ;;  %v6712_v48 = vld [vmem:[%s15364_s5 + $0xa8] sm:$0xf0]  ;;  %v6907_v3 = vor.u32 %v9590_v54, %v6904_v55  ;;  %v9779_v54 = vld [vmem:[%s15364_s5 + $0x7ec] sm:$0xf0] }
 0x151   :  { %v9702_v49 = vld [vmem:[%s15364_s5 + $0x58c] sm:$0xf]  ;;  %v6715_v58 = vor.u32 %v9542_v47, %v6712_v48 }
 0x152   :  { %2388 = vmatpush.bf16.msrb.mxu3 %v7099_v45  ;;  %2364 = vmatpush.bf16.msrb.mxu1 %v7479_v56  ;;  %v6747_v45 = vor.u32 %v9550_v34, %v6744_v35  ;;  %v9750_v56 = vld [vmem:[%s15364_s5 + $0x70c] sm:$0xf] }
 0x153   :  { %2297 = vmatmul.bf16.vlgmr.msra.gmra.mxu0 %v11295_v10  ;;  %2325 = vmatmul.bf16.vlgmr.msra.gmra.mxu2 %v11212_v16  ;;  %v7544_v57 = vld [vmem:[%s15364_s5 + $0x728] sm:$0xf0] }
 0x154   :  { %2373 = vmatpush.bf16.msrb.mxu2 %v6875_v53  ;;  %2349 = vmatpush.bf16.msrb.mxu0 %v7255_v62  ;;  %v7579_v53 = vor.u32 %v9758_v43, %v7576_v44  ;;  %v9534_v62 = vld [vmem:[%s15364_s5 + $0x4c] sm:$0xf]  ;;  %v7547_v4 = vor.u32 %v9750_v56, %v7544_v57  ;;  %v6814_v44 = vld [vmem:[%s15364_s5 + $0x150] sm:$0xf] }
 0x155   :  { %v6680_v0 = vld [vmem:[%s15364_s5 + $0x68] sm:$0xf0] }
 0x156   :  { %2389 = vmatpush.bf16.msrb.mxu3 %v7067_v59  ;;  %2365 = vmatpush.bf16.msrb.mxu1 %v7447_v5  ;;  %v7355_v59 = vor.u32 %v9702_v49, %v7352_v51  ;;  %v9694_v1 = vld [vmem:[%s15364_s5 + $0x54c] sm:$0xf]  ;;  %v7135_v5 = vor.u32 %v9651_v61, %v7134_v60  ;;  %v7006_v49 = vld [vmem:[%s15364_s5 + $0x2d0] sm:$0xf] }
 0x157   :  { %v9742_v6 = vld [vmem:[%s15364_s5 + $0x6cc] sm:$0xf]  ;;  %v9563_v60 = vld [vmem:[%s15364_s5 + $0x12c] sm:$0xf0] }
 0x158   :  { %2374 = vmatpush.bf16.msrb.mxu2 %v6843_v2  ;;  %2350 = vmatpush.bf16.msrb.mxu0 %v7223_v13  ;;  %v7320_v2 = vld [vmem:[%s15364_s5 + $0x568] sm:$0xf0] }
 0x159   :  { %v7512_v7 = vld [vmem:[%s15364_s5 + $0x6e8] sm:$0xf0]  ;;  %v7323_v9 = vor.u32 %v9694_v1, %v7320_v2  ;;  %v9611_v2 = vld [vmem:[%s15364_s5 + $0x2ac] sm:$0xf0] }
 0x15a   :  { %2390 = vmatpush.bf16.msrb.mxu3 %v7035_v8  ;;  %2366 = vmatpush.bf16.msrb.mxu1 %v7415_v21  ;;  %v6683_v8 = vor.u32 %v9534_v62, %v6680_v0  ;;  %v9526_v13 = vld [vmem:[%s15364_s5 + $0xc] sm:$0xf]  ;;  %v7103_v21 = vor.u32 %v9643_v12, %v7102_v11  ;;  %v6974_v0 = vld [vmem:[%s15364_s5 + $0x290] sm:$0xf] }
 0x15b   :  { %v6648_v14 = vld [vmem:[%s15364_s5 + $0x28] sm:$0xf0]  ;;  %v7390_v11 = vld [vmem:[%s15364_s5 + $0x5d0] sm:$0xf] }
 0x15c   :  { %2375 = vmatpush.bf16.msrb.mxu2 %v6811_v18  ;;  %2351 = vmatpush.bf16.msrb.mxu0 %v7191_v27  ;;  %v9686_v15 = vld [vmem:[%s15364_s5 + $0x50c] sm:$0xf]  ;;  %v7515_v18 = vor.u32 %v9742_v6, %v7512_v7  ;;  %v9635_v27 = vld [vmem:[%s15364_s5 + $0x36c] sm:$0xf0] }
 0x15d   :  { %2367 = vmatmul.bf16.vlgmr.msrb.gmra.mxu1 %v11255_v50  ;;  %v7288_v17 = vld [vmem:[%s15364_s5 + $0x528] sm:$0xf0]  ;;  %v7071_v34 = vor.u32 %v9635_v27, %v7070_v26  ;;  %v9715_v12 = vld [vmem:[%s15364_s5 + $0x5ec] sm:$0xf0] }
 0x15e   :  { %2391 = vmatpush.bf16.msrb.mxu3 %v7003_v24  ;;  %2415 = vmatpush.bf16.msra.mxu1 %v7643_v25  ;;  %v9734_v22 = vld [vmem:[%s15364_s5 + $0x68c] sm:$0xf]  ;;  %v6651_v24 = vor.u32 %v9526_v13, %v6648_v14  ;;  %v7291_v25 = vor.u32 %v9686_v15, %v7288_v17  ;;  %v6975_v13 = vor.u32 %v9611_v2, %v6974_v0  ;;  %v6942_v17 = vld [vmem:[%s15364_s5 + $0x250] sm:$0xf]  ;;  %v9631_v0 = vld [vmem:[%s15364_s5 + $0x354] sm:$0xf] }
 0x15f   :  { %v7480_v23 = vld [vmem:[%s15364_s5 + $0x6a8] sm:$0xf0]  ;;  %v7391_v20 = vor.u32 %v9715_v12, %v7390_v11  ;;  %v9707_v26 = vld [vmem:[%s15364_s5 + $0x5ac] sm:$0xf0]  ;;  %v7072_v2 = vld [vmem:[%s15364_s5 + $0x370] sm:$0xf0] }
 0x160   :  { %2376 = vmatpush.bf16.msrb.mxu2 %v6779_v31  ;;  %2352 = vmatpush.bf16.msrb.mxu0 %v7159_v41  ;;  %v9678_v29 = vld [vmem:[%s15364_s5 + $0x4cc] sm:$0xf]  ;;  %v7483_v31 = vor.u32 %v9734_v22, %v7480_v23  ;;  %v9763_v22 = vld [vmem:[%s15364_s5 + $0x76c] sm:$0xf0] }
 0x161   :  { %v7256_v30 = vld [vmem:[%s15364_s5 + $0x4e8] sm:$0xf0]  ;;  %v6718_v23 = vld [vmem:[%s15364_s5 + $0x90] sm:$0xf] }
 0x162   :  { %2392 = vmatpush.bf16.msrb.mxu3 %v6971_v38  ;;  %2416 = vmatpush.bf16.msra.mxu1 %v7611_v39  ;;  %v9726_v35 = vld [vmem:[%s15364_s5 + $0x64c] sm:$0xf]  ;;  %v7259_v37 = vor.u32 %v9678_v29, %v7256_v30  ;;  %v7038_v38 = vld [vmem:[%s15364_s5 + $0x310] sm:$0xf] }
 0x163   :  { %2353 = vmatmul.bf16.vlgmr.msrb.gmra.mxu0 %v11295_v10  ;;  %v7448_v36 = vld [vmem:[%s15364_s5 + $0x668] sm:$0xf0]  ;;  %v9627_v39 = vld [vmem:[%s15364_s5 + $0x32c] sm:$0xf0] }
 0x164   :  { %2377 = vmatpush.bf16.msrb.mxu2 %v6747_v45  ;;  %2401 = vmatpush.bf16.msra.mxu0 %v7387_v46  ;;  %v9670_v41 = vld [vmem:[%s15364_s5 + $0x48c] sm:$0xf]  ;;  %v7451_v43 = vor.u32 %v9726_v35, %v7448_v36  ;;  %v9571_v45 = vld [vmem:[%s15364_s5 + $0x16c] sm:$0xf0]  ;;  %v7039_v46 = vor.u32 %v9627_v39, %v7038_v38  ;;  %v9647_v35 = vld [vmem:[%s15364_s5 + $0x3d4] sm:$0xf] }
 0x165   :  { %v7224_v42 = vld [vmem:[%s15364_s5 + $0x4a8] sm:$0xf0]  ;;  %v6815_v55 = vor.u32 %v9571_v45, %v6814_v44  ;;  %v9595_v30 = vld [vmem:[%s15364_s5 + $0x22c] sm:$0xf0]  ;;  %v7136_v36 = vld [vmem:[%s15364_s5 + $0x3f0] sm:$0xf0] }
 0x166   :  { %2393 = vmatpush.bf16.msrb.mxu3 %v6939_v52  ;;  %2417 = vmatpush.bf16.msra.mxu1 %v7579_v53  ;;  %v9718_v47 = vld [vmem:[%s15364_s5 + $0x60c] sm:$0xf]  ;;  %v7227_v51 = vor.u32 %v9670_v41, %v7224_v42  ;;  %v9619_v52 = vld [vmem:[%s15364_s5 + $0x2ec] sm:$0xf0] }
 0x167   :  { %v7416_v48 = vld [vmem:[%s15364_s5 + $0x628] sm:$0xf0]  ;;  %v7646_v53 = vld [vmem:[%s15364_s5 + $0x7d0] sm:$0xf]  ;;  %v7007_v61 = vor.u32 %v9619_v52, %v7006_v49  ;;  %v7104_v49 = vld [vmem:[%s15364_s5 + $0x3b0] sm:$0xf0] }
 0x168   :  { %2378 = vmatpush.bf16.msrb.mxu2 %v6715_v58  ;;  %2402 = vmatpush.bf16.msra.mxu0 %v7355_v59  ;;  %v9662_v56 = vld [vmem:[%s15364_s5 + $0x44c] sm:$0xf]  ;;  %v7419_v58 = vor.u32 %v9718_v47, %v7416_v48  ;;  %v6782_v59 = vld [vmem:[%s15364_s5 + $0x110] sm:$0xf]  ;;  %v7647_v62 = vor.u32 %v9779_v54, %v7646_v53  ;;  %v9639_v48 = vld [vmem:[%s15364_s5 + $0x394] sm:$0xf] }
 0x169   :  { %v7192_v57 = vld [vmem:[%s15364_s5 + $0x468] sm:$0xf0]  ;;  %v9539_v38 = vld [vmem:[%s15364_s5 + $0x6c] sm:$0xf0] }
 0x16a   :  { %2394 = vmatpush.bf16.msrb.mxu3 %v6907_v3  ;;  %2418 = vmatpush.bf16.msra.mxu1 %v7547_v4  ;;  %v7195_v1 = vor.u32 %v9662_v56, %v7192_v57  ;;  %v7614_v3 = vld [vmem:[%s15364_s5 + $0x790] sm:$0xf]  ;;  %v9654_v6 = vld [vmem:[%s15364_s5 + $0x40c] sm:$0xf]  ;;  %v6880_v56 = vld [vmem:[%s15364_s5 + $0x1f0] sm:$0xf0] }
 0x16b   :  { %v9771_v4 = vld [vmem:[%s15364_s5 + $0x7ac] sm:$0xf0]  ;;  %v7160_v7 = vld [vmem:[%s15364_s5 + $0x428] sm:$0xf0] }
 0x16c   :  { %2379 = vmatpush.bf16.msrb.mxu2 %v6683_v8  ;;  %2403 = vmatpush.bf16.msra.mxu0 %v7323_v9  ;;  %v6750_v8 = vld [vmem:[%s15364_s5 + $0xd0] sm:$0xf]  ;;  %v7615_v14 = vor.u32 %v9771_v4, %v7614_v3  ;;  %v7163_v15 = vor.u32 %v9654_v6, %v7160_v7  ;;  %v6848_v6 = vld [vmem:[%s15364_s5 + $0x1b0] sm:$0xf0] }
 0x16d   :  { %2395 = vmatmul.bf16.vlgmr.msrb.gmra.mxu3 %v11190_v63  ;;  %v9555_v9 = vld [vmem:[%s15364_s5 + $0xec] sm:$0xf0] }
 0x16e   :  { %2443 = vmatpush.bf16.msra.mxu3 %v7135_v5  ;;  %2419 = vmatpush.bf16.msra.mxu1 %v7515_v18  ;;  %v6783_v5 = vor.u32 %v9563_v60, %v6782_v59  ;;  %v9603_v18 = vld [vmem:[%s15364_s5 + $0x26c] sm:$0xf0]  ;;  %v6751_v19 = vor.u32 %v9555_v9, %v6750_v8  ;;  %v7075_v8 = vor.u32 %v9631_v0, %v7072_v2  ;;  %v7360_v0 = vld [vmem:[%s15364_s5 + $0x5b0] sm:$0xf0] }
 0x16f   :  { %v6943_v27 = vor.u32 %v9603_v18, %v6942_v17  ;;  %v7326_v39 = vld [vmem:[%s15364_s5 + $0x550] sm:$0xf]  ;;  %v9591_v2 = vld [vmem:[%s15364_s5 + $0x214] sm:$0xf] }
 0x170   :  { %2380 = vmatpush.bf16.msrb.mxu2 %v6651_v24  ;;  %2404 = vmatpush.bf16.msra.mxu0 %v7291_v25  ;;  %v9547_v24 = vld [vmem:[%s15364_s5 + $0xac] sm:$0xf0] }
 0x171   :  { %v7358_v25 = vld [vmem:[%s15364_s5 + $0x590] sm:$0xf]  ;;  %v6719_v33 = vor.u32 %v9547_v24, %v6718_v23 }
 0x172   :  { %2444 = vmatpush.bf16.msra.mxu3 %v7103_v21  ;;  %2420 = vmatpush.bf16.msra.mxu1 %v7483_v31  ;;  %v7582_v21 = vld [vmem:[%s15364_s5 + $0x750] sm:$0xf] }
 0x173   :  { %2381 = vmatmul.bf16.vlgmr.msrb.gmra.mxu2 %v11212_v16  ;;  %v7583_v29 = vor.u32 %v9763_v22, %v7582_v21  ;;  %v7550_v31 = vld [vmem:[%s15364_s5 + $0x710] sm:$0xf] }
 0x174   :  { %2429 = vmatpush.bf16.msra.mxu2 %v6879_v28  ;;  %2405 = vmatpush.bf16.msra.mxu0 %v7259_v37  ;;  %v6910_v28 = vld [vmem:[%s15364_s5 + $0x210] sm:$0xf]  ;;  %v7551_v42 = vor.u32 %v9755_v32, %v7550_v31 }
 0x175   :  { %v6686_v37 = vld [vmem:[%s15364_s5 + $0x50] sm:$0xf]  ;;  %v6911_v41 = vor.u32 %v9595_v30, %v6910_v28  ;;  %v7648_v30 = vld [vmem:[%s15364_s5 + $0x7f0] sm:$0xf0] }
 0x176   :  { %2445 = vmatpush.bf16.msra.mxu3 %v7071_v34  ;;  %2421 = vmatpush.bf16.msra.mxu1 %v7451_v43  ;;  %v7359_v34 = vor.u32 %v9707_v26, %v7358_v25  ;;  %v7139_v43 = vor.u32 %v9647_v35, %v7136_v36  ;;  %v7518_v44 = vld [vmem:[%s15364_s5 + $0x6d0] sm:$0xf]  ;;  %v9615_v26 = vld [vmem:[%s15364_s5 + $0x2d4] sm:$0xf] }
 0x177   :  { %v9747_v45 = vld [vmem:[%s15364_s5 + $0x6ec] sm:$0xf0] }
 0x178   :  { %2430 = vmatpush.bf16.msra.mxu2 %v6847_v40  ;;  %2406 = vmatpush.bf16.msra.mxu0 %v7227_v51  ;;  %v9699_v40 = vld [vmem:[%s15364_s5 + $0x56c] sm:$0xf0]  ;;  %v7519_v57 = vor.u32 %v9747_v45, %v7518_v44 }
 0x179   :  { %v7327_v47 = vor.u32 %v9699_v40, %v7326_v39  ;;  %v6654_v51 = vld [vmem:[%s15364_s5 + $0x10] sm:$0xf]  ;;  %v6976_v39 = vld [vmem:[%s15364_s5 + $0x2b0] sm:$0xf0] }
 0x17a   :  { %2446 = vmatpush.bf16.msra.mxu3 %v7039_v46  ;;  %2422 = vmatpush.bf16.msra.mxu1 %v7419_v58  ;;  %v6687_v46 = vor.u32 %v9539_v38, %v6686_v37  ;;  %v9531_v52 = vld [vmem:[%s15364_s5 + $0x2c] sm:$0xf0]  ;;  %v7107_v58 = vor.u32 %v9639_v48, %v7104_v49  ;;  %v9607_v38 = vld [vmem:[%s15364_s5 + $0x294] sm:$0xf] }
 0x17b   :  { %v7294_v53 = vld [vmem:[%s15364_s5 + $0x510] sm:$0xf]  ;;  %v6655_v59 = vor.u32 %v9531_v52, %v6654_v51  ;;  %v9711_v48 = vld [vmem:[%s15364_s5 + $0x5d4] sm:$0xf]  ;;  %v6979_v51 = vor.u32 %v9607_v38, %v6976_v39  ;;  %v7078_v38 = vld [vmem:[%s15364_s5 + $0x358] sm:$0xf] }
 0x17c   :  { %2431 = vmatpush.bf16.msra.mxu2 %v6815_v55  ;;  %2407 = vmatpush.bf16.msra.mxu0 %v7195_v1  ;;  %v9691_v54 = vld [vmem:[%s15364_s5 + $0x52c] sm:$0xf0]  ;;  %v9583_v55 = vld [vmem:[%s15364_s5 + $0x1d4] sm:$0xf] }
 0x17d   :  { %2423 = vmatmul.bf16.vlgmr.msra.gmra.mxu1 %v11255_v50  ;;  %v7295_v60 = vor.u32 %v9691_v54, %v7294_v53  ;;  %v6883_v1 = vor.u32 %v9583_v55, %v6880_v56  ;;  %v7262_v3 = vld [vmem:[%s15364_s5 + $0x4d0] sm:$0xf]  ;;  %v7392_v49 = vld [vmem:[%s15364_s5 + $0x5f0] sm:$0xf0] }
 0x17e   :  { %2447 = vmatpush.bf16.msra.mxu3 %v7007_v61  ;;  %2471 = vmatpush.bf16.msrb.mxu1 %v7647_v62  ;;  %v7486_v61 = vld [vmem:[%s15364_s5 + $0x690] sm:$0xf]  ;;  %v9599_v55 = vld [vmem:[%s15364_s5 + $0x254] sm:$0xf] }
 0x17f   :  { %v9739_v62 = vld [vmem:[%s15364_s5 + $0x6ac] sm:$0xf0]  ;;  %v6944_v56 = vld [vmem:[%s15364_s5 + $0x270] sm:$0xf0] }
 0x180   :  { %2432 = vmatpush.bf16.msra.mxu2 %v6783_v5  ;;  %2408 = vmatpush.bf16.msra.mxu0 %v7163_v15  ;;  %v9683_v4 = vld [vmem:[%s15364_s5 + $0x4ec] sm:$0xf0]  ;;  %v9575_v5 = vld [vmem:[%s15364_s5 + $0x194] sm:$0xf]  ;;  %v7487_v7 = vor.u32 %v9739_v62, %v7486_v61 }
 0x181   :  { %v7263_v9 = vor.u32 %v9683_v4, %v7262_v3  ;;  %v7454_v11 = vld [vmem:[%s15364_s5 + $0x650] sm:$0xf]  ;;  %v7040_v15 = vld [vmem:[%s15364_s5 + $0x330] sm:$0xf0] }
 0x182   :  { %2448 = vmatpush.bf16.msra.mxu3 %v6975_v13  ;;  %2472 = vmatpush.bf16.msrb.mxu1 %v7615_v14  ;;  %v9731_v12 = vld [vmem:[%s15364_s5 + $0x66c] sm:$0xf0]  ;;  %v9623_v13 = vld [vmem:[%s15364_s5 + $0x314] sm:$0xf]  ;;  %v6851_v14 = vor.u32 %v9575_v5, %v6848_v6 }
 0x183   :  { %2409 = vmatmul.bf16.vlgmr.msra.gmra.mxu0 %v11295_v10  ;;  %v7230_v17 = vld [vmem:[%s15364_s5 + $0x490] sm:$0xf]  ;;  %v7455_v21 = vor.u32 %v9731_v12, %v7454_v11  ;;  %v7043_v23 = vor.u32 %v9623_v13, %v7040_v15  ;;  %v6720_v61 = vld [vmem:[%s15364_s5 + $0xb0] sm:$0xf0]  ;;  %v9652_v11 = vld [vmem:[%s15364_s5 + $0x3f4] sm:$0xf0] }
 0x184   :  { %2433 = vmatpush.bf16.msra.mxu2 %v6751_v19  ;;  %2457 = vmatpush.bf16.msrb.mxu0 %v7391_v20  ;;  %v9675_v18 = vld [vmem:[%s15364_s5 + $0x4ac] sm:$0xf0]  ;;  %v9567_v19 = vld [vmem:[%s15364_s5 + $0x154] sm:$0xf] }
 0x185   :  { %v6816_v20 = vld [vmem:[%s15364_s5 + $0x170] sm:$0xf0]  ;;  %v7422_v22 = vld [vmem:[%s15364_s5 + $0x610] sm:$0xf]  ;;  %v7231_v24 = vor.u32 %v9675_v18, %v7230_v17 }
 0x186   :  { %2449 = vmatpush.bf16.msra.mxu3 %v6943_v27  ;;  %2473 = vmatpush.bf16.msrb.mxu1 %v7583_v29  ;;  %v9723_v25 = vld [vmem:[%s15364_s5 + $0x62c] sm:$0xf0]  ;;  %v7008_v27 = vld [vmem:[%s15364_s5 + $0x2f0] sm:$0xf0]  ;;  %v6819_v28 = vor.u32 %v9567_v19, %v6816_v20 }
 0x187   :  { %v9775_v29 = vld [vmem:[%s15364_s5 + $0x7d4] sm:$0xf]  ;;  %v7198_v31 = vld [vmem:[%s15364_s5 + $0x450] sm:$0xf]  ;;  %v7423_v35 = vor.u32 %v9723_v25, %v7422_v22  ;;  %v7011_v36 = vor.u32 %v9615_v26, %v7008_v27  ;;  %v9644_v25 = vld [vmem:[%s15364_s5 + $0x3b4] sm:$0xf0] }
 0x188   :  { %2434 = vmatpush.bf16.msra.mxu2 %v6719_v33  ;;  %2458 = vmatpush.bf16.msrb.mxu0 %v7359_v34  ;;  %v9667_v32 = vld [vmem:[%s15364_s5 + $0x46c] sm:$0xf0]  ;;  %v9559_v33 = vld [vmem:[%s15364_s5 + $0x114] sm:$0xf]  ;;  %v7651_v37 = vor.u32 %v9775_v29, %v7648_v30  ;;  %v6886_v30 = vld [vmem:[%s15364_s5 + $0x1d8] sm:$0xf] }
 0x189   :  { %v6784_v34 = vld [vmem:[%s15364_s5 + $0x130] sm:$0xf0]  ;;  %v7199_v40 = vor.u32 %v9667_v32, %v7198_v31  ;;  %v7166_v44 = vld [vmem:[%s15364_s5 + $0x410] sm:$0xf]  ;;  %v9588_v31 = vld [vmem:[%s15364_s5 + $0x1f4] sm:$0xf0] }
 0x18a   :  { %2450 = vmatpush.bf16.msra.mxu3 %v6911_v41  ;;  %2474 = vmatpush.bf16.msrb.mxu1 %v7551_v42  ;;  %v6787_v41 = vor.u32 %v9559_v33, %v6784_v34  ;;  %v9767_v42 = vld [vmem:[%s15364_s5 + $0x794] sm:$0xf]  ;;  %v9659_v45 = vld [vmem:[%s15364_s5 + $0x42c] sm:$0xf0]  ;;  %v6887_v39 = vor.u32 %v9588_v31, %v6886_v30  ;;  %v6950_v30 = vld [vmem:[%s15364_s5 + $0x258] sm:$0xf] }
 0x18b   :  { %v7167_v53 = vor.u32 %v9659_v45, %v7166_v44  ;;  %v9703_v62 = vld [vmem:[%s15364_s5 + $0x594] sm:$0xf]  ;;  %v9580_v44 = vld [vmem:[%s15364_s5 + $0x1b4] sm:$0xf0] }
 0x18c   :  { %2435 = vmatpush.bf16.msra.mxu2 %v6687_v46  ;;  %2459 = vmatpush.bf16.msrb.mxu0 %v7327_v47  ;;  %v9551_v46 = vld [vmem:[%s15364_s5 + $0xd4] sm:$0xf]  ;;  %v9604_v31 = vld [vmem:[%s15364_s5 + $0x274] sm:$0xf0] }
 0x18d   :  { %2451 = vmatmul.bf16.vlgmr.msra.gmra.mxu3 %v11190_v63  ;;  %v6752_v47 = vld [vmem:[%s15364_s5 + $0xf0] sm:$0xf0] }
 0x18e   :  { %2499 = vmatpush.bf16.msrb.mxu3 %v7139_v43  ;;  %2475 = vmatpush.bf16.msrb.mxu1 %v7519_v57  ;;  %v7616_v43 = vld [vmem:[%s15364_s5 + $0x7b0] sm:$0xf0]  ;;  %v6755_v54 = vor.u32 %v9551_v46, %v6752_v47 }
 0x18f   :  { %v7619_v52 = vor.u32 %v9767_v42, %v7616_v43  ;;  %v9759_v57 = vld [vmem:[%s15364_s5 + $0x754] sm:$0xf]  ;;  %v6854_v43 = vld [vmem:[%s15364_s5 + $0x198] sm:$0xf] }
 0x190   :  { %2436 = vmatpush.bf16.msra.mxu2 %v6655_v59  ;;  %2460 = vmatpush.bf16.msrb.mxu0 %v7295_v60  ;;  %v7584_v59 = vld [vmem:[%s15364_s5 + $0x770] sm:$0xf0] }
 0x191   :  { %v9543_v60 = vld [vmem:[%s15364_s5 + $0x94] sm:$0xf]  ;;  %v7587_v3 = vor.u32 %v9759_v57, %v7584_v59  ;;  %v9572_v57 = vld [vmem:[%s15364_s5 + $0x174] sm:$0xf0] }
 0x192   :  { %2500 = vmatpush.bf16.msrb.mxu3 %v7107_v58  ;;  %2476 = vmatpush.bf16.msrb.mxu1 %v7487_v7  ;;  %v7395_v58 = vor.u32 %v9711_v48, %v7392_v49  ;;  %v6723_v4 = vor.u32 %v9543_v60, %v6720_v61  ;;  %v6912_v5 = vld [vmem:[%s15364_s5 + $0x230] sm:$0xf0] }
 0x193   :  { %2437 = vmatmul.bf16.vlgmr.msra.gmra.mxu2 %v11212_v16  ;;  %v9751_v6 = vld [vmem:[%s15364_s5 + $0x714] sm:$0xf]  ;;  %v6915_v17 = vor.u32 %v9591_v2, %v6912_v5 }
 0x194   :  { %2485 = vmatpush.bf16.msrb.mxu2 %v6883_v1  ;;  %2461 = vmatpush.bf16.msrb.mxu0 %v7263_v9  ;;  %v6947_v1 = vor.u32 %v9599_v55, %v6944_v56  ;;  %v7552_v7 = vld [vmem:[%s15364_s5 + $0x730] sm:$0xf0]  ;;  %v7142_v9 = vld [vmem:[%s15364_s5 + $0x3d8] sm:$0xf] }
 0x195   :  { %v9535_v12 = vld [vmem:[%s15364_s5 + $0x54] sm:$0xf]  ;;  %v7555_v18 = vor.u32 %v9751_v6, %v7552_v7  ;;  %v7143_v19 = vor.u32 %v9652_v11, %v7142_v9  ;;  %v6822_v56 = vld [vmem:[%s15364_s5 + $0x158] sm:$0xf] }
 0x196   :  { %2501 = vmatpush.bf16.msrb.mxu3 %v7075_v8  ;;  %2477 = vmatpush.bf16.msrb.mxu1 %v7455_v21  ;;  %v7363_v8 = vor.u32 %v9703_v62, %v7360_v0  ;;  %v6688_v13 = vld [vmem:[%s15364_s5 + $0x70] sm:$0xf0]  ;;  %v7014_v0 = vld [vmem:[%s15364_s5 + $0x2d8] sm:$0xf]  ;;  %v6823_v2 = vor.u32 %v9572_v57, %v6822_v56 }
 0x197   :  { %v7328_v15 = vld [vmem:[%s15364_s5 + $0x570] sm:$0xf0]  ;;  %v6691_v22 = vor.u32 %v9535_v12, %v6688_v13  ;;  %v6790_v7 = vld [vmem:[%s15364_s5 + $0x118] sm:$0xf] }
 0x198   :  { %2486 = vmatpush.bf16.msrb.mxu2 %v6851_v14  ;;  %2462 = vmatpush.bf16.msrb.mxu0 %v7231_v24  ;;  %v9695_v14 = vld [vmem:[%s15364_s5 + $0x554] sm:$0xf]  ;;  %v7110_v24 = vld [vmem:[%s15364_s5 + $0x398] sm:$0xf] }
 0x199   :  { %v9743_v20 = vld [vmem:[%s15364_s5 + $0x6d4] sm:$0xf]  ;;  %v7111_v33 = vor.u32 %v9644_v25, %v7110_v24  ;;  %v6982_v13 = vld [vmem:[%s15364_s5 + $0x298] sm:$0xf] }
 0x19a   :  { %2502 = vmatpush.bf16.msrb.mxu3 %v7043_v23  ;;  %2478 = vmatpush.bf16.msrb.mxu1 %v7423_v35  ;;  %v7520_v21 = vld [vmem:[%s15364_s5 + $0x6f0] sm:$0xf0]  ;;  %v7331_v23 = vor.u32 %v9695_v14, %v7328_v15  ;;  %v9612_v14 = vld [vmem:[%s15364_s5 + $0x2b4] sm:$0xf0] }
 0x19b   :  { %v9527_v26 = vld [vmem:[%s15364_s5 + $0x14] sm:$0xf]  ;;  %v7523_v32 = vor.u32 %v9743_v20, %v7520_v21  ;;  %v7398_v24 = vld [vmem:[%s15364_s5 + $0x5d8] sm:$0xf] }
 0x19c   :  { %2487 = vmatpush.bf16.msrb.mxu2 %v6819_v28  ;;  %2463 = vmatpush.bf16.msrb.mxu0 %v7199_v40  ;;  %v6656_v27 = vld [vmem:[%s15364_s5 + $0x30] sm:$0xf0]  ;;  %v9636_v40 = vld [vmem:[%s15364_s5 + $0x374] sm:$0xf0] }
 0x19d   :  { %2479 = vmatmul.bf16.vlgmr.msrb.gmra.mxu1 %v11255_v50  ;;  %v9687_v28 = vld [vmem:[%s15364_s5 + $0x514] sm:$0xf]  ;;  %v6659_v34 = vor.u32 %v9527_v26, %v6656_v27  ;;  %v7079_v46 = vor.u32 %v9636_v40, %v7078_v38  ;;  %v9716_v25 = vld [vmem:[%s15364_s5 + $0x5f4] sm:$0xf0]  ;;  %v6983_v26 = vor.u32 %v9612_v14, %v6982_v13 }
 0x19e   :  { %2503 = vmatpush.bf16.msrb.mxu3 %v7011_v36  ;;  %2527 = vmatpush.bf16.msra.mxu1 %v7651_v37  ;;  %v7296_v29 = vld [vmem:[%s15364_s5 + $0x530] sm:$0xf0]  ;;  %v9708_v38 = vld [vmem:[%s15364_s5 + $0x5b4] sm:$0xf0] }
 0x19f   :  { %v7299_v35 = vor.u32 %v9687_v28, %v7296_v29  ;;  %v9735_v36 = vld [vmem:[%s15364_s5 + $0x694] sm:$0xf]  ;;  %v6918_v40 = vld [vmem:[%s15364_s5 + $0x218] sm:$0xf] }
 0x1a0   :  { %2488 = vmatpush.bf16.msrb.mxu2 %v6787_v41  ;;  %2464 = vmatpush.bf16.msrb.mxu0 %v7167_v53  ;;  %v7488_v37 = vld [vmem:[%s15364_s5 + $0x6b0] sm:$0xf0]  ;;  %v9628_v53 = vld [vmem:[%s15364_s5 + $0x334] sm:$0xf0] }
 0x1a1   :  { %v9679_v41 = vld [vmem:[%s15364_s5 + $0x4d4] sm:$0xf]  ;;  %v7491_v45 = vor.u32 %v9735_v36, %v7488_v37  ;;  %v9548_v36 = vld [vmem:[%s15364_s5 + $0xb4] sm:$0xf0] }
 0x1a2   :  { %2504 = vmatpush.bf16.msrb.mxu3 %v6979_v51  ;;  %2528 = vmatpush.bf16.msra.mxu1 %v7619_v52  ;;  %v7264_v42 = vld [vmem:[%s15364_s5 + $0x4f0] sm:$0xf0]  ;;  %v7046_v51 = vld [vmem:[%s15364_s5 + $0x318] sm:$0xf]  ;;  %v6855_v52 = vor.u32 %v9580_v44, %v6854_v43 }
 0x1a3   :  { %2465 = vmatmul.bf16.vlgmr.msrb.gmra.mxu0 %v11295_v10  ;;  %v7267_v47 = vor.u32 %v9679_v41, %v7264_v42  ;;  %v9727_v48 = vld [vmem:[%s15364_s5 + $0x654] sm:$0xf]  ;;  %v7047_v60 = vor.u32 %v9628_v53, %v7046_v51  ;;  %v7366_v37 = vld [vmem:[%s15364_s5 + $0x598] sm:$0xf] }
 0x1a4   :  { %2489 = vmatpush.bf16.msrb.mxu2 %v6755_v54  ;;  %2513 = vmatpush.bf16.msra.mxu0 %v7395_v58  ;;  %v7456_v49 = vld [vmem:[%s15364_s5 + $0x670] sm:$0xf0]  ;;  %v9596_v44 = vld [vmem:[%s15364_s5 + $0x234] sm:$0xf0] }
 0x1a5   :  { %v9671_v54 = vld [vmem:[%s15364_s5 + $0x494] sm:$0xf]  ;;  %v7459_v58 = vor.u32 %v9727_v48, %v7456_v49  ;;  %v9648_v48 = vld [vmem:[%s15364_s5 + $0x3dc] sm:$0xf]  ;;  %v6694_v51 = vld [vmem:[%s15364_s5 + $0x58] sm:$0xf] }
 0x1a6   :  { %2505 = vmatpush.bf16.msrb.mxu3 %v6947_v1  ;;  %2529 = vmatpush.bf16.msra.mxu1 %v7587_v3  ;;  %v7232_v55 = vld [vmem:[%s15364_s5 + $0x4b0] sm:$0xf0]  ;;  %v9620_v1 = vld [vmem:[%s15364_s5 + $0x2f4] sm:$0xf0]  ;;  %v7144_v49 = vld [vmem:[%s15364_s5 + $0x3f8] sm:$0xf0] }
 0x1a7   :  { %v9719_v59 = vld [vmem:[%s15364_s5 + $0x614] sm:$0xf]  ;;  %v7235_v61 = vor.u32 %v9671_v54, %v7232_v55  ;;  %v7654_v3 = vld [vmem:[%s15364_s5 + $0x7d8] sm:$0xf]  ;;  %v7015_v11 = vor.u32 %v9620_v1, %v7014_v0  ;;  %v6919_v55 = vor.u32 %v9596_v44, %v6918_v40  ;;  %v7147_v57 = vor.u32 %v9648_v48, %v7144_v49  ;;  %v7112_v0 = vld [vmem:[%s15364_s5 + $0x3b8] sm:$0xf0] }
 0x1a8   :  { %2490 = vmatpush.bf16.msrb.mxu2 %v6723_v4  ;;  %2514 = vmatpush.bf16.msra.mxu0 %v7363_v8  ;;  %v7424_v62 = vld [vmem:[%s15364_s5 + $0x630] sm:$0xf0]  ;;  %v9780_v4 = vld [vmem:[%s15364_s5 + $0x7f4] sm:$0xf0]  ;;  %v9776_v48 = vld [vmem:[%s15364_s5 + $0x7dc] sm:$0xf] }
 0x1a9   :  { %v9663_v5 = vld [vmem:[%s15364_s5 + $0x454] sm:$0xf]  ;;  %v9564_v8 = vld [vmem:[%s15364_s5 + $0x134] sm:$0xf0]  ;;  %v7427_v9 = vor.u32 %v9719_v59, %v7424_v62  ;;  %v7655_v12 = vor.u32 %v9780_v4, %v7654_v3  ;;  %v9640_v62 = vld [vmem:[%s15364_s5 + $0x39c] sm:$0xf] }
 0x1aa   :  { %2506 = vmatpush.bf16.msrb.mxu3 %v6915_v17  ;;  %2530 = vmatpush.bf16.msra.mxu1 %v7555_v18  ;;  %v7200_v6 = vld [vmem:[%s15364_s5 + $0x470] sm:$0xf0]  ;;  %v6791_v17 = vor.u32 %v9564_v8, %v6790_v7  ;;  %v7622_v18 = vld [vmem:[%s15364_s5 + $0x798] sm:$0xf]  ;;  %v6888_v7 = vld [vmem:[%s15364_s5 + $0x1f8] sm:$0xf0] }
 0x1ab   :  { %v7203_v15 = vor.u32 %v9663_v5, %v7200_v6  ;;  %v9655_v20 = vld [vmem:[%s15364_s5 + $0x414] sm:$0xf]  ;;  %v7334_v53 = vld [vmem:[%s15364_s5 + $0x558] sm:$0xf]  ;;  %v9584_v6 = vld [vmem:[%s15364_s5 + $0x1dc] sm:$0xf] }
 0x1ac   :  { %2491 = vmatpush.bf16.msrb.mxu2 %v6691_v22  ;;  %2515 = vmatpush.bf16.msra.mxu0 %v7331_v23  ;;  %v7168_v21 = vld [vmem:[%s15364_s5 + $0x430] sm:$0xf0]  ;;  %v6758_v22 = vld [vmem:[%s15364_s5 + $0xd8] sm:$0xf]  ;;  %v7656_v49 = vld [vmem:[%s15364_s5 + $0x7f8] sm:$0xf0] }
 0x1ad   :  { %2507 = vmatmul.bf16.vlgmr.msrb.gmra.mxu3 %v11190_v63  ;;  %v9556_v23 = vld [vmem:[%s15364_s5 + $0xf4] sm:$0xf0]  ;;  %v7171_v28 = vor.u32 %v9655_v20, %v7168_v21  ;;  %v6891_v20 = vor.u32 %v9584_v6, %v6888_v7  ;;  %v7080_v21 = vld [vmem:[%s15364_s5 + $0x378] sm:$0xf0] }
 0x1ae   :  { %2555 = vmatpush.bf16.msra.mxu3 %v7143_v19  ;;  %2531 = vmatpush.bf16.msra.mxu1 %v7523_v32  ;;  %v9772_v19 = vld [vmem:[%s15364_s5 + $0x7b4] sm:$0xf0]  ;;  %v6759_v29 = vor.u32 %v9556_v23, %v6758_v22  ;;  %v9552_v7 = vld [vmem:[%s15364_s5 + $0xdc] sm:$0xf] }
 0x1af   :  { %v7623_v27 = vor.u32 %v9772_v19, %v7622_v18  ;;  %v7590_v32 = vld [vmem:[%s15364_s5 + $0x758] sm:$0xf] }
 0x1b0   :  { %2492 = vmatpush.bf16.msrb.mxu2 %v6659_v34  ;;  %2516 = vmatpush.bf16.msra.mxu0 %v7299_v35  ;;  %v9764_v34 = vld [vmem:[%s15364_s5 + $0x774] sm:$0xf0] }
 0x1b1   :  { %v6726_v35 = vld [vmem:[%s15364_s5 + $0x98] sm:$0xf]  ;;  %v7591_v42 = vor.u32 %v9764_v34, %v7590_v32 }
 0x1b2   :  { %2556 = vmatpush.bf16.msra.mxu3 %v7111_v33  ;;  %2532 = vmatpush.bf16.msra.mxu1 %v7491_v45  ;;  %v7399_v33 = vor.u32 %v9716_v25, %v7398_v24  ;;  %v6727_v43 = vor.u32 %v9548_v36, %v6726_v35  ;;  %v7558_v45 = vld [vmem:[%s15364_s5 + $0x718] sm:$0xf]  ;;  %v9576_v24 = vld [vmem:[%s15364_s5 + $0x19c] sm:$0xf] }
 0x1b3   :  { %2493 = vmatmul.bf16.vlgmr.msrb.gmra.mxu2 %v11212_v16  ;;  %v9700_v54 = vld [vmem:[%s15364_s5 + $0x574] sm:$0xf0]  ;;  %v6856_v25 = vld [vmem:[%s15364_s5 + $0x1b8] sm:$0xf0] }
 0x1b4   :  { %2541 = vmatpush.bf16.msra.mxu2 %v6887_v39  ;;  %2517 = vmatpush.bf16.msra.mxu0 %v7267_v47  ;;  %v6951_v39 = vor.u32 %v9604_v31, %v6950_v30  ;;  %v7367_v47 = vor.u32 %v9708_v38, %v7366_v37  ;;  %v9748_v59 = vld [vmem:[%s15364_s5 + $0x6f4] sm:$0xf0]  ;;  %v9624_v31 = vld [vmem:[%s15364_s5 + $0x31c] sm:$0xf]  ;;  %v6859_v32 = vor.u32 %v9576_v24, %v6856_v25 }
 0x1b5   :  { %v6662_v1 = vld [vmem:[%s15364_s5 + $0x18] sm:$0xf]  ;;  %v9568_v36 = vld [vmem:[%s15364_s5 + $0x15c] sm:$0xf] }
 0x1b6   :  { %2557 = vmatpush.bf16.msra.mxu3 %v7079_v46  ;;  %2533 = vmatpush.bf16.msra.mxu1 %v7459_v58  ;;  %v12096_v41 = vpop.f32.mrf.mxu2  ;;  %v9756_v46 = vld [vmem:[%s15364_s5 + $0x734] sm:$0xf0]  ;;  %v6824_v37 = vld [vmem:[%s15364_s5 + $0x178] sm:$0xf0] }
 0x1b7   :  { %v7559_v56 = vor.u32 %v9756_v46, %v7558_v45  ;;  %v7526_v58 = vld [vmem:[%s15364_s5 + $0x6d8] sm:$0xf]  ;;  %v9616_v45 = vld [vmem:[%s15364_s5 + $0x2dc] sm:$0xf] }
 0x1b8   :  { %2542 = vmatpush.bf16.msra.mxu2 %v6855_v52  ;;  %2518 = vmatpush.bf16.msra.mxu0 %v7235_v61  ;;  %v9540_v52 = vld [vmem:[%s15364_s5 + $0x74] sm:$0xf0]  ;;  %v7335_v61 = vor.u32 %v9700_v54, %v7334_v53  ;;  %v7527_v8 = vor.u32 %v9748_v59, %v7526_v58  ;;  %v7016_v46 = vld [vmem:[%s15364_s5 + $0x2f8] sm:$0xf0] }
 0x1b9   :  { %v9532_v3 = vld [vmem:[%s15364_s5 + $0x34] sm:$0xf0]  ;;  %v9560_v54 = vld [vmem:[%s15364_s5 + $0x11c] sm:$0xf]  ;;  %v7019_v59 = vor.u32 %v9616_v45, %v7016_v46 }
 0x1ba   :  { %2558 = vmatpush.bf16.msra.mxu3 %v7047_v60  ;;  %2534 = vmatpush.bf16.msra.mxu1 %v7427_v9  ;;  %v6695_v60 = vor.u32 %v9540_v52, %v6694_v51  ;;  %v7302_v4 = vld [vmem:[%s15364_s5 + $0x518] sm:$0xf]  ;;  %v7115_v9 = vor.u32 %v9640_v62, %v7112_v0  ;;  %v6984_v62 = vld [vmem:[%s15364_s5 + $0x2b8] sm:$0xf0] }
 0x1bb   :  { %v9692_v5 = vld [vmem:[%s15364_s5 + $0x534] sm:$0xf0]  ;;  %v7592_v25 = vld [vmem:[%s15364_s5 + $0x778] sm:$0xf0] }
 0x1bc   :  { %2543 = vmatpush.bf16.msra.mxu2 %v6823_v2  ;;  %2519 = vmatpush.bf16.msra.mxu0 %v7203_v15  ;;  %v12141_v2 = vpop.f32.mrf.mxu3  ;;  %v7303_v13 = vor.u32 %v9692_v5, %v7302_v4  ;;  %v7494_v14 = vld [vmem:[%s15364_s5 + $0x698] sm:$0xf]  ;;  %v7624_v4 = vld [vmem:[%s15364_s5 + $0x7b8] sm:$0xf0] }
 0x1bd   :  { %2535 = vmatmul.bf16.vlgmr.msra.gmra.mxu1 %v11255_v50  ;;  %v9740_v15 = vld [vmem:[%s15364_s5 + $0x6b4] sm:$0xf0]  ;;  %v9536_v45 = vld [vmem:[%s15364_s5 + $0x5c] sm:$0xf] }
 0x1be   :  { %2559 = vmatpush.bf16.msra.mxu3 %v7015_v11  ;;  %2583 = vmatpush.bf16.msrb.mxu1 %v7655_v12  ;;  %v12158_v11 = vpop.f32.mrf.mxu1  ;;  %v6663_v12 = vor.u32 %v9532_v3, %v6662_v1  ;;  %v12169_v18 = vpop.f32.mrf.mxu2  ;;  %v7270_v22 = vld [vmem:[%s15364_s5 + $0x4d8] sm:$0xf]  ;;  %v9768_v3 = vld [vmem:[%s15364_s5 + $0x79c] sm:$0xf] }
 0x1bf   :  { %v9684_v23 = vld [vmem:[%s15364_s5 + $0x4f4] sm:$0xf0]  ;;  %v6696_v46 = vld [vmem:[%s15364_s5 + $0x78] sm:$0xf0] }
 0x1c0   :  { %2544 = vmatpush.bf16.msra.mxu2 %v6791_v17  ;;  %2520 = vmatpush.bf16.msra.mxu0 %v7171_v28  ;;  %v9632_v17 = vld [vmem:[%s15364_s5 + $0x35c] sm:$0xf]  ;;  %v12171_v19 = vpop.f32.mrf.mxu0  ;;  %v7271_v28 = vor.u32 %v9684_v23, %v7270_v22  ;;  %v9732_v30 = vld [vmem:[%s15364_s5 + $0x674] sm:$0xf0] }
 0x1c1   :  { %v7238_v34 = vld [vmem:[%s15364_s5 + $0x498] sm:$0xf]  ;;  %v6952_v22 = vld [vmem:[%s15364_s5 + $0x278] sm:$0xf0] }
 0x1c2   :  { %2560 = vmatpush.bf16.msra.mxu3 %v6983_v26  ;;  %2584 = vmatpush.bf16.msrb.mxu1 %v7623_v27  ;;  %v7495_v26 = vor.u32 %v9740_v15, %v7494_v14  ;;  %v7083_v27 = vor.u32 %v9632_v17, %v7080_v21  ;;  %v9676_v35 = vld [vmem:[%s15364_s5 + $0x4b4] sm:$0xf0]  ;;  %v7627_v14 = vor.u32 %v9768_v3, %v7624_v4  ;;  %v9600_v21 = vld [vmem:[%s15364_s5 + $0x25c] sm:$0xf] }
 0x1c3   :  { %2521 = vmatmul.bf16.vlgmr.msra.gmra.mxu0 %v11295_v10  ;;  %v7430_v40 = vld [vmem:[%s15364_s5 + $0x618] sm:$0xf]  ;;  %v9760_v23 = vld [vmem:[%s15364_s5 + $0x75c] sm:$0xf] }
 0x1c4   :  { %2545 = vmatpush.bf16.msra.mxu2 %v6759_v29  ;;  %2569 = vmatpush.bf16.msrb.mxu0 %v7399_v33  ;;  %v7462_v29 = vld [vmem:[%s15364_s5 + $0x658] sm:$0xf]  ;;  %v7048_v33 = vld [vmem:[%s15364_s5 + $0x338] sm:$0xf0]  ;;  %v12213_v38 = vpop.f32.mrf.mxu3 }
 0x1c5   :  { %v9724_v44 = vld [vmem:[%s15364_s5 + $0x634] sm:$0xf0]  ;;  %v9688_v3 = vld [vmem:[%s15364_s5 + $0x51c] sm:$0xf] }
 0x1c6   :  { %2561 = vmatpush.bf16.msra.mxu3 %v6951_v39  ;;  %2585 = vmatpush.bf16.msrb.mxu1 %v7591_v42  ;;  %v7463_v39 = vor.u32 %v9732_v30, %v7462_v29  ;;  %v7051_v42 = vor.u32 %v9624_v31, %v7048_v33  ;;  %v7206_v51 = vld [vmem:[%s15364_s5 + $0x458] sm:$0xf]  ;;  %v12237_v52 = vpop.f32.mrf.mxu1  ;;  %v7431_v58 = vor.u32 %v9724_v44, %v7430_v40  ;;  %v7368_v29 = vld [vmem:[%s15364_s5 + $0x5b8] sm:$0xf0]  ;;  %v9889_v44 = vld [vmem:[%s15366_s7 + $0x360] sm:$0xf0] }
 0x1c7   :  { %v9668_v53 = vld [vmem:[%s15364_s5 + $0x474] sm:$0xf0]  ;;  %v6955_v31 = vor.u32 %v9600_v21, %v6952_v22  ;;  %v7560_v40 = vld [vmem:[%s15364_s5 + $0x738] sm:$0xf0] }
 0x1c8   :  { %2546 = vmatpush.bf16.msra.mxu2 %v6727_v43  ;;  %2570 = vmatpush.bf16.msrb.mxu0 %v7367_v47  ;;  %v7239_v43 = vor.u32 %v9676_v35, %v7238_v34  ;;  %v6827_v47 = vor.u32 %v9568_v36, %v6824_v37  ;;  %v7207_v0 = vor.u32 %v9668_v53, %v7206_v51  ;;  %v7174_v5 = vld [vmem:[%s15364_s5 + $0x418] sm:$0xf]  ;;  %v6920_v37 = vld [vmem:[%s15364_s5 + $0x238] sm:$0xf0] }
 0x1c9   :  { %v9660_v6 = vld [vmem:[%s15364_s5 + $0x434] sm:$0xf0]  ;;  %v7595_v35 = vor.u32 %v9760_v23, %v7592_v25  ;;  %v7304_v4 = vld [vmem:[%s15364_s5 + $0x538] sm:$0xf0] }
 0x1ca   :  { %2562 = vmatpush.bf16.msra.mxu3 %v6919_v55  ;;  %2586 = vmatpush.bf16.msrb.mxu1 %v7559_v56  ;;  %v6792_v55 = vld [vmem:[%s15364_s5 + $0x138] sm:$0xf0]  ;;  %v12248_v56 = vpop.f32.mrf.mxu2  ;;  %v7175_v17 = vor.u32 %v9660_v6, %v7174_v5  ;;  %v7858_v5 = vld [vmem:[%s15366_s7 + $0x188] sm:$0xf]  ;;  %v9833_v6 = vld [vmem:[%s15366_s7 + $0x1a0] sm:$0xf0] }
 0x1cb   :  { %v6795_v1 = vor.u32 %v9560_v54, %v6792_v55  ;;  %v9744_v54 = vld [vmem:[%s15364_s5 + $0x6dc] sm:$0xf]  ;;  %v7859_v23 = vor.u32 %v9833_v6, %v7858_v5  ;;  %v10001_v5 = vld [vmem:[%s15366_s7 + $0x6e0] sm:$0xf0] }
 0x1cc   :  { %2547 = vmatpush.bf16.msra.mxu2 %v6695_v60  ;;  %2571 = vmatpush.bf16.msrb.mxu0 %v7335_v61  ;;  %v7659_v60 = vor.u32 %v9776_v48, %v7656_v49  ;;  %v9608_v61 = vld [vmem:[%s15364_s5 + $0x29c] sm:$0xf]  ;;  %v12282_v15 = vpop.f32.mrf.mxu3 }
 0x1cd   :  { %2563 = vmatmul.bf16.vlgmr.msra.gmra.mxu3 %v11190_v63  ;;  %v7336_v48 = vld [vmem:[%s15364_s5 + $0x578] sm:$0xf0] }
 0x1ce   :  { %2611 = vmatpush.bf16.msrb.mxu3 %v7147_v57  ;;  %2587 = vmatpush.bf16.msrb.mxu1 %v7527_v8  ;;  %v12250_v57 = vpop.f32.mrf.mxu0  ;;  %v6760_v8 = vld [vmem:[%s15364_s5 + $0xf8] sm:$0xf0]  ;;  %v12309_v30 = vpop.f32.mrf.mxu1 }
 0x1cf   :  { %v7528_v55 = vld [vmem:[%s15364_s5 + $0x6f8] sm:$0xf0] }
 0x1d0   :  { %2548 = vmatpush.bf16.msra.mxu2 %v6663_v12  ;;  %2572 = vmatpush.bf16.msrb.mxu0 %v7303_v13  ;;  %v7400_v12 = vld [vmem:[%s15364_s5 + $0x5f8] sm:$0xf0]  ;;  %v6987_v13 = vor.u32 %v9608_v61, %v6984_v62  ;;  %v9882_v61 = vld [vmem:[%s15366_s7 + $0x328] sm:$0xf0] }
 0x1d1   :  { %v9528_v62 = vld [vmem:[%s15364_s5 + $0x1c] sm:$0xf] }
 0x1d2   :  { %2612 = vmatpush.bf16.msrb.mxu3 %v7115_v9  ;;  %2588 = vmatpush.bf16.msrb.mxu1 %v7495_v26  ;;  %v9712_v9 = vld [vmem:[%s15364_s5 + $0x5dc] sm:$0xf]  ;;  %v12314_v33 = vpop.f32.mrf.mxu2 }
 0x1d3   :  { %2549 = vmatmul.bf16.vlgmr.msra.gmra.mxu2 %v11212_v16  ;;  %v7403_v24 = vor.u32 %v9712_v9, %v7400_v12  ;;  %v9544_v26 = vld [vmem:[%s15364_s5 + $0x9c] sm:$0xf] }
 0x1d4   :  { %2597 = vmatpush.bf16.msrb.mxu2 %v6891_v20  ;;  %2573 = vmatpush.bf16.msrb.mxu0 %v7271_v28  ;;  %v6763_v20 = vor.u32 %v9552_v7, %v6760_v8  ;;  %v9704_v28 = vld [vmem:[%s15364_s5 + $0x59c] sm:$0xf]  ;;  %v7531_v7 = vor.u32 %v9744_v54, %v7528_v55  ;;  %v7970_v55 = vld [vmem:[%s15366_s7 + $0x268] sm:$0xf] }
 0x1d5   :  { %v9680_v25 = vld [vmem:[%s15364_s5 + $0x4dc] sm:$0xf] }
 0x1d6   :  { %2613 = vmatpush.bf16.msrb.mxu3 %v7083_v27  ;;  %2589 = vmatpush.bf16.msrb.mxu1 %v7463_v39  ;;  %v6728_v27 = vld [vmem:[%s15364_s5 + $0xb8] sm:$0xf0]  ;;  %v12316_v34 = vpop.f32.mrf.mxu0  ;;  %v12378_v9 = vpop.f32.mrf.mxu1 }
 0x1d7   :  { %v6731_v36 = vor.u32 %v9544_v26, %v6728_v27  ;;  %v9752_v39 = vld [vmem:[%s15364_s5 + $0x71c] sm:$0xf]  ;;  %v7830_v27 = vld [vmem:[%s15366_s7 + $0x150] sm:$0xf] }
 0x1d8   :  { %2598 = vmatpush.bf16.msrb.mxu2 %v6859_v32  ;;  %2574 = vmatpush.bf16.msrb.mxu0 %v7239_v43  ;;  %v9592_v32 = vld [vmem:[%s15364_s5 + $0x21c] sm:$0xf]  ;;  %v8082_v43 = vld [vmem:[%s15366_s7 + $0x348] sm:$0xf]  ;;  %v7563_v51 = vor.u32 %v9752_v39, %v7560_v40 }
 0x1d9   :  { %v6923_v49 = vor.u32 %v9592_v32, %v6920_v37  ;;  %v8083_v53 = vor.u32 %v9889_v44, %v8082_v43  ;;  %v7272_v26 = vld [vmem:[%s15364_s5 + $0x4f8] sm:$0xf0]  ;;  %v12430_v43 = vld [vmem:[%s15365_s6] sm:$0xff]  ;;  %v7802_v44 = vld [vmem:[%s15366_s7 + $0x118] sm:$0xf] }
 0x1da   :  { %2614 = vmatpush.bf16.msrb.mxu3 %v7051_v42  ;;  %2590 = vmatpush.bf16.msrb.mxu1 %v7431_v58  ;;  %v7371_v42 = vor.u32 %v9704_v28, %v7368_v29  ;;  %v6699_v58 = vor.u32 %v9536_v45, %v6696_v46  ;;  %v12389_v21 = vpop.f32.mrf.mxu2  ;;  %v9728_v32 = vld [vmem:[%s15364_s5 + $0x65c] sm:$0xf]  ;;  %v9819_v45 = vld [vmem:[%s15366_s7 + $0x130] sm:$0xf0]  ;;  %v910_v46 = vperm.slane %v12430_v43, 1 }
 0x1db   :  { %v9868_v39 = vld [vmem:[%s15366_s7 + $0x2b8] sm:$0xf0] }
 0x1dc   :  { %2599 = vmatpush.bf16.msrb.mxu2 %v6827_v47  ;;  %2575 = vmatpush.bf16.msrb.mxu0 %v7207_v0  ;;  %v9696_v47 = vld [vmem:[%s15364_s5 + $0x55c] sm:$0xf]  ;;  %v12361_v0 = vpop.f32.mrf.mxu3  ;;  %v2271_v6 = vadd.f32 %v12248_v56, %v910_v46  ;;  %v9854_v56 = vld [vmem:[%s15366_s7 + $0x248] sm:$0xf0] }
 0x1dd   :  { %2591 = vmatmul.bf16.vlgmr.msrb.gmra.mxu1 %v11255_v50  ;;  %v9672_v40 = vld [vmem:[%s15364_s5 + $0x49c] sm:$0xf] }
 0x1de   :  { %2615 = vmatpush.bf16.msrb.mxu3 %v7019_v59  ;;  %2639 = vmatpush.bf16.msra.mxu1 %v7659_v60  ;;  %v7339_v59 = vor.u32 %v9696_v47, %v7336_v48  ;;  %v8054_v60 = vld [vmem:[%s15366_s7 + $0x310] sm:$0xf]  ;;  %v12391_v22 = vpop.f32.mrf.mxu0  ;;  %v7432_v54 = vld [vmem:[%s15364_s5 + $0x638] sm:$0xf0] }
 0x1df   :  { %v8055_v8 = vor.u32 %v9882_v61, %v8054_v60  ;;  %v7208_v60 = vld [vmem:[%s15364_s5 + $0x478] sm:$0xf0]  ;;  %v7774_v61 = vld [vmem:[%s15366_s7 + $0xe0] sm:$0xf] }
 0x1e0   :  { %2600 = vmatpush.bf16.msrb.mxu2 %v6795_v1  ;;  %2576 = vmatpush.bf16.msrb.mxu0 %v7175_v17  ;;  %v6664_v1 = vld [vmem:[%s15364_s5 + $0x38] sm:$0xf0] }
 0x1e1   :  { %v6667_v12 = vor.u32 %v9528_v62, %v6664_v1  ;;  %v7496_v17 = vld [vmem:[%s15364_s5 + $0x6b8] sm:$0xf0]  ;;  %v2273_v62 = vadd.f32 %v12314_v33, %v910_v46  ;;  %v12464_v1 = vpop.f32.mrf.mxu1 }
 0x1e2   :  { %2616 = vmatpush.bf16.msrb.mxu3 %v6987_v13  ;;  %2640 = vmatpush.bf16.msra.mxu1 %v7627_v14  ;;  %v7307_v13 = vor.u32 %v9688_v3, %v7304_v4  ;;  %v9736_v14 = vld [vmem:[%s15364_s5 + $0x69c] sm:$0xf]  ;;  %v8530_v4 = vld [vmem:[%s15366_s7 + $0x6c8] sm:$0xf] }
 0x1e3   :  { %2577 = vmatmul.bf16.vlgmr.msrb.gmra.mxu0 %v11295_v10  ;;  %v7499_v28 = vor.u32 %v9736_v14, %v7496_v17  ;;  %v9812_v3 = vld [vmem:[%s15366_s7 + $0xf8] sm:$0xf0]  ;;  %v7942_v17 = vld [vmem:[%s15366_s7 + $0x230] sm:$0xf] }
 0x1e4   :  { %2601 = vmatpush.bf16.msrb.mxu2 %v6763_v20  ;;  %2625 = vmatpush.bf16.msra.mxu0 %v7403_v24  ;;  %v8026_v20 = vld [vmem:[%s15366_s7 + $0x2d8] sm:$0xf]  ;;  %v9875_v24 = vld [vmem:[%s15366_s7 + $0x2f0] sm:$0xf0]  ;;  %v12439_v47 = vpop.f32.mrf.mxu3 }
 0x1e5   :  { %v8027_v29 = vor.u32 %v9875_v24, %v8026_v20  ;;  %v7775_v20 = vor.u32 %v9812_v3, %v7774_v61  ;;  %v9656_v24 = vld [vmem:[%s15364_s5 + $0x41c] sm:$0xf] }
 0x1e6   :  { %2617 = vmatpush.bf16.msrb.mxu3 %v6955_v31  ;;  %2641 = vmatpush.bf16.msra.mxu1 %v7595_v35  ;;  %v7275_v31 = vor.u32 %v9680_v25, %v7272_v26  ;;  %v7464_v35 = vld [vmem:[%s15364_s5 + $0x678] sm:$0xf0]  ;;  %v7746_v26 = vld [vmem:[%s15366_s7 + $0xa8] sm:$0xf] }
 0x1e7   :  { %v7467_v48 = vor.u32 %v9728_v32, %v7464_v35  ;;  %v7176_v25 = vld [vmem:[%s15364_s5 + $0x438] sm:$0xf0]  ;;  %v2285_v32 = vadd.f32 %v12282_v15, %v2271_v6 }
 0x1e8   :  { %2602 = vmatpush.bf16.msrb.mxu2 %v6731_v36  ;;  %2626 = vmatpush.bf16.msra.mxu0 %v7371_v42  ;;  %v7998_v36 = vld [vmem:[%s15366_s7 + $0x2a0] sm:$0xf]  ;;  %v7240_v42 = vld [vmem:[%s15364_s5 + $0x4b8] sm:$0xf0] }
 0x1ea   :  { %2618 = vmatpush.bf16.msrb.mxu3 %v6923_v49  ;;  %2642 = vmatpush.bf16.msra.mxu1 %v7563_v51  ;;  %v9720_v49 = vld [vmem:[%s15364_s5 + $0x61c] sm:$0xf]  ;;  %v7999_v51 = vor.u32 %v9868_v39, %v7998_v36  ;;  %v7943_v36 = vor.u32 %v9854_v56, %v7942_v17  ;;  %v2299_v39 = vadd.f32 %v12316_v34, %v2285_v32  ;;  %v10113_v17 = vld [vmem:[%s15366_s7 + $0xa60] sm:$0xf0]  ;;  %v8418_v32 = vld [vmem:[%s15366_s7 + $0x5e8] sm:$0xf] }
 0x1eb   :  { %v7435_v33 = vor.u32 %v9720_v49, %v7432_v54  ;;  %v9798_v49 = vld [vmem:[%s15366_s7 + $0x88] sm:$0xf0] }
 0x1ec   :  { %2603 = vmatpush.bf16.msrb.mxu2 %v6699_v58  ;;  %2627 = vmatpush.bf16.msra.mxu0 %v7339_v59  ;;  %v7803_v58 = vor.u32 %v9819_v45, %v7802_v44  ;;  %v9664_v59 = vld [vmem:[%s15364_s5 + $0x45c] sm:$0xf]  ;;  %v7914_v44 = vld [vmem:[%s15366_s7 + $0x1f8] sm:$0xf]  ;;  %v7718_v45 = vld [vmem:[%s15366_s7 + $0x70] sm:$0xf]  ;;  %v2313_v61 = vadd.f32 %v12309_v30, %v2299_v39 }
 0x1ed   :  { %2619 = vmatmul.bf16.vlgmr.msrb.gmra.mxu3 %v11190_v63  ;;  %v9826_v63 = vld [vmem:[%s15366_s7 + $0x168] sm:$0xf0]  ;;  %v7211_v14 = vor.u32 %v9664_v59, %v7208_v60  ;;  %v7886_v60 = vld [vmem:[%s15366_s7 + $0x1c0] sm:$0xf] }
 0x1ee   :  { %5523 = vmatpush.bf16.msra.mxu3 %v8083_v53  ;;  %2643 = vmatpush.bf16.msra.mxu1 %v7531_v7  ;;  %v7831_v37 = vor.u32 %v9826_v63, %v7830_v27  ;;  %v7243_v53 = vor.u32 %v9672_v40, %v7240_v42  ;;  %v12476_v7 = vpop.f32.mrf.mxu2  ;;  %v2287_v63 = vadd.f32 %v12361_v0, %v2273_v62  ;;  %v9994_v0 = vld [vmem:[%s15366_s7 + $0x6a8] sm:$0xf0]  ;;  %v12516_v40 = vpop.f32.mrf.mxu3 }
 0x1f0   :  { %2604 = vmatpush.bf16.msrb.mxu2 %v6667_v12  ;;  %2628 = vmatpush.bf16.msra.mxu0 %v7307_v13  ;;  %v909_v12 = vperm.slane %v12430_v43, 0  ;;  %v2301_v35 = vadd.f32 %v12391_v22, %v2287_v63  ;;  %v9847_v22 = vld [vmem:[%s15366_s7 + $0x210] sm:$0xf0] }
 0x1f1   :  { %v7915_v59 = vor.u32 %v9847_v22, %v7914_v44  ;;  %v10106_v44 = vld [vmem:[%s15366_s7 + $0xa28] sm:$0xf0] }
 0x1f2   :  { %5524 = vmatpush.bf16.msra.mxu3 %v8055_v8  ;;  %2644 = vmatpush.bf16.msra.mxu1 %v7499_v28  ;;  %v12478_v8 = vpop.f32.mrf.mxu0  ;;  %v2217_v27 = vadd.f32 %v12169_v18, %v909_v12  ;;  %v9805_v28 = vld [vmem:[%s15366_s7 + $0xc0] sm:$0xf0]  ;;  %v8502_v18 = vld [vmem:[%s15366_s7 + $0x690] sm:$0xf]  ;;  %v2215_v34 = vadd.f32 %v12096_v41, %v909_v12  ;;  %v8474_v41 = vld [vmem:[%s15366_s7 + $0x658] sm:$0xf] }
 0x1f3   :  { %2605 = vmatmul.bf16.vlgmr.msrb.gmra.mxu2 %v11212_v16  ;;  %v9861_v16 = vld [vmem:[%s15366_s7 + $0x280] sm:$0xf0]  ;;  %v7747_v15 = vor.u32 %v9805_v28, %v7746_v26  ;;  %v9931_v12 = vld [vmem:[%s15366_s7 + $0x4b0] sm:$0xf0]  ;;  %v912_v26 = vperm.slane %v12430_v43, 3 }
 0x1f4   :  { %5509 = vmatpush.bf16.msra.mxu2 %v7859_v23  ;;  %2629 = vmatpush.bf16.msra.mxu0 %v7275_v31  ;;  %v7971_v13 = vor.u32 %v9861_v16, %v7970_v55  ;;  %v8531_v23 = vor.u32 %v10001_v5, %v8530_v4  ;;  %v9945_v31 = vld [vmem:[%s15366_s7 + $0x520] sm:$0xf0]  ;;  %v2231_v46 = vadd.f32 %v12213_v38, %v2217_v27  ;;  %v911_v55 = vperm.slane %v12430_v43, 2  ;;  %v7690_v4 = vld [vmem:[%s15366_s7 + $0x38] sm:$0xf] }
 0x1f5   :  { %v2315_v16 = vadd.f32 %v12378_v9, %v2301_v35  ;;  %v9840_v9 = vld [vmem:[%s15366_s7 + $0x1d8] sm:$0xf0]  ;;  %v9791_v5 = vld [vmem:[%s15366_s7 + $0x50] sm:$0xf0]  ;;  %v2229_v30 = vadd.f32 %v12141_v2, %v2215_v34  ;;  %v7662_v28 = vld [vmem:[%s15366_s7] sm:$0xf] }
 0x1f6   :  { %5525 = vmatpush.bf16.msra.mxu3 %v8027_v29  ;;  %2645 = vmatpush.bf16.msra.mxu1 %v7467_v48  ;;  %v8306_v29 = vld [vmem:[%s15366_s7 + $0x508] sm:$0xf]  ;;  %v8503_v48 = vor.u32 %v9994_v0, %v8502_v18  ;;  %v2382_v54 = vpop.f32.mrf.mxu2  ;;  %v2245_v38 = vadd.f32 %v12250_v57, %v2231_v46  ;;  %v7719_v57 = vor.u32 %v9798_v49, %v7718_v45  ;;  %v9980_v2 = vld [vmem:[%s15366_s7 + $0x638] sm:$0xf0]  ;;  %v9973_v0 = vld [vmem:[%s15366_s7 + $0x600] sm:$0xf0] }
 0x1f7   :  { %v8307_v42 = vor.u32 %v9945_v31, %v8306_v29  ;;  %v2243_v56 = vadd.f32 %v12171_v19, %v2229_v30  ;;  %v7691_v27 = vor.u32 %v9791_v5, %v7690_v4  ;;  %v9784_v19 = vld [vmem:[%s15366_s7 + $0x18] sm:$0xf0]  ;;  %v8222_v29 = vld [vmem:[%s15366_s7 + $0x460] sm:$0xf]  ;;  %v8754_v35 = vld [vmem:[%s15366_s7 + $0x888] sm:$0xf]  ;;  %v2383_v45 = vadd.f32 %v2382_v54, %v912_v26 }
 0x1f8   :  { %5510 = vmatpush.bf16.msra.mxu2 %v7831_v37  ;;  %2630 = vmatpush.bf16.msra.mxu0 %v7243_v53  ;;  %v7179_v37 = vor.u32 %v9656_v24, %v7176_v25  ;;  %v9938_v53 = vld [vmem:[%s15366_s7 + $0x4e8] sm:$0xf0]  ;;  %v7887_v24 = vor.u32 %v9840_v9, %v7886_v60  ;;  %v2396_v25 = vpop.f32.mrf.mxu3  ;;  %v9924_v31 = vld [vmem:[%s15366_s7 + $0x478] sm:$0xf0]  ;;  %v8419_v49 = vor.u32 %v9973_v0, %v8418_v32  ;;  %v8390_v54 = vld [vmem:[%s15366_s7 + $0x5b0] sm:$0xf] }
 0x1f9   :  { %v10099_v9 = vld [vmem:[%s15366_s7 + $0x9f0] sm:$0xf0]  ;;  %v2397_v4 = vadd.f32 %v2396_v25, %v2383_v45  ;;  %v8166_v30 = vld [vmem:[%s15366_s7 + $0x3f0] sm:$0xf]  ;;  %v10092_v25 = vld [vmem:[%s15366_s7 + $0x9b8] sm:$0xf0] }
 0x1fa   :  { %5526 = vmatpush.bf16.msra.mxu3 %v7999_v51  ;;  %2646 = vmatpush.bf16.msra.mxu1 %v7435_v33  ;;  %v8278_v51 = vld [vmem:[%s15366_s7 + $0x4d0] sm:$0xf]  ;;  %v12554_v62 = vpop.f32.mrf.mxu0  ;;  %v8250_v33 = vld [vmem:[%s15366_s7 + $0x498] sm:$0xf]  ;;  %v8670_v0 = vld [vmem:[%s15366_s7 + $0x7e0] sm:$0xf] }
 0x1fb   :  { %v8279_v3 = vor.u32 %v9938_v53, %v8278_v51  ;;  %v8251_v63 = vor.u32 %v9931_v12, %v8250_v33  ;;  %v8194_v53 = vld [vmem:[%s15366_s7 + $0x428] sm:$0xf]  ;;  %v9910_v33 = vld [vmem:[%s15366_s7 + $0x408] sm:$0xf0]  ;;  %v8362_v12 = vld [vmem:[%s15366_s7 + $0x578] sm:$0xf] }
 0x1fc   :  { %5511 = vmatpush.bf16.msra.mxu2 %v7803_v58  ;;  %2631 = vmatpush.bf16.msra.mxu0 %v7211_v14  ;;  %v12548_v58 = vpop.f32.mrf.mxu1  ;;  %v8978_v14 = vld [vmem:[%s15366_s7 + $0xa48] sm:$0xf]  ;;  %v8110_v45 = vld [vmem:[%s15366_s7 + $0x380] sm:$0xf] }
 0x1fd   :  { %2647 = vmatmul.bf16.vlgmr.msra.gmra.mxu1 %v11255_v50  ;;  %v9987_v50 = vld [vmem:[%s15366_s7 + $0x670] sm:$0xf0]  ;;  %v8979_v18 = vor.u32 %v10113_v17, %v8978_v14 }
 0x1fe   :  { %5527 = vmatpush.bf16.msra.mxu3 %v7971_v13  ;;  %5551 = vmatpush.bf16.msrb.mxu1 %v8531_v23  ;;  %v8475_v6 = vor.u32 %v9987_v50, %v8474_v41  ;;  %v8446_v13 = vld [vmem:[%s15366_s7 + $0x620] sm:$0xf]  ;;  %v2662_v23 = vmax.f32 %v2315_v16, 0.0  ;;  %v2384_v34 = vpop.f32.mrf.mxu2  ;;  %v9917_v41 = vld [vmem:[%s15366_s7 + $0x440] sm:$0xf0]  ;;  %v2327_v50 = vadd.f32 %v12389_v21, %v911_v55  ;;  %v2329_v21 = vadd.f32 %v12476_v7, %v911_v55 }
 0x1ff   :  { %v8726_v16 = vld [vmem:[%s15366_s7 + $0x850] sm:$0xf]  ;;  %v8195_v5 = vor.u32 %v9917_v41, %v8194_v53  ;;  %v10029_v53 = vld [vmem:[%s15366_s7 + $0x7c0] sm:$0xf0] }
 0x200   :  { %5512 = vmatpush.bf16.msra.mxu2 %v7775_v20  ;;  %2632 = vmatpush.bf16.msra.mxu0 %v7179_v37  ;;  %v2259_v20 = vadd.f32 %v12237_v52, %v2245_v38  ;;  %v8447_v52 = vor.u32 %v9980_v2, %v8446_v13  ;;  %v2257_v37 = vadd.f32 %v12158_v11, %v2243_v56  ;;  %v9966_v38 = vld [vmem:[%s15366_s7 + $0x5c8] sm:$0xf0]  ;;  %v9959_v13 = vld [vmem:[%s15366_s7 + $0x590] sm:$0xf0]  ;;  %v2398_v14 = vpop.f32.mrf.mxu3  ;;  %v8698_v56 = vld [vmem:[%s15366_s7 + $0x818] sm:$0xf] }
 0x201   :  { %v7663_v11 = vor.u32 %v9784_v19, %v7662_v28  ;;  %v8391_v7 = vor.u32 %v9966_v38, %v8390_v54  ;;  %v2341_v2 = vadd.f32 %v12439_v47, %v2327_v50  ;;  %v8894_v47 = vld [vmem:[%s15366_s7 + $0x9a0] sm:$0xf]  ;;  %v8363_v28 = vor.u32 %v9959_v13, %v8362_v12  ;;  %v8838_v41 = vld [vmem:[%s15366_s7 + $0x930] sm:$0xf]  ;;  %v10078_v54 = vld [vmem:[%s15366_s7 + $0x948] sm:$0xf0] }
 0x202   :  { %5528 = vmatpush.bf16.msra.mxu3 %v7943_v36  ;;  %5552 = vmatpush.bf16.msrb.mxu1 %v8503_v48  ;;  %v10057_v36 = vld [vmem:[%s15366_s7 + $0x8a0] sm:$0xf0]  ;;  %v2661_v22 = vmax.f32 %v2259_v20, 0.0  ;;  %v2410_v46 = vpop.f32.mrf.mxu0  ;;  %v8223_v48 = vor.u32 %v9924_v31, %v8222_v29  ;;  %v10043_v20 = vld [vmem:[%s15366_s7 + $0x830] sm:$0xf0] }
 0x203   :  { %2633 = vmatmul.bf16.vlgmr.msra.gmra.mxu0 %v11295_v10  ;;  %v2654_v10 = vmax.f32 %v2313_v61, 0.0  ;;  %v8755_v51 = vor.u32 %v10057_v36, %v8754_v35  ;;  %v2653_v61 = vmax.f32 %v2257_v37, 0.0  ;;  %v2411_v17 = vadd.f32 %v2410_v46, %v2397_v4  ;;  %v8138_v29 = vld [vmem:[%s15366_s7 + $0x3b8] sm:$0xf]  ;;  %v9903_v31 = vld [vmem:[%s15366_s7 + $0x3d0] sm:$0xf0] }
 0x204   :  { %5513 = vmatpush.bf16.msra.mxu2 %v7747_v15  ;;  %5537 = vmatpush.bf16.msrb.mxu0 %v8307_v42  ;;  %v12615_v15 = vpop.f32.mrf.mxu1  ;;  %v8950_v42 = vld [vmem:[%s15366_s7 + $0xa10] sm:$0xf]  ;;  %v10036_v35 = vld [vmem:[%s15366_s7 + $0x7f8] sm:$0xf0]  ;;  %v8895_v36 = vor.u32 %v10092_v25, %v8894_v47  ;;  %v9202_v50 = vld [vmem:[%s15366_s7 + $0xc08] sm:$0xf]  ;;  %v8839_v4 = vor.u32 %v10078_v54, %v8838_v41 }
 0x205   :  { %v12613_v39 = vpack.c.bf16 %v2662_v23, %v2654_v10  ;;  %v8951_v60 = vor.u32 %v10106_v44, %v8950_v42  ;;  %v2425_v32 = vadd.f32 %v12615_v15, %v2411_v17  ;;  %v8866_v15 = vld [vmem:[%s15366_s7 + $0x968] sm:$0xf]  ;;  %v10085_v42 = vld [vmem:[%s15366_s7 + $0x980] sm:$0xf0]  ;;  %v10015_v17 = vld [vmem:[%s15366_s7 + $0x750] sm:$0xf0] }
 0x206   :  { %5529 = vmatpush.bf16.msra.mxu3 %v7915_v59  ;;  %5553 = vmatpush.bf16.msrb.mxu1 %v8475_v6  ;;  %v10050_v59 = vld [vmem:[%s15366_s7 + $0x868] sm:$0xf0]  ;;  %v12657_v6 = vpack.c.bf16 %v2661_v22, %v2653_v61  ;;  %v8139_v22 = vor.u32 %v9903_v31, %v8138_v29  ;;  %v10169_v38 = vld [vmem:[%s15366_s7 + $0xc20] sm:$0xf0]  ;;  %v8084_v25 = vld [vmem:[%s15366_s7 + $0x364] sm:$0xf0] }
 0x207   :  { %v8727_v55 = vor.u32 %v10050_v59, %v8726_v16  ;;  %v9886_v47 = vld [vmem:[%s15366_s7 + $0x34c] sm:$0xf]  ;;  %v7860_v31 = vld [vmem:[%s15366_s7 + $0x1a4] sm:$0xf0]  ;;  %v9816_v54 = vld [vmem:[%s15366_s7 + $0x11c] sm:$0xf] }
 0x208   :  { %5514 = vmatpush.bf16.msra.mxu2 %v7719_v57  ;;  %5538 = vmatpush.bf16.msrb.mxu0 %v8279_v3  ;;  %v2385_v57 = vadd.f32 %v2384_v34, %v912_v26  ;;  %v8922_v3 = vld [vmem:[%s15366_s7 + $0x9d8] sm:$0xf]  ;;  %v2355_v26 = vadd.f32 %v12478_v8, %v2341_v2  ;;  %v8334_v8 = vld [vmem:[%s15366_s7 + $0x540] sm:$0xf] }
 0x209   :  { %v8923_v23 = vor.u32 %v10099_v9, %v8922_v3  ;;  %v8614_v3 = vld [vmem:[%s15366_s7 + $0x770] sm:$0xf]  ;;  %v10022_v9 = vld [vmem:[%s15366_s7 + $0x788] sm:$0xf0]  ;;  %v8586_v2 = vld [vmem:[%s15366_s7 + $0x738] sm:$0xf] }
 0x20a   :  { %5530 = vmatpush.bf16.msra.mxu3 %v7887_v24  ;;  %5554 = vmatpush.bf16.msrb.mxu1 %v8447_v52  ;;  %v2343_v24 = vadd.f32 %v12516_v40, %v2329_v21  ;;  %v2399_v10 = vadd.f32 %v2398_v14, %v2385_v57  ;;  %v8699_v52 = vor.u32 %v10043_v20, %v8698_v56  ;;  %v9146_v20 = vld [vmem:[%s15366_s7 + $0xb98] sm:$0xf] }
 0x20b   :  { %v2369_v44 = vadd.f32 %v12464_v1, %v2355_v26  ;;  %v8642_v1 = vld [vmem:[%s15366_s7 + $0x7a8] sm:$0xf]  ;;  %v9203_v57 = vor.u32 %v10169_v38, %v9202_v50  ;;  %v8615_v13 = vor.u32 %v10022_v9, %v8614_v3  ;;  %v913_v26 = vperm.slane %v12430_v43, 4  ;;  %v7804_v38 = vld [vmem:[%s15366_s7 + $0x134] sm:$0xf0] }
 0x20c   :  { %5515 = vmatpush.bf16.msra.mxu2 %v7691_v27  ;;  %5539 = vmatpush.bf16.msrb.mxu0 %v8251_v63  ;;  %v2412_v27 = vpop.f32.mrf.mxu0  ;;  %v8167_v63 = vor.u32 %v9910_v33, %v8166_v30  ;;  %v2357_v19 = vadd.f32 %v12554_v62, %v2343_v24  ;;  %v9952_v62 = vld [vmem:[%s15366_s7 + $0x558] sm:$0xf0]  ;;  %v8643_v21 = vor.u32 %v10029_v53, %v8642_v1  ;;  %v10071_v30 = vld [vmem:[%s15366_s7 + $0x910] sm:$0xf0]  ;;  %v8782_v24 = vld [vmem:[%s15366_s7 + $0x8c0] sm:$0xf] }
 0x20d   :  { %5531 = vmatmul.bf16.vlgmr.msra.gmra.mxu3 %v12613_v39  ;;  %v2413_v40 = vadd.f32 %v2412_v27, %v2399_v10  ;;  %v10064_v10 = vld [vmem:[%s15366_s7 + $0x8d8] sm:$0xf0]  ;;  %v8587_v27 = vor.u32 %v10015_v17, %v8586_v2  ;;  %v8028_v1 = vld [vmem:[%s15366_s7 + $0x2f4] sm:$0xf0]  ;;  %v8000_v3 = vld [vmem:[%s15366_s7 + $0x2bc] sm:$0xf0] }
 0x20e   :  { %5579 = vmatpush.bf16.msrb.mxu3 %v8979_v18  ;;  %5555 = vmatpush.bf16.msrb.mxu1 %v8419_v49  ;;  %v2426_v18 = vpop.f32.mrf.mxu1  ;;  %v2371_v34 = vadd.f32 %v12548_v58, %v2357_v19  ;;  %v9896_v49 = vld [vmem:[%s15366_s7 + $0x398] sm:$0xf0]  ;;  %v8867_v58 = vor.u32 %v10085_v42, %v8866_v15  ;;  %v8558_v19 = vld [vmem:[%s15366_s7 + $0x700] sm:$0xf]  ;;  %v8783_v29 = vor.u32 %v10064_v10, %v8782_v24  ;;  %v10127_v17 = vld [vmem:[%s15366_s7 + $0xad0] sm:$0xf0] }
 0x20f   :  { %v2427_v37 = vadd.f32 %v2426_v18, %v2413_v40  ;;  %v8111_v59 = vor.u32 %v9896_v49, %v8110_v45  ;;  %v10008_v40 = vld [vmem:[%s15366_s7 + $0x718] sm:$0xf0]  ;;  %v9823_v45 = vld [vmem:[%s15366_s7 + $0x154] sm:$0xf] }
 0x210   :  { %5516 = vmatpush.bf16.msra.mxu2 %v7663_v11  ;;  %5540 = vmatpush.bf16.msrb.mxu0 %v8223_v48  ;;  %v8335_v11 = vor.u32 %v9952_v62, %v8334_v8  ;;  %v8671_v48 = vor.u32 %v10036_v35, %v8670_v0  ;;  %v2663_v61 = vmax.f32 %v2371_v34, 0.0  ;;  %v8087_v8 = vor.u32 %v9886_v47, %v8084_v25  ;;  %v10148_v18 = vld [vmem:[%s15366_s7 + $0xb78] sm:$0xf0]  ;;  %v9879_v62 = vld [vmem:[%s15366_s7 + $0x314] sm:$0xf] }
 0x211   :  { %v2664_v46 = vmax.f32 %v2427_v37, 0.0  ;;  %v8056_v0 = vld [vmem:[%s15366_s7 + $0x32c] sm:$0xf0]  ;;  %v8559_v37 = vor.u32 %v10008_v40, %v8558_v19  ;;  %v9872_v49 = vld [vmem:[%s15366_s7 + $0x2dc] sm:$0xf] }
 0x212   :  { %5580 = vmatpush.bf16.msrb.mxu3 %v8951_v60  ;;  %5556 = vmatpush.bf16.msrb.mxu1 %v8391_v7  ;;  %v2655_v60 = vmax.f32 %v2369_v44, 0.0  ;;  %v9174_v7 = vld [vmem:[%s15366_s7 + $0xbd0] sm:$0xf]  ;;  %v9802_v25 = vld [vmem:[%s15366_s7 + $0xac] sm:$0xf] }
 0x213   :  { %5517 = vmatmul.bf16.vlgmr.msra.gmra.mxu2 %v12657_v6  ;;  %v7832_v34 = vld [vmem:[%s15366_s7 + $0x16c] sm:$0xf0]  ;;  %v9006_v19 = vld [vmem:[%s15366_s7 + $0xa80] sm:$0xf]  ;;  %v10120_v40 = vld [vmem:[%s15366_s7 + $0xa98] sm:$0xf0] }
 0x214   :  { %5565 = vmatpush.bf16.msrb.mxu2 %v8755_v51  ;;  %5541 = vmatpush.bf16.msrb.mxu0 %v8195_v5  ;;  %v2656_v51 = vmax.f32 %v2425_v32, 0.0  ;;  %v8810_v5 = vld [vmem:[%s15366_s7 + $0x8f8] sm:$0xf]  ;;  %v12757_v12 = vpack.c.bf16 %v2663_v61, %v2655_v60  ;;  %v9118_v32 = vld [vmem:[%s15366_s7 + $0xb60] sm:$0xf]  ;;  %v7835_v41 = vor.u32 %v9823_v45, %v7832_v34 }
 0x215   :  { %v8811_v56 = vor.u32 %v10071_v30, %v8810_v5  ;;  %v9119_v15 = vor.u32 %v10148_v18, %v9118_v32  ;;  %v9062_v60 = vld [vmem:[%s15366_s7 + $0xaf0] sm:$0xf]  ;;  %v10134_v61 = vld [vmem:[%s15366_s7 + $0xb08] sm:$0xf0]  ;;  %v7807_v30 = vor.u32 %v9816_v54, %v7804_v38  ;;  %v9007_v32 = vor.u32 %v10120_v40, %v9006_v19  ;;  %v10225_v18 = vld [vmem:[%s15366_s7 + $0xde0] sm:$0xf0] }
 0x216   :  { %5581 = vmatpush.bf16.msrb.mxu3 %v8923_v23  ;;  %5557 = vmatpush.bf16.msrb.mxu1 %v8363_v28  ;;  %v12736_v16 = vpack.c.bf16 %v2664_v46, %v2656_v51  ;;  %v2438_v33 = vpop.f32.mrf.mxu2  ;;  %v10155_v23 = vld [vmem:[%s15366_s7 + $0xbb0] sm:$0xf0]  ;;  %v2452_v28 = vpop.f32.mrf.mxu3  ;;  %v8059_v46 = vor.u32 %v9879_v62, %v8056_v0  ;;  %v9942_v62 = vld [vmem:[%s15366_s7 + $0x50c] sm:$0xf]  ;;  %v8308_v0 = vld [vmem:[%s15366_s7 + $0x524] sm:$0xf0] }
 0x217   :  { %v2439_v35 = vadd.f32 %v2438_v33, %v913_v26  ;;  %v7916_v45 = vld [vmem:[%s15366_s7 + $0x214] sm:$0xf0]  ;;  %v9398_v34 = vld [vmem:[%s15366_s7 + $0xd90] sm:$0xf]  ;;  %v7888_v38 = vld [vmem:[%s15366_s7 + $0x1dc] sm:$0xf0] }
 0x218   :  { %5566 = vmatpush.bf16.msrb.mxu2 %v8727_v55  ;;  %5542 = vmatpush.bf16.msrb.mxu0 %v8167_v63  ;;  %v10162_v55 = vld [vmem:[%s15366_s7 + $0xbe8] sm:$0xf0]  ;;  %v9147_v63 = vor.u32 %v10155_v23, %v9146_v20  ;;  %v7972_v23 = vld [vmem:[%s15366_s7 + $0x284] sm:$0xf0]  ;;  %v10197_v19 = vld [vmem:[%s15366_s7 + $0xd00] sm:$0xf0] }
 0x219   :  { %v9175_v14 = vor.u32 %v10162_v55, %v9174_v7  ;;  %v2453_v53 = vadd.f32 %v2452_v28, %v2439_v35  ;;  %v9809_v7 = vld [vmem:[%s15366_s7 + $0xe4] sm:$0xf]  ;;  %v9858_v20 = vld [vmem:[%s15366_s7 + $0x26c] sm:$0xf] }
 0x21a   :  { %5582 = vmatpush.bf16.msrb.mxu3 %v8895_v36  ;;  %5558 = vmatpush.bf16.msrb.mxu1 %v8335_v11  ;;  %v2480_v36 = vpop.f32.mrf.mxu1  ;;  %v9090_v11 = vld [vmem:[%s15366_s7 + $0xb28] sm:$0xf]  ;;  %v7975_v28 = vor.u32 %v9858_v20, %v7972_v23  ;;  %v9914_v40 = vld [vmem:[%s15366_s7 + $0x42c] sm:$0xf] }
 0x21c   :  { %5567 = vmatpush.bf16.msrb.mxu2 %v8699_v52  ;;  %5543 = vmatpush.bf16.msrb.mxu0 %v8139_v22  ;;  %v9830_v52 = vld [vmem:[%s15366_s7 + $0x18c] sm:$0xf] }
 0x21d   :  { %5559 = vmatmul.bf16.vlgmr.msrb.gmra.mxu1 %v12736_v16  ;;  %v7863_v22 = vor.u32 %v9830_v52, %v7860_v31  ;;  %v9851_v52 = vld [vmem:[%s15366_s7 + $0x234] sm:$0xf]  ;;  %v9426_v31 = vld [vmem:[%s15366_s7 + $0xdc8] sm:$0xf] }
 0x21e   :  { %5583 = vmatpush.bf16.msrb.mxu3 %v8867_v58  ;;  %v2440_v42 = vpop.f32.mrf.mxu2 }
 0x21f   :  { %v2441_v51 = vadd.f32 %v2440_v42, %v913_v26  ;;  %v7748_v26 = vld [vmem:[%s15366_s7 + $0xc4] sm:$0xf0]  ;;  %v7720_v42 = vld [vmem:[%s15366_s7 + $0x8c] sm:$0xf0] }
 0x220   :  { %5568 = vmatpush.bf16.msrb.mxu2 %v8671_v48  ;;  %5544 = vmatpush.bf16.msrb.mxu0 %v8111_v59  ;;  %v2466_v44 = vpop.f32.mrf.mxu0  ;;  %v10141_v48 = vld [vmem:[%s15366_s7 + $0xb40] sm:$0xf0]  ;;  %v8031_v59 = vor.u32 %v9872_v49, %v8028_v1  ;;  %v7751_v35 = vor.u32 %v9802_v25, %v7748_v26  ;;  %v8280_v49 = vld [vmem:[%s15366_s7 + $0x4ec] sm:$0xf0]  ;;  %v10047_v25 = vld [vmem:[%s15366_s7 + $0x854] sm:$0xf] }
 0x221   :  { %v9091_v58 = vor.u32 %v10141_v48, %v9090_v11  ;;  %v2467_v50 = vadd.f32 %v2466_v44, %v2453_v53  ;;  %v9935_v11 = vld [vmem:[%s15366_s7 + $0x4d4] sm:$0xf]  ;;  %v9788_v53 = vld [vmem:[%s15366_s7 + $0x3c] sm:$0xf]  ;;  %v8728_v26 = vld [vmem:[%s15366_s7 + $0x86c] sm:$0xf0] }
 0x222   :  { %5584 = vmatpush.bf16.msrb.mxu3 %v8839_v4  ;;  %v9063_v4 = vor.u32 %v10134_v61, %v9062_v60  ;;  %v10211_v60 = vld [vmem:[%s15366_s7 + $0xd70] sm:$0xf0]  ;;  %v9928_v61 = vld [vmem:[%s15366_s7 + $0x49c] sm:$0xf] }
 0x223   :  { %5545 = vmatmul.bf16.vlgmr.msrb.gmra.mxu0 %v12757_v12  ;;  %v2481_v55 = vadd.f32 %v2480_v36, %v2467_v50  ;;  %v9795_v36 = vld [vmem:[%s15366_s7 + $0x74] sm:$0xf]  ;;  %v9837_v50 = vld [vmem:[%s15366_s7 + $0x1c4] sm:$0xf] }
 0x224   :  { %5569 = vmatpush.bf16.msrb.mxu2 %v8643_v21  ;;  %5593 = vmatpush.bf16.msra.mxu0 %v9203_v57  ;;  %v2454_v21 = vpop.f32.mrf.mxu3  ;;  %v9865_v57 = vld [vmem:[%s15366_s7 + $0x2a4] sm:$0xf] }
 0x225   :  { %v2455_v9 = vadd.f32 %v2454_v21, %v2441_v51  ;;  %v8003_v2 = vor.u32 %v9865_v57, %v8000_v3  ;;  %v7723_v51 = vor.u32 %v9795_v36, %v7720_v42  ;;  %v8252_v57 = vld [vmem:[%s15366_s7 + $0x4b4] sm:$0xf0]  ;;  %v914_v3 = vperm.slane %v12430_v43, 5  ;;  %v8756_v43 = vld [vmem:[%s15366_s7 + $0x8a4] sm:$0xf0] }
 0x226   :  { %5585 = vmatpush.bf16.msrb.mxu3 %v8811_v56  ;;  %v2482_v56 = vpop.f32.mrf.mxu1  ;;  %v9286_v36 = vld [vmem:[%s15366_s7 + $0xcb0] sm:$0xf] }
 0x228   :  { %5570 = vmatpush.bf16.msrb.mxu2 %v8615_v13  ;;  %5594 = vmatpush.bf16.msra.mxu0 %v9175_v14  ;;  %v2468_v5 = vpop.f32.mrf.mxu0  ;;  %v7776_v13 = vld [vmem:[%s15366_s7 + $0xfc] sm:$0xf0]  ;;  %v9034_v14 = vld [vmem:[%s15366_s7 + $0xab8] sm:$0xf] }
 0x229   :  { %v2469_v33 = vadd.f32 %v2468_v5, %v2455_v9  ;;  %v9035_v10 = vor.u32 %v10127_v17, %v9034_v14  ;;  %v7779_v47 = vor.u32 %v9809_v7, %v7776_v13  ;;  %v8255_v5 = vor.u32 %v9928_v61, %v8252_v57  ;;  %v10054_v7 = vld [vmem:[%s15366_s7 + $0x88c] sm:$0xf]  ;;  %v9342_v13 = vld [vmem:[%s15366_s7 + $0xd20] sm:$0xf]  ;;  %v9921_v14 = vld [vmem:[%s15366_s7 + $0x464] sm:$0xf] }
 0x22a   :  { %5586 = vmatpush.bf16.msrb.mxu3 %v8783_v29  ;;  %v7944_v29 = vld [vmem:[%s15366_s7 + $0x24c] sm:$0xf0] }
 0x22b   :  { %v2483_v24 = vadd.f32 %v2482_v56, %v2469_v33  ;;  %v7947_v44 = vor.u32 %v9851_v52, %v7944_v29  ;;  %v8224_v56 = vld [vmem:[%s15366_s7 + $0x47c] sm:$0xf0]  ;;  %v8196_v29 = vld [vmem:[%s15366_s7 + $0x444] sm:$0xf0] }
 0x22c   :  { %5571 = vmatpush.bf16.msrb.mxu2 %v8587_v27  ;;  %5595 = vmatpush.bf16.msra.mxu0 %v9147_v63  ;;  %v2657_v27 = vmax.f32 %v2481_v55, 0.0  ;;  %v7891_v55 = vor.u32 %v9837_v50, %v7888_v38  ;;  %v8227_v23 = vor.u32 %v9921_v14, %v8224_v56  ;;  %v8140_v38 = vld [vmem:[%s15366_s7 + $0x3d4] sm:$0xf0]  ;;  %v8532_v56 = vld [vmem:[%s15366_s7 + $0x6e4] sm:$0xf0] }
 0x22d   :  { %v2665_v63 = vmax.f32 %v2483_v24, 0.0 }
 0x22e   :  { %5635 = vmatpush.bf16.msra.mxu3 %v8087_v8 }
 0x22f   :  { %v12884_v8 = vpack.c.bf16 %v2665_v63, %v2657_v27 }
 0x230   :  { %5572 = vmatpush.bf16.msrb.mxu2 %v8559_v37  ;;  %5596 = vmatpush.bf16.msra.mxu0 %v9119_v15  ;;  %v9427_v37 = vor.u32 %v10225_v18, %v9426_v31  ;;  %v8311_v15 = vor.u32 %v9942_v62, %v8308_v0  ;;  %v2508_v33 = vpop.f32.mrf.mxu3  ;;  %v8199_v31 = vor.u32 %v9914_v40, %v8196_v29  ;;  %v10040_v0 = vld [vmem:[%s15366_s7 + $0x81c] sm:$0xf]  ;;  %v8924_v29 = vld [vmem:[%s15366_s7 + $0x9f4] sm:$0xf0] }
 0x231   :  { %v8731_v62 = vor.u32 %v10047_v25, %v8728_v26  ;;  %v10019_v25 = vld [vmem:[%s15366_s7 + $0x774] sm:$0xf]  ;;  %v8616_v26 = vld [vmem:[%s15366_s7 + $0x78c] sm:$0xf0] }
 0x232   :  { %5636 = vmatpush.bf16.msra.mxu3 %v8059_v46  ;;  %5607 = vmatpush.bf16.msra.mxu1 %v9427_v37  ;;  %v10218_v46 = vld [vmem:[%s15366_s7 + $0xda8] sm:$0xf0]  ;;  %v8619_v40 = vor.u32 %v10019_v25, %v8616_v26 }
 0x233   :  { %5573 = vmatmul.bf16.vlgmr.msrb.gmra.mxu2 %v12884_v8  ;;  %v9399_v48 = vor.u32 %v10218_v46, %v9398_v34  ;;  %v10190_v37 = vld [vmem:[%s15366_s7 + $0xcc8] sm:$0xf0] }
 0x234   :  { %5621 = vmatpush.bf16.msra.mxu2 %v7863_v22  ;;  %5597 = vmatpush.bf16.msra.mxu0 %v9091_v58  ;;  %v9844_v22 = vld [vmem:[%s15366_s7 + $0x1fc] sm:$0xf]  ;;  %v8283_v58 = vor.u32 %v9935_v11, %v8280_v49  ;;  %v8672_v49 = vld [vmem:[%s15366_s7 + $0x7fc] sm:$0xf0] }
 0x235   :  { %v7919_v54 = vor.u32 %v9844_v22, %v7916_v45  ;;  %v8168_v22 = vld [vmem:[%s15366_s7 + $0x40c] sm:$0xf0] }
 0x236   :  { %5637 = vmatpush.bf16.msra.mxu3 %v8031_v59  ;;  %v2494_v1 = vpop.f32.mrf.mxu2  ;;  %5608 = vmatpush.bf16.msra.mxu1 %v9399_v48  ;;  %v9370_v59 = vld [vmem:[%s15366_s7 + $0xd58] sm:$0xf]  ;;  %v10033_v48 = vld [vmem:[%s15366_s7 + $0x7e4] sm:$0xf] }
 0x237   :  { %v9371_v21 = vor.u32 %v10211_v60, %v9370_v59  ;;  %v2495_v24 = vadd.f32 %v2494_v1, %v914_v3  ;;  %v10110_v60 = vld [vmem:[%s15366_s7 + $0xa4c] sm:$0xf]  ;;  %v8675_v57 = vor.u32 %v10033_v48, %v8672_v49  ;;  %v9977_v48 = vld [vmem:[%s15366_s7 + $0x624] sm:$0xf]  ;;  %v8448_v49 = vld [vmem:[%s15366_s7 + $0x63c] sm:$0xf0] }
 0x238   :  { %5622 = vmatpush.bf16.msra.mxu2 %v7835_v41  ;;  %5598 = vmatpush.bf16.msra.mxu0 %v9063_v4  ;;  %v7692_v41 = vld [vmem:[%s15366_s7 + $0x54] sm:$0xf0]  ;;  %v9781_v4 = vld [vmem:[%s15366_s7 + $0x4] sm:$0xf]  ;;  %v2510_v45 = vpop.f32.mrf.mxu3 }
 0x239   :  { %v7695_v9 = vor.u32 %v9788_v53, %v7692_v41  ;;  %v2509_v18 = vadd.f32 %v2508_v33, %v2495_v24  ;;  %v10183_v53 = vld [vmem:[%s15366_s7 + $0xc90] sm:$0xf0] }
 0x23a   :  { %5638 = vmatpush.bf16.msra.mxu3 %v8003_v2  ;;  %5609 = vmatpush.bf16.msra.mxu1 %v9371_v21  ;;  %v10204_v2 = vld [vmem:[%s15366_s7 + $0xd38] sm:$0xf0]  ;;  %v10103_v24 = vld [vmem:[%s15366_s7 + $0xa14] sm:$0xf] }
 0x23b   :  { %v9343_v17 = vor.u32 %v10204_v2, %v9342_v13  ;;  %v8112_v13 = vld [vmem:[%s15366_s7 + $0x39c] sm:$0xf0] }
 0x23c   :  { %5623 = vmatpush.bf16.msra.mxu2 %v7807_v30  ;;  %5599 = vmatpush.bf16.msra.mxu0 %v9035_v10  ;;  %v7664_v30 = vld [vmem:[%s15366_s7 + $0x1c] sm:$0xf0]  ;;  %v2536_v10 = vpop.f32.mrf.mxu1 }
 0x23d   :  { %v7667_v20 = vor.u32 %v9781_v4, %v7664_v30  ;;  %v8644_v4 = vld [vmem:[%s15366_s7 + $0x7c4] sm:$0xf0]  ;;  %v10176_v30 = vld [vmem:[%s15366_s7 + $0xc58] sm:$0xf0] }
 0x23e   :  { %5639 = vmatpush.bf16.msra.mxu3 %v7975_v28  ;;  %v2496_v27 = vpop.f32.mrf.mxu2  ;;  %5610 = vmatpush.bf16.msra.mxu1 %v9343_v17  ;;  %v9314_v28 = vld [vmem:[%s15366_s7 + $0xce8] sm:$0xf]  ;;  %v9998_v17 = vld [vmem:[%s15366_s7 + $0x6cc] sm:$0xf] }
 0x23f   :  { %v9315_v52 = vor.u32 %v10197_v19, %v9314_v28 }
 0x240   :  { %5624 = vmatpush.bf16.msra.mxu2 %v7779_v47  ;;  %5600 = vmatpush.bf16.msra.mxu0 %v9007_v32  ;;  %v8759_v47 = vor.u32 %v10054_v7, %v8756_v43  ;;  %v2522_v63 = vpop.f32.mrf.mxu0  ;;  %v2497_v32 = vadd.f32 %v2496_v27, %v914_v3  ;;  %v8980_v3 = vld [vmem:[%s15366_s7 + $0xa64] sm:$0xf0]  ;;  %v9893_v7 = vld [vmem:[%s15366_s7 + $0x384] sm:$0xf]  ;;  %v9991_v27 = vld [vmem:[%s15366_s7 + $0x694] sm:$0xf] }
 0x241   :  { %v2523_v42 = vadd.f32 %v2522_v63, %v2509_v18  ;;  %v8983_v2 = vor.u32 %v10110_v60, %v8980_v3  ;;  %v8115_v14 = vor.u32 %v9893_v7, %v8112_v13  ;;  %v8504_v63 = vld [vmem:[%s15366_s7 + $0x6ac] sm:$0xf0]  ;;  %v8588_v18 = vld [vmem:[%s15366_s7 + $0x754] sm:$0xf0] }
 0x242   :  { %5640 = vmatpush.bf16.msra.mxu3 %v7947_v44  ;;  %5611 = vmatpush.bf16.msra.mxu1 %v9315_v52  ;;  %v9287_v44 = vor.u32 %v10190_v37, %v9286_v36  ;;  %v2511_v46 = vadd.f32 %v2510_v45, %v2497_v32  ;;  %v8507_v19 = vor.u32 %v9991_v27, %v8504_v63  ;;  %v10096_v52 = vld [vmem:[%s15366_s7 + $0x9dc] sm:$0xf]  ;;  %v13096_v37 = vld [vmem:[%s15365_s6] sm:$0xff]  ;;  %v8840_v7 = vld [vmem:[%s15366_s7 + $0x94c] sm:$0xf0] }
 0x243   :  { %v2537_v41 = vadd.f32 %v2536_v10, %v2523_v42  ;;  %v8952_v10 = vld [vmem:[%s15366_s7 + $0xa2c] sm:$0xf0]  ;;  %v10012_v32 = vld [vmem:[%s15366_s7 + $0x73c] sm:$0xf]  ;;  %v10005_v45 = vld [vmem:[%s15366_s7 + $0x704] sm:$0xf] }
 0x244   :  { %5625 = vmatpush.bf16.msra.mxu2 %v7751_v35  ;;  %5649 = vmatpush.bf16.msrb.mxu0 %v8311_v15  ;;  %v8700_v35 = vld [vmem:[%s15366_s7 + $0x834] sm:$0xf0]  ;;  %v9907_v15 = vld [vmem:[%s15366_s7 + $0x3f4] sm:$0xf]  ;;  %v2538_v59 = vpop.f32.mrf.mxu1  ;;  %v8955_v28 = vor.u32 %v10103_v24, %v8952_v10  ;;  %v8591_v42 = vor.u32 %v10012_v32, %v8588_v18  ;;  %v10068_v10 = vld [vmem:[%s15366_s7 + $0x8fc] sm:$0xf] }
 0x245   :  { %v8171_v34 = vor.u32 %v9907_v15, %v8168_v22  ;;  %v8703_v11 = vor.u32 %v10040_v0, %v8700_v35  ;;  %v2658_v43 = vmax.f32 %v2537_v41, 0.0  ;;  %v8476_v0 = vld [vmem:[%s15366_s7 + $0x674] sm:$0xf0]  ;;  %v8927_v35 = vor.u32 %v10096_v52, %v8924_v29  ;;  %v8896_v22 = vld [vmem:[%s15366_s7 + $0x9bc] sm:$0xf0] }
 0x246   :  { %5641 = vmatpush.bf16.msra.mxu3 %v7919_v54  ;;  %5612 = vmatpush.bf16.msra.mxu1 %v9287_v44  ;;  %v915_v15 = vperm.slane %v13096_v37, 6  ;;  %v10089_v44 = vld [vmem:[%s15366_s7 + $0x9a4] sm:$0xf]  ;;  %v10082_v41 = vld [vmem:[%s15366_s7 + $0x96c] sm:$0xf] }
 0x247   :  { %v7782_v27 = vld [vmem:[%s15366_s7 + $0xe8] sm:$0xf] }
 0x248   :  { %5626 = vmatpush.bf16.msra.mxu2 %v7723_v51  ;;  %5650 = vmatpush.bf16.msrb.mxu0 %v8283_v58  ;;  %v2524_v1 = vpop.f32.mrf.mxu0  ;;  %v9258_v51 = vld [vmem:[%s15366_s7 + $0xc78] sm:$0xf]  ;;  %v9900_v58 = vld [vmem:[%s15366_s7 + $0x3bc] sm:$0xf] }
 0x249   :  { %v2525_v54 = vadd.f32 %v2524_v1, %v2511_v46  ;;  %v9259_v50 = vor.u32 %v10183_v53, %v9258_v51  ;;  %v8143_v61 = vor.u32 %v9900_v58, %v8140_v38  ;;  %v7866_v46 = vld [vmem:[%s15366_s7 + $0x190] sm:$0xf]  ;;  %v8899_v51 = vor.u32 %v10089_v44, %v8896_v22  ;;  %v7838_v38 = vld [vmem:[%s15366_s7 + $0x158] sm:$0xf]  ;;  %v9890_v22 = vld [vmem:[%s15366_s7 + $0x368] sm:$0xf0] }
 0x24a   :  { %5642 = vmatpush.bf16.msra.mxu3 %v7891_v55  ;;  %v8451_v53 = vor.u32 %v9977_v48, %v8448_v49  ;;  %v8090_v44 = vld [vmem:[%s15366_s7 + $0x350] sm:$0xf]  ;;  %v8336_v48 = vld [vmem:[%s15366_s7 + $0x55c] sm:$0xf0] }
 0x24b   :  { %v2539_v21 = vadd.f32 %v2538_v59, %v2525_v54  ;;  %5613 = vmatpush.bf16.msra.mxu1 %v9259_v50  ;;  %v8868_v54 = vld [vmem:[%s15366_s7 + $0x984] sm:$0xf0] }
 0x24c   :  { %5627 = vmatpush.bf16.msra.mxu2 %v7695_v9  ;;  %5651 = vmatpush.bf16.msrb.mxu0 %v8255_v5  ;;  %v10026_v9 = vld [vmem:[%s15366_s7 + $0x7ac] sm:$0xf]  ;;  %v9230_v5 = vld [vmem:[%s15366_s7 + $0xc40] sm:$0xf] }
 0x24d   :  { %v2666_v55 = vmax.f32 %v2539_v21, 0.0  ;;  %v9231_v33 = vor.u32 %v10176_v30, %v9230_v5  ;;  %v9970_v21 = vld [vmem:[%s15366_s7 + $0x5ec] sm:$0xf]  ;;  %v10075_v30 = vld [vmem:[%s15366_s7 + $0x934] sm:$0xf] }
 0x24f   :  { %5614 = vmatpush.bf16.msra.mxu1 %v9231_v33 }
 0x250   :  { %5628 = vmatpush.bf16.msra.mxu2 %v7667_v20  ;;  %5652 = vmatpush.bf16.msrb.mxu0 %v8227_v23  ;;  %v13054_v20 = vpack.c.bf16 %v2666_v55, %v2658_v43  ;;  %v8647_v23 = vor.u32 %v10026_v9, %v8644_v4  ;;  %v2564_v1 = vpop.f32.mrf.mxu3  ;;  %v8871_v4 = vor.u32 %v10082_v41, %v8868_v54  ;;  %v7810_v55 = vld [vmem:[%s15366_s7 + $0x120] sm:$0xf] }
 0x252   :  { %5587 = vmatmul.bf16.vlgmr.msrb.gmra.mxu3 %v13054_v20 }
 0x253   :  { %5629 = vmatmul.bf16.vlgmr.msra.gmra.mxu2 %v12657_v6  ;;  %5691 = vmatpush.bf16.msrb.mxu3 %v8983_v2  ;;  %v9820_v2 = vld [vmem:[%s15366_s7 + $0x138] sm:$0xf0] }
 0x254   :  { %5677 = vmatpush.bf16.msrb.mxu2 %v8759_v47  ;;  %5653 = vmatpush.bf16.msrb.mxu0 %v8199_v31  ;;  %v8535_v47 = vor.u32 %v9998_v17, %v8532_v56  ;;  %v8392_v17 = vld [vmem:[%s15366_s7 + $0x5cc] sm:$0xf0]  ;;  %v8843_v56 = vor.u32 %v10075_v30, %v8840_v7  ;;  %v7811_v26 = vor.u32 %v9820_v2, %v7810_v55  ;;  %v8034_v30 = vld [vmem:[%s15366_s7 + $0x2e0] sm:$0xf]  ;;  %v9876_v7 = vld [vmem:[%s15366_s7 + $0x2f8] sm:$0xf0] }
 0x255   :  { %v9148_v55 = vld [vmem:[%s15366_s7 + $0xbb4] sm:$0xf0]  ;;  %v8035_v2 = vor.u32 %v9876_v7, %v8034_v30 }
 0x256   :  { %5663 = vmatpush.bf16.msrb.mxu1 %v8535_v47  ;;  %v2550_v31 = vpop.f32.mrf.mxu2  ;;  %v8812_v47 = vld [vmem:[%s15366_s7 + $0x914] sm:$0xf0] }
 0x257   :  { %5692 = vmatpush.bf16.msrb.mxu3 %v8955_v28  ;;  %v2551_v59 = vadd.f32 %v2550_v31, %v915_v15  ;;  %v9813_v28 = vld [vmem:[%s15366_s7 + $0x100] sm:$0xf0]  ;;  %v8815_v29 = vor.u32 %v10068_v10, %v8812_v47  ;;  %v9120_v10 = vld [vmem:[%s15366_s7 + $0xb7c] sm:$0xf0]  ;;  %v7670_v47 = vld [vmem:[%s15366_s7 + $0x8] sm:$0xf] }
 0x258   :  { %5678 = vmatpush.bf16.msrb.mxu2 %v8731_v62  ;;  %5654 = vmatpush.bf16.msrb.mxu0 %v8171_v34  ;;  %v9984_v62 = vld [vmem:[%s15366_s7 + $0x65c] sm:$0xf]  ;;  %v8560_v34 = vld [vmem:[%s15366_s7 + $0x71c] sm:$0xf0]  ;;  %v2566_v25 = vpop.f32.mrf.mxu3  ;;  %v10061_v31 = vld [vmem:[%s15366_s7 + $0x8c4] sm:$0xf] }
 0x259   :  { %v8479_v36 = vor.u32 %v9984_v62, %v8476_v0  ;;  %v8563_v58 = vor.u32 %v10005_v45, %v8560_v34  ;;  %v2565_v13 = vadd.f32 %v2564_v1, %v2551_v59  ;;  %v8784_v0 = vld [vmem:[%s15366_s7 + $0x8dc] sm:$0xf0]  ;;  %v7754_v45 = vld [vmem:[%s15366_s7 + $0xb0] sm:$0xf]  ;;  %v9883_v59 = vld [vmem:[%s15366_s7 + $0x330] sm:$0xf0] }
 0x25a   :  { %5664 = vmatpush.bf16.msrb.mxu1 %v8507_v19  ;;  %v2592_v60 = vpop.f32.mrf.mxu1  ;;  %v9956_v19 = vld [vmem:[%s15366_s7 + $0x57c] sm:$0xf]  ;;  %v8787_v49 = vor.u32 %v10061_v31, %v8784_v0  ;;  %v9092_v31 = vld [vmem:[%s15366_s7 + $0xb44] sm:$0xf0] }
 0x25b   :  { %5693 = vmatpush.bf16.msrb.mxu3 %v8927_v35  ;;  %v10166_v35 = vld [vmem:[%s15366_s7 + $0xc0c] sm:$0xf] }
 0x25c   :  { %5679 = vmatpush.bf16.msrb.mxu2 %v8703_v11  ;;  %5655 = vmatpush.bf16.msrb.mxu0 %v8143_v61  ;;  %v9834_v11 = vld [vmem:[%s15366_s7 + $0x1a8] sm:$0xf0]  ;;  %v9827_v61 = vld [vmem:[%s15366_s7 + $0x170] sm:$0xf0] }
 0x25d   :  { %v7867_v50 = vor.u32 %v9834_v11, %v7866_v46  ;;  %v7839_v43 = vor.u32 %v9827_v61, %v7838_v38  ;;  %v9806_v46 = vld [vmem:[%s15366_s7 + $0xc8] sm:$0xf0]  ;;  %v9949_v11 = vld [vmem:[%s15366_s7 + $0x544] sm:$0xf]  ;;  %v8062_v38 = vld [vmem:[%s15366_s7 + $0x318] sm:$0xf] }
 0x25e   :  { %5665 = vmatpush.bf16.msrb.mxu1 %v8479_v36  ;;  %v2552_v3 = vpop.f32.mrf.mxu2  ;;  %v9204_v36 = vld [vmem:[%s15366_s7 + $0xc24] sm:$0xf0]  ;;  %v8339_v1 = vor.u32 %v9949_v11, %v8336_v48  ;;  %v7755_v54 = vor.u32 %v9806_v46, %v7754_v45  ;;  %v9176_v61 = vld [vmem:[%s15366_s7 + $0xbec] sm:$0xf0]  ;;  %v10131_v45 = vld [vmem:[%s15366_s7 + $0xaf4] sm:$0xf] }
 0x25f   :  { %5694 = vmatpush.bf16.msrb.mxu3 %v8899_v51  ;;  %v2553_v33 = vadd.f32 %v2552_v3, %v915_v15  ;;  %v9207_v41 = vor.u32 %v10166_v35, %v9204_v36  ;;  %v8063_v3 = vor.u32 %v9883_v59, %v8062_v38  ;;  %v8734_v35 = vld [vmem:[%s15366_s7 + $0x858] sm:$0xf]  ;;  %v10051_v36 = vld [vmem:[%s15366_s7 + $0x870] sm:$0xf0]  ;;  %v9064_v46 = vld [vmem:[%s15366_s7 + $0xb0c] sm:$0xf0] }
 0x260   :  { %5680 = vmatpush.bf16.msrb.mxu2 %v8675_v57  ;;  %5656 = vmatpush.bf16.msrb.mxu0 %v8115_v14  ;;  %v8420_v57 = vld [vmem:[%s15366_s7 + $0x604] sm:$0xf0]  ;;  %v2578_v9 = vpop.f32.mrf.mxu0  ;;  %v9963_v14 = vld [vmem:[%s15366_s7 + $0x5b4] sm:$0xf]  ;;  %v7950_v11 = vld [vmem:[%s15366_s7 + $0x238] sm:$0xf] }
 0x261   :  { %v8423_v5 = vor.u32 %v9970_v21, %v8420_v57  ;;  %v2579_v24 = vadd.f32 %v2578_v9, %v2565_v13  ;;  %v2567_v63 = vadd.f32 %v2566_v25, %v2553_v33  ;;  %v7726_v21 = vld [vmem:[%s15366_s7 + $0x78] sm:$0xf]  ;;  %v9799_v57 = vld [vmem:[%s15366_s7 + $0x90] sm:$0xf0]  ;;  %v7698_v33 = vld [vmem:[%s15366_s7 + $0x40] sm:$0xf] }
 0x262   :  { %5666 = vmatpush.bf16.msrb.mxu1 %v8451_v53  ;;  %5643 = vmatmul.bf16.vlgmr.msra.gmra.mxu3 %v12613_v39  ;;  %v2594_v15 = vpop.f32.mrf.mxu1  ;;  %v9792_v13 = vld [vmem:[%s15366_s7 + $0x58] sm:$0xf0]  ;;  %v9785_v25 = vld [vmem:[%s15366_s7 + $0x20] sm:$0xf0]  ;;  %v9855_v48 = vld [vmem:[%s15366_s7 + $0x250] sm:$0xf0] }
 0x263   :  { %5695 = vmatpush.bf16.msrb.mxu3 %v8871_v4  ;;  %v2593_v18 = vadd.f32 %v2592_v60, %v2579_v24  ;;  %v7727_v4 = vor.u32 %v9799_v57, %v7726_v21  ;;  %v9869_v24 = vld [vmem:[%s15366_s7 + $0x2c0] sm:$0xf0]  ;;  %v9036_v38 = vld [vmem:[%s15366_s7 + $0xad4] sm:$0xf0]  ;;  %v7922_v21 = vld [vmem:[%s15366_s7 + $0x200] sm:$0xf] }
 0x264   :  { %5681 = vmatpush.bf16.msrb.mxu2 %v8647_v23  ;;  %v8395_v23 = vor.u32 %v9963_v14, %v8392_v17  ;;  %v7699_v17 = vor.u32 %v9792_v13, %v7698_v33  ;;  %v9848_v57 = vld [vmem:[%s15366_s7 + $0x218] sm:$0xf0]  ;;  %v10117_v33 = vld [vmem:[%s15366_s7 + $0xa84] sm:$0xf] }
 0x265   :  { %v2659_v51 = vmax.f32 %v2593_v18, 0.0  ;;  %v9862_v18 = vld [vmem:[%s15366_s7 + $0x288] sm:$0xf0] }
 0x266   :  { %5667 = vmatpush.bf16.msrb.mxu1 %v8423_v5  ;;  %v10152_v5 = vld [vmem:[%s15366_s7 + $0xb9c] sm:$0xf] }
 0x267   :  { %5696 = vmatpush.bf16.msrb.mxu3 %v8843_v56  ;;  %v9151_v14 = vor.u32 %v10152_v5, %v9148_v55  ;;  %v10145_v56 = vld [vmem:[%s15366_s7 + $0xb64] sm:$0xf]  ;;  %v7923_v55 = vor.u32 %v9848_v57, %v7922_v21  ;;  %v8230_v57 = vld [vmem:[%s15366_s7 + $0x468] sm:$0xf] }
 0x268   :  { %5682 = vmatpush.bf16.msrb.mxu2 %v8619_v40  ;;  %v8364_v40 = vld [vmem:[%s15366_s7 + $0x594] sm:$0xf0]  ;;  %v2580_v52 = vpop.f32.mrf.mxu0  ;;  %v10201_v21 = vld [vmem:[%s15366_s7 + $0xd24] sm:$0xf] }
 0x269   :  { %v8367_v32 = vor.u32 %v9956_v19, %v8364_v40  ;;  %v2581_v62 = vadd.f32 %v2580_v52, %v2567_v63  ;;  %v10058_v63 = vld [vmem:[%s15366_s7 + $0x8a8] sm:$0xf0]  ;;  %v9123_v40 = vor.u32 %v10145_v56, %v9120_v10  ;;  %v7671_v52 = vor.u32 %v9785_v25, %v7670_v47  ;;  %v9841_v56 = vld [vmem:[%s15366_s7 + $0x1e0] sm:$0xf0]  ;;  %v8314_v10 = vld [vmem:[%s15366_s7 + $0x510] sm:$0xf] }
 0x26a   :  { %5668 = vmatpush.bf16.msrb.mxu1 %v8395_v23  ;;  %v8006_v23 = vld [vmem:[%s15366_s7 + $0x2a8] sm:$0xf]  ;;  %v9946_v47 = vld [vmem:[%s15366_s7 + $0x528] sm:$0xf0] }
 0x26b   :  { %v2595_v34 = vadd.f32 %v2594_v15, %v2581_v62  ;;  %5697 = vmatpush.bf16.msrb.mxu3 %v8815_v29  ;;  %v8007_v19 = vor.u32 %v9869_v24, %v8006_v23  ;;  %v10138_v29 = vld [vmem:[%s15366_s7 + $0xb2c] sm:$0xf]  ;;  %v9428_v25 = vld [vmem:[%s15366_s7 + $0xde4] sm:$0xf0] }
 0x26c   :  { %5683 = vmatpush.bf16.msrb.mxu2 %v8591_v42  ;;  %v7783_v42 = vor.u32 %v9813_v28, %v7782_v27  ;;  %v8762_v27 = vld [vmem:[%s15366_s7 + $0x890] sm:$0xf]  ;;  %v10222_v24 = vld [vmem:[%s15366_s7 + $0xdcc] sm:$0xf] }
 0x26d   :  { %v2667_v53 = vmax.f32 %v2595_v34, 0.0  ;;  %v8735_v34 = vor.u32 %v10051_v36, %v8734_v35  ;;  %v9939_v35 = vld [vmem:[%s15366_s7 + $0x4f0] sm:$0xf0] }
 0x26e   :  { %5669 = vmatpush.bf16.msrb.mxu1 %v8367_v32  ;;  %v7978_v32 = vld [vmem:[%s15366_s7 + $0x270] sm:$0xf] }
 0x26f   :  { %v13218_v60 = vpack.c.bf16 %v2667_v53, %v2659_v51  ;;  %5698 = vmatpush.bf16.msrb.mxu3 %v8787_v49  ;;  %v8706_v51 = vld [vmem:[%s15366_s7 + $0x820] sm:$0xf]  ;;  %v10044_v53 = vld [vmem:[%s15366_s7 + $0x838] sm:$0xf0] }
 0x270   :  { %5684 = vmatpush.bf16.msrb.mxu2 %v8563_v58  ;;  %v8091_v58 = vor.u32 %v9890_v22, %v8090_v44  ;;  %v2620_v28 = vpop.f32.mrf.mxu3  ;;  %v9095_v44 = vor.u32 %v10138_v29, %v9092_v31  ;;  %v7979_v22 = vor.u32 %v9862_v18, %v7978_v32  ;;  %v10030_v29 = vld [vmem:[%s15366_s7 + $0x7c8] sm:$0xf0]  ;;  %v9431_v32 = vor.u32 %v10222_v24, %v9428_v25  ;;  %v8874_v25 = vld [vmem:[%s15366_s7 + $0x970] sm:$0xf] }
 0x271   :  { %5601 = vmatmul.bf16.vlgmr.msra.gmra.mxu0 %v13218_v60  ;;  %v10194_v24 = vld [vmem:[%s15366_s7 + $0xcec] sm:$0xf] }
 0x272   :  { %5670 = vmatpush.bf16.msrb.mxu1 %v8339_v1  ;;  %5705 = vmatpush.bf16.msra.mxu0 %v9207_v41  ;;  %v9067_v41 = vor.u32 %v10131_v45, %v9064_v46  ;;  %v10023_v45 = vld [vmem:[%s15366_s7 + $0x790] sm:$0xf0] }
 0x273   :  { %5685 = vmatmul.bf16.vlgmr.msrb.gmra.mxu2 %v12884_v8  ;;  %5747 = vmatpush.bf16.msra.mxu3 %v8091_v58 }
 0x274   :  { %5733 = vmatpush.bf16.msra.mxu2 %v7867_v50  ;;  %v10159_v50 = vld [vmem:[%s15366_s7 + $0xbd4] sm:$0xf]  ;;  %5699 = vmatmul.bf16.vlgmr.msrb.gmra.mxu3 %v13054_v20 }
 0x275   :  { %v9179_v9 = vor.u32 %v10159_v50, %v9176_v61  ;;  %v10124_v50 = vld [vmem:[%s15366_s7 + $0xabc] sm:$0xf]  ;;  %v8707_v61 = vor.u32 %v10044_v53, %v8706_v51  ;;  %v9372_v53 = vld [vmem:[%s15366_s7 + $0xd74] sm:$0xf0] }
 0x276   :  { %v9039_v30 = vor.u32 %v10124_v50, %v9036_v38  ;;  %v10016_v50 = vld [vmem:[%s15366_s7 + $0x758] sm:$0xf0] }
 0x277   :  { %5748 = vmatpush.bf16.msra.mxu3 %v8063_v3  ;;  %5706 = vmatpush.bf16.msra.mxu0 %v9179_v9  ;;  %v8678_v9 = vld [vmem:[%s15366_s7 + $0x7e8] sm:$0xf] }
 0x278   :  { %5734 = vmatpush.bf16.msra.mxu2 %v7839_v43  ;;  %v2606_v43 = vpop.f32.mrf.mxu2  ;;  %v2622_v59 = vpop.f32.mrf.mxu3 }
 0x27a   :  { %v2648_v0 = vpop.f32.mrf.mxu1 }
 0x27b   :  { %5749 = vmatpush.bf16.msra.mxu3 %v8035_v2  ;;  %5707 = vmatpush.bf16.msra.mxu0 %v9151_v14  ;;  %v9008_v14 = vld [vmem:[%s15366_s7 + $0xa9c] sm:$0xf0] }
 0x27c   :  { %5735 = vmatpush.bf16.msra.mxu2 %v7811_v26  ;;  %v916_v26 = vperm.slane %v13096_v37, 7  ;;  %v8763_v37 = vor.u32 %v10058_v63, %v8762_v27  ;;  %v10114_v27 = vld [vmem:[%s15366_s7 + $0xa68] sm:$0xf0] }
 0x27e   :  { %v2607_v62 = vadd.f32 %v2606_v43, %v916_v26 }
 0x27f   :  { %5750 = vmatpush.bf16.msra.mxu3 %v8007_v19  ;;  %5708 = vmatpush.bf16.msra.mxu0 %v9123_v40  ;;  %v9011_v19 = vor.u32 %v10117_v33, %v9008_v14  ;;  %v9831_v33 = vld [vmem:[%s15366_s7 + $0x194] sm:$0xf] }
 0x280   :  { %5736 = vmatpush.bf16.msra.mxu2 %v7783_v42  ;;  %v2608_v15 = vpop.f32.mrf.mxu2  ;;  %v2634_v42 = vpop.f32.mrf.mxu0  ;;  %v2621_v1 = vadd.f32 %v2620_v28, %v2607_v62  ;;  %v10215_v62 = vld [vmem:[%s15366_s7 + $0xd94] sm:$0xf] }
 0x281   :  { %v2609_v49 = vadd.f32 %v2608_v15, %v916_v26  ;;  %5657 = vmatmul.bf16.vlgmr.msrb.gmra.mxu0 %v12757_v12  ;;  %v8986_v26 = vld [vmem:[%s15366_s7 + $0xa50] sm:$0xf] }
 0x282   :  { %v2635_v58 = vadd.f32 %v2634_v42, %v2621_v1  ;;  %v2650_v13 = vpop.f32.mrf.mxu1  ;;  %v8987_v18 = vor.u32 %v10114_v27, %v8986_v26  ;;  %v9400_v15 = vld [vmem:[%s15366_s7 + $0xdac] sm:$0xf0]  ;;  %v8958_v42 = vld [vmem:[%s15366_s7 + $0xa18] sm:$0xf]  ;;  %v9932_v1 = vld [vmem:[%s15366_s7 + $0x4b8] sm:$0xf0] }
 0x283   :  { %5709 = vmatpush.bf16.msra.mxu0 %v9095_v44  ;;  %5751 = vmatpush.bf16.msra.mxu3 %v7979_v22  ;;  %v2623_v3 = vadd.f32 %v2622_v59, %v2609_v49  ;;  %v10107_v44 = vld [vmem:[%s15366_s7 + $0xa30] sm:$0xf0]  ;;  %v8622_v22 = vld [vmem:[%s15366_s7 + $0x778] sm:$0xf]  ;;  %v9403_v46 = vor.u32 %v10215_v62, %v9400_v15  ;;  %v8258_v49 = vld [vmem:[%s15366_s7 + $0x4a0] sm:$0xf] }
 0x284   :  { %5737 = vmatpush.bf16.msra.mxu2 %v7755_v54  ;;  %v7951_v54 = vor.u32 %v9855_v48, %v7950_v11  ;;  %v2649_v7 = vadd.f32 %v2648_v0, %v2635_v58  ;;  %v8286_v0 = vld [vmem:[%s15366_s7 + $0x4d8] sm:$0xf]  ;;  %v8959_v11 = vor.u32 %v10107_v44, %v8958_v42  ;;  %v10208_v48 = vld [vmem:[%s15366_s7 + $0xd5c] sm:$0xf]  ;;  %v8623_v51 = vor.u32 %v10023_v45, %v8622_v22  ;;  %v8930_v58 = vld [vmem:[%s15366_s7 + $0x9e0] sm:$0xf] }
 0x285   :  { %v8259_v38 = vor.u32 %v9932_v1, %v8258_v49  ;;  %v9375_v59 = vor.u32 %v10208_v48, %v9372_v53  ;;  %v10086_v26 = vld [vmem:[%s15366_s7 + $0x988] sm:$0xf0]  ;;  %v8846_v62 = vld [vmem:[%s15366_s7 + $0x938] sm:$0xf]  ;;  %v7812_v15 = vld [vmem:[%s15366_s7 + $0x13c] sm:$0xf0] }
 0x286   :  { %v2660_v63 = vmax.f32 %v2649_v7, 0.0  ;;  %v8566_v7 = vld [vmem:[%s15366_s7 + $0x708] sm:$0xf]  ;;  %v8146_v44 = vld [vmem:[%s15366_s7 + $0x3c0] sm:$0xf] }
 0x287   :  { %5710 = vmatpush.bf16.msra.mxu0 %v9067_v41  ;;  %5752 = vmatpush.bf16.msra.mxu3 %v7951_v54  ;;  %v10100_v41 = vld [vmem:[%s15366_s7 + $0x9f8] sm:$0xf0]  ;;  %v8594_v54 = vld [vmem:[%s15366_s7 + $0x740] sm:$0xf]  ;;  %v9810_v1 = vld [vmem:[%s15366_s7 + $0xec] sm:$0xf] }
 0x288   :  { %5738 = vmatpush.bf16.msra.mxu2 %v7727_v4  ;;  %v10037_v4 = vld [vmem:[%s15366_s7 + $0x800] sm:$0xf0]  ;;  %v2636_v5 = vpop.f32.mrf.mxu0  ;;  %v9904_v22 = vld [vmem:[%s15366_s7 + $0x3d8] sm:$0xf0]  ;;  %v8818_v48 = vld [vmem:[%s15366_s7 + $0x900] sm:$0xf] }
 0x289   :  { %v2637_v43 = vadd.f32 %v2636_v5, %v2623_v3  ;;  %v8679_v2 = vor.u32 %v10037_v4, %v8678_v9  ;;  %v9925_v3 = vld [vmem:[%s15366_s7 + $0x480] sm:$0xf0]  ;;  %v8595_v9 = vor.u32 %v10016_v50, %v8594_v54  ;;  %v9344_v4 = vld [vmem:[%s15366_s7 + $0xd3c] sm:$0xf0]  ;;  %v8902_v5 = vld [vmem:[%s15366_s7 + $0x9a8] sm:$0xf] }
 0x28a   :  { %v10072_v49 = vld [vmem:[%s15366_s7 + $0x918] sm:$0xf0]  ;;  %v7784_v53 = vld [vmem:[%s15366_s7 + $0x104] sm:$0xf0] }
 0x28b   :  { %v2651_v23 = vadd.f32 %v2650_v13, %v2637_v43  ;;  %5711 = vmatpush.bf16.msra.mxu0 %v9039_v30  ;;  %5753 = vmatpush.bf16.msra.mxu3 %v7923_v55  ;;  %v10093_v30 = vld [vmem:[%s15366_s7 + $0x9c0] sm:$0xf0]  ;;  %v8231_v55 = vor.u32 %v9925_v3, %v8230_v57  ;;  %v7868_v13 = vld [vmem:[%s15366_s7 + $0x1ac] sm:$0xf0]  ;;  %v8118_v50 = vld [vmem:[%s15366_s7 + $0x388] sm:$0xf] }
 0x28c   :  { %5739 = vmatpush.bf16.msra.mxu2 %v7699_v17  ;;  %v7894_v17 = vld [vmem:[%s15366_s7 + $0x1c8] sm:$0xf]  ;;  %v10009_v43 = vld [vmem:[%s15366_s7 + $0x720] sm:$0xf0]  ;;  %v8903_v14 = vor.u32 %v10093_v30, %v8902_v5  ;;  %v9210_v57 = vld [vmem:[%s15366_s7 + $0xc10] sm:$0xf] }
 0x28d   :  { %v2668_v28 = vmax.f32 %v2651_v23, 0.0  ;;  %v7895_v40 = vor.u32 %v9841_v56, %v7894_v17  ;;  %v8202_v17 = vld [vmem:[%s15366_s7 + $0x430] sm:$0xf]  ;;  %v9918_v56 = vld [vmem:[%s15366_s7 + $0x448] sm:$0xf0]  ;;  %v8567_v23 = vor.u32 %v10009_v43, %v8566_v7 }
 0x28e   :  { %v8203_v27 = vor.u32 %v9918_v56, %v8202_v17  ;;  %v10170_v3 = vld [vmem:[%s15366_s7 + $0xc28] sm:$0xf0]  ;;  %v9887_v30 = vld [vmem:[%s15366_s7 + $0x354] sm:$0xf]  ;;  %v8092_v43 = vld [vmem:[%s15366_s7 + $0x36c] sm:$0xf0] }
 0x28f   :  { %v13366_v31 = vpack.c.bf16 %v2668_v28, %v2660_v63  ;;  %5712 = vmatpush.bf16.msra.mxu0 %v9011_v19  ;;  %5754 = vmatpush.bf16.msra.mxu3 %v7895_v40  ;;  %v9824_v63 = vld [vmem:[%s15366_s7 + $0x15c] sm:$0xf]  ;;  %v7840_v28 = vld [vmem:[%s15366_s7 + $0x174] sm:$0xf0]  ;;  %v10002_v5 = vld [vmem:[%s15366_s7 + $0x6e8] sm:$0xf0] }
 0x290   :  { %5740 = vmatpush.bf16.msra.mxu2 %v7671_v52  ;;  %v8650_v52 = vld [vmem:[%s15366_s7 + $0x7b0] sm:$0xf]  ;;  %v8174_v40 = vld [vmem:[%s15366_s7 + $0x3f8] sm:$0xf] }
 0x291   :  { %v8651_v36 = vor.u32 %v10030_v29, %v8650_v52  ;;  %5615 = vmatmul.bf16.vlgmr.msra.gmra.mxu1 %v13366_v31  ;;  %v9911_v52 = vld [vmem:[%s15366_s7 + $0x410] sm:$0xf0]  ;;  %v8875_v29 = vor.u32 %v10086_v26, %v8874_v25  ;;  %v9182_v56 = vld [vmem:[%s15366_s7 + $0xbd8] sm:$0xf]  ;;  %v9880_v26 = vld [vmem:[%s15366_s7 + $0x31c] sm:$0xf] }
 0x292   :  { %5719 = vmatpush.bf16.msra.mxu1 %v9431_v32  ;;  %5755 = vmatmul.bf16.vlgmr.msra.gmra.mxu3 %v12613_v39  ;;  %v9288_v32 = vld [vmem:[%s15366_s7 + $0xccc] sm:$0xf0]  ;;  %v9995_v25 = vld [vmem:[%s15366_s7 + $0x6b0] sm:$0xf0] }
 0x293   :  { %5741 = vmatmul.bf16.vlgmr.msra.gmra.mxu2 %v12657_v6  ;;  %5803 = vmatpush.bf16.msrb.mxu3 %v8987_v18  ;;  %v7843_v18 = vor.u32 %v9824_v63, %v7840_v28  ;;  %v9796_v63 = vld [vmem:[%s15366_s7 + $0x7c] sm:$0xf]  ;;  %v7728_v28 = vld [vmem:[%s15366_s7 + $0x94] sm:$0xf0] }
 0x294   :  { %5789 = vmatpush.bf16.msrb.mxu2 %v8763_v37  ;;  %v8315_v37 = vor.u32 %v9946_v47, %v8314_v10  ;;  %5713 = vmatmul.bf16.vlgmr.msra.gmra.mxu0 %v13218_v60  ;;  %v9316_v10 = vld [vmem:[%s15366_s7 + $0xd04] sm:$0xf0]  ;;  %v7871_v47 = vor.u32 %v9831_v33, %v7868_v13  ;;  %v7756_v33 = vld [vmem:[%s15366_s7 + $0xcc] sm:$0xf0] }
 0x295   :  { %v9319_v19 = vor.u32 %v10194_v24, %v9316_v10  ;;  %v8095_v24 = vor.u32 %v9887_v30, %v8092_v43  ;;  %v8736_v43 = vld [vmem:[%s15366_s7 + $0x874] sm:$0xf0] }
 0x296   :  { %5761 = vmatpush.bf16.msrb.mxu0 %v8315_v37  ;;  %5720 = vmatpush.bf16.msra.mxu1 %v9403_v46  ;;  %v10187_v37 = vld [vmem:[%s15366_s7 + $0xcb4] sm:$0xf]  ;;  %v9260_v46 = vld [vmem:[%s15366_s7 + $0xc94] sm:$0xf0] }
 0x297   :  { %5804 = vmatpush.bf16.msrb.mxu3 %v8959_v11  ;;  %v9291_v42 = vor.u32 %v10187_v37, %v9288_v32  ;;  %v7731_v32 = vor.u32 %v9796_v63, %v7728_v28  ;;  %v10128_v63 = vld [vmem:[%s15366_s7 + $0xad8] sm:$0xf0] }
 0x298   :  { %5790 = vmatpush.bf16.msrb.mxu2 %v8735_v34  ;;  %v8287_v34 = vor.u32 %v9939_v35, %v8286_v0  ;;  %v10079_v0 = vld [vmem:[%s15366_s7 + $0x950] sm:$0xf0]  ;;  %v8175_v35 = vor.u32 %v9911_v52, %v8174_v40  ;;  %v9154_v52 = vld [vmem:[%s15366_s7 + $0xba0] sm:$0xf] }
 0x299   :  { %v8847_v45 = vor.u32 %v10079_v0, %v8846_v62  ;;  %v9988_v62 = vld [vmem:[%s15366_s7 + $0x678] sm:$0xf0]  ;;  %v9873_v0 = vld [vmem:[%s15366_s7 + $0x2e4] sm:$0xf] }
 0x29a   :  { %5762 = vmatpush.bf16.msrb.mxu0 %v8287_v34  ;;  %5721 = vmatpush.bf16.msra.mxu1 %v9375_v59  ;;  %v10180_v34 = vld [vmem:[%s15366_s7 + $0xc7c] sm:$0xf]  ;;  %v8790_v59 = vld [vmem:[%s15366_s7 + $0x8c8] sm:$0xf] }
 0x29b   :  { %v9263_v54 = vor.u32 %v10180_v34, %v9260_v46 }
 0x29c   :  { %5791 = vmatpush.bf16.msrb.mxu2 %v8707_v61  ;;  %v8931_v61 = vor.u32 %v10100_v41, %v8930_v58  ;;  %v10173_v58 = vld [vmem:[%s15366_s7 + $0xc44] sm:$0xf]  ;;  %v9232_v41 = vld [vmem:[%s15366_s7 + $0xc5c] sm:$0xf0] }
 0x29d   :  { %v9235_v13 = vor.u32 %v10173_v58, %v9232_v41  ;;  %v10055_v41 = vld [vmem:[%s15366_s7 + $0x894] sm:$0xf] }
 0x29e   :  { %5763 = vmatpush.bf16.msrb.mxu0 %v8259_v38  ;;  %5805 = vmatpush.bf16.msrb.mxu3 %v8931_v61  ;;  %v9897_v38 = vld [vmem:[%s15366_s7 + $0x3a0] sm:$0xf0]  ;;  %v8819_v61 = vor.u32 %v10072_v49, %v8818_v48  ;;  %v9866_v49 = vld [vmem:[%s15366_s7 + $0x2ac] sm:$0xf] }
 0x29f   :  { %v8119_v7 = vor.u32 %v9897_v38, %v8118_v50  ;;  %v9981_v48 = vld [vmem:[%s15366_s7 + $0x640] sm:$0xf0]  ;;  %v9098_v38 = vld [vmem:[%s15366_s7 + $0xb30] sm:$0xf] }
 0x2a0   :  { %5792 = vmatpush.bf16.msrb.mxu2 %v8679_v2  ;;  %v9347_v2 = vor.u32 %v10201_v21, %v9344_v4  ;;  %v10065_v21 = vld [vmem:[%s15366_s7 + $0x8e0] sm:$0xf0]  ;;  %v8538_v4 = vld [vmem:[%s15366_s7 + $0x6d0] sm:$0xf] }
 0x2a1   :  { %5671 = vmatmul.bf16.vlgmr.msrb.gmra.mxu1 %v12736_v16  ;;  %v8539_v17 = vor.u32 %v10002_v5, %v8538_v4  ;;  %v9859_v4 = vld [vmem:[%s15366_s7 + $0x274] sm:$0xf]  ;;  %v7980_v5 = vld [vmem:[%s15366_s7 + $0x28c] sm:$0xf0] }
 0x2a2   :  { %5764 = vmatpush.bf16.msrb.mxu0 %v8231_v55  ;;  %5722 = vmatpush.bf16.msra.mxu1 %v9347_v2  ;;  %v9803_v55 = vld [vmem:[%s15366_s7 + $0xb4] sm:$0xf]  ;;  %v9211_v2 = vor.u32 %v10170_v3, %v9210_v57  ;;  %v8426_v57 = vld [vmem:[%s15366_s7 + $0x5f0] sm:$0xf]  ;;  %v9974_v3 = vld [vmem:[%s15366_s7 + $0x608] sm:$0xf0] }
 0x2a3   :  { %5806 = vmatpush.bf16.msrb.mxu3 %v8903_v14  ;;  %v8791_v14 = vor.u32 %v10065_v21, %v8790_v59  ;;  %v7759_v10 = vor.u32 %v9803_v55, %v7756_v33  ;;  %v10142_v59 = vld [vmem:[%s15366_s7 + $0xb48] sm:$0xf0]  ;;  %v8427_v55 = vor.u32 %v9974_v3, %v8426_v57  ;;  %v9070_v33 = vld [vmem:[%s15366_s7 + $0xaf8] sm:$0xf] }
 0x2a4   :  { %5793 = vmatpush.bf16.msrb.mxu2 %v8651_v36  ;;  %v9817_v36 = vld [vmem:[%s15366_s7 + $0x124] sm:$0xf]  ;;  %v9099_v30 = vor.u32 %v10142_v59, %v9098_v38 }
 0x2a5   :  { %v7815_v11 = vor.u32 %v9817_v36, %v7812_v15  ;;  %v9789_v36 = vld [vmem:[%s15366_s7 + $0x44] sm:$0xf]  ;;  %v7700_v15 = vld [vmem:[%s15366_s7 + $0x5c] sm:$0xf0] }
 0x2a6   :  { %5765 = vmatpush.bf16.msrb.mxu0 %v8203_v27  ;;  %5723 = vmatpush.bf16.msra.mxu1 %v9319_v19  ;;  %v8064_v27 = vld [vmem:[%s15366_s7 + $0x334] sm:$0xf0]  ;;  %v7703_v46 = vor.u32 %v9789_v36, %v7700_v15  ;;  %v9014_v15 = vld [vmem:[%s15366_s7 + $0xa88] sm:$0xf] }
 0x2a7   :  { %5807 = vmatpush.bf16.msrb.mxu3 %v8875_v29  ;;  %v10156_v29 = vld [vmem:[%s15366_s7 + $0xbb8] sm:$0xf0]  ;;  %v8067_v37 = vor.u32 %v9880_v26, %v8064_v27  ;;  %v9042_v27 = vld [vmem:[%s15366_s7 + $0xac0] sm:$0xf] }
 0x2a8   :  { %5794 = vmatpush.bf16.msrb.mxu2 %v8623_v51  ;;  %v8147_v51 = vor.u32 %v9904_v22, %v8146_v44  ;;  %v9126_v22 = vld [vmem:[%s15366_s7 + $0xb68] sm:$0xf] }
 0x2aa   :  { %5766 = vmatpush.bf16.msrb.mxu0 %v8175_v35  ;;  %5724 = vmatpush.bf16.msra.mxu1 %v9291_v42  ;;  %v8036_v35 = vld [vmem:[%s15366_s7 + $0x2fc] sm:$0xf0]  ;;  %v9155_v42 = vor.u32 %v10156_v29, %v9154_v52  ;;  %v9845_v29 = vld [vmem:[%s15366_s7 + $0x204] sm:$0xf] }
 0x2ab   :  { %5808 = vmatpush.bf16.msrb.mxu3 %v8847_v45  ;;  %v10149_v45 = vld [vmem:[%s15366_s7 + $0xb80] sm:$0xf0]  ;;  %v8039_v34 = vor.u32 %v9873_v0, %v8036_v35  ;;  %v8342_v0 = vld [vmem:[%s15366_s7 + $0x548] sm:$0xf] }
 0x2ac   :  { %5795 = vmatpush.bf16.msrb.mxu2 %v8595_v9  ;;  %v7787_v9 = vor.u32 %v9810_v1, %v7784_v53  ;;  %v8008_v1 = vld [vmem:[%s15366_s7 + $0x2c4] sm:$0xf0]  ;;  %v9127_v58 = vor.u32 %v10149_v45, %v9126_v22  ;;  %v9953_v35 = vld [vmem:[%s15366_s7 + $0x560] sm:$0xf0] }
 0x2ad   :  { %v7672_v53 = vld [vmem:[%s15366_s7 + $0x24] sm:$0xf0] }
 0x2ae   :  { %5767 = vmatpush.bf16.msrb.mxu0 %v8147_v51  ;;  %5725 = vmatpush.bf16.msra.mxu1 %v9263_v54  ;;  %v9782_v51 = vld [vmem:[%s15366_s7 + $0xc] sm:$0xf]  ;;  %v8764_v54 = vld [vmem:[%s15366_s7 + $0x8ac] sm:$0xf0]  ;;  %v7896_v45 = vld [vmem:[%s15366_s7 + $0x1e4] sm:$0xf0] }
 0x2af   :  { %5809 = vmatpush.bf16.msrb.mxu3 %v8819_v61  ;;  %v8011_v61 = vor.u32 %v9866_v49, %v8008_v1  ;;  %v7675_v21 = vor.u32 %v9782_v51, %v7672_v53  ;;  %v10226_v49 = vld [vmem:[%s15366_s7 + $0xde8] sm:$0xf0]  ;;  %v10111_v1 = vld [vmem:[%s15366_s7 + $0xa54] sm:$0xf]  ;;  %v8988_v53 = vld [vmem:[%s15366_s7 + $0xa6c] sm:$0xf0] }
 0x2b0   :  { %5796 = vmatpush.bf16.msrb.mxu2 %v8567_v23  ;;  %v10163_v23 = vld [vmem:[%s15366_s7 + $0xbf0] sm:$0xf0]  ;;  %v8991_v57 = vor.u32 %v10111_v1, %v8988_v53  ;;  %v9828_v53 = vld [vmem:[%s15366_s7 + $0x178] sm:$0xf0] }
 0x2b1   :  { %v9183_v19 = vor.u32 %v10163_v23, %v9182_v56  ;;  %v9852_v23 = vld [vmem:[%s15366_s7 + $0x23c] sm:$0xf] }
 0x2b2   :  { %5768 = vmatpush.bf16.msrb.mxu0 %v8119_v7  ;;  %5726 = vmatpush.bf16.msra.mxu1 %v9235_v13  ;;  %v10048_v7 = vld [vmem:[%s15366_s7 + $0x85c] sm:$0xf]  ;;  %v10135_v13 = vld [vmem:[%s15366_s7 + $0xb10] sm:$0xf0] }
 0x2b3   :  { %5797 = vmatmul.bf16.vlgmr.msrb.gmra.mxu2 %v12884_v8  ;;  %5810 = vmatpush.bf16.msrb.mxu3 %v8791_v14  ;;  %v8398_v14 = vld [vmem:[%s15366_s7 + $0x5b8] sm:$0xf]  ;;  %v8739_v56 = vor.u32 %v10048_v7, %v8736_v43  ;;  %v10020_v7 = vld [vmem:[%s15366_s7 + $0x77c] sm:$0xf] }
 0x2b4   :  { %5845 = vmatpush.bf16.msra.mxu2 %v7871_v47  ;;  %v8510_v47 = vld [vmem:[%s15366_s7 + $0x698] sm:$0xf] }
 0x2b5   :  { %v8511_v40 = vor.u32 %v9995_v25, %v8510_v47  ;;  %5769 = vmatmul.bf16.vlgmr.msrb.gmra.mxu0 %v12757_v12  ;;  %5727 = vmatmul.bf16.vlgmr.msra.gmra.mxu1 %v13366_v31  ;;  %v10041_v47 = vld [vmem:[%s15366_s7 + $0x824] sm:$0xf]  ;;  %v8708_v25 = vld [vmem:[%s15366_s7 + $0x83c] sm:$0xf0]  ;;  %v8624_v43 = vld [vmem:[%s15366_s7 + $0x794] sm:$0xf0] }
 0x2b6   :  { %5817 = vmatpush.bf16.msra.mxu0 %v9211_v2  ;;  %5775 = vmatpush.bf16.msrb.mxu1 %v8539_v17  ;;  %v7983_v2 = vor.u32 %v9859_v4, %v7980_v5  ;;  %v9967_v17 = vld [vmem:[%s15366_s7 + $0x5d0] sm:$0xf0]  ;;  %v8711_v52 = vor.u32 %v10041_v47, %v8708_v25  ;;  %v10104_v5 = vld [vmem:[%s15366_s7 + $0xa1c] sm:$0xf]  ;;  %v10013_v47 = vld [vmem:[%s15366_s7 + $0x744] sm:$0xf] }
 0x2b7   :  { %5859 = vmatpush.bf16.msra.mxu3 %v8095_v24  ;;  %v7952_v24 = vld [vmem:[%s15366_s7 + $0x254] sm:$0xf0]  ;;  %v8399_v26 = vor.u32 %v9967_v17, %v8398_v14  ;;  %v10219_v4 = vld [vmem:[%s15366_s7 + $0xdb0] sm:$0xf0]  ;;  %v8627_v17 = vor.u32 %v10020_v7, %v8624_v43  ;;  %v8596_v25 = vld [vmem:[%s15366_s7 + $0x75c] sm:$0xf0] }
 0x2b8   :  { %5846 = vmatpush.bf16.msra.mxu2 %v7843_v18  ;;  %v8482_v18 = vld [vmem:[%s15366_s7 + $0x660] sm:$0xf]  ;;  %5811 = vmatmul.bf16.vlgmr.msrb.gmra.mxu3 %v13054_v20  ;;  %v7955_v28 = vor.u32 %v9852_v23, %v7952_v24  ;;  %v10212_v23 = vld [vmem:[%s15366_s7 + $0xd78] sm:$0xf0]  ;;  %v10097_v24 = vld [vmem:[%s15366_s7 + $0x9e4] sm:$0xf] }
 0x2b9   :  { %v8483_v44 = vor.u32 %v9988_v62, %v8482_v18  ;;  %v9043_v18 = vor.u32 %v10128_v63, %v9042_v27  ;;  %v8680_v62 = vld [vmem:[%s15366_s7 + $0x804] sm:$0xf0]  ;;  %v9922_v63 = vld [vmem:[%s15366_s7 + $0x46c] sm:$0xf]  ;;  %v8148_v7 = vld [vmem:[%s15366_s7 + $0x3dc] sm:$0xf0] }
 0x2ba   :  { %5818 = vmatpush.bf16.msra.mxu0 %v9183_v19  ;;  %5776 = vmatpush.bf16.msrb.mxu1 %v8511_v40  ;;  %v8370_v19 = vld [vmem:[%s15366_s7 + $0x580] sm:$0xf]  ;;  %v9960_v40 = vld [vmem:[%s15366_s7 + $0x598] sm:$0xf0] }
 0x2bb   :  { %5860 = vmatpush.bf16.msra.mxu3 %v8067_v37  ;;  %v7924_v37 = vld [vmem:[%s15366_s7 + $0x21c] sm:$0xf0]  ;;  %v8371_v36 = vor.u32 %v9960_v40, %v8370_v19  ;;  %v8599_v40 = vor.u32 %v10013_v47, %v8596_v25  ;;  %v9894_v25 = vld [vmem:[%s15366_s7 + $0x38c] sm:$0xf] }
 0x2bc   :  { %5847 = vmatpush.bf16.msra.mxu2 %v7815_v11  ;;  %v8454_v11 = vld [vmem:[%s15366_s7 + $0x628] sm:$0xf]  ;;  %v7927_v22 = vor.u32 %v9845_v29, %v7924_v37  ;;  %v10205_v29 = vld [vmem:[%s15366_s7 + $0xd40] sm:$0xf0]  ;;  %v10090_v37 = vld [vmem:[%s15366_s7 + $0x9ac] sm:$0xf] }
 0x2bd   :  { %v8455_v50 = vor.u32 %v9981_v48, %v8454_v11  ;;  %v9434_v48 = vld [vmem:[%s15366_s7 + $0xdd0] sm:$0xf] }
 0x2be   :  { %5819 = vmatpush.bf16.msra.mxu0 %v9155_v42  ;;  %5777 = vmatpush.bf16.msrb.mxu1 %v8483_v44  ;;  %v10121_v42 = vld [vmem:[%s15366_s7 + $0xaa0] sm:$0xf0]  ;;  %v9838_v44 = vld [vmem:[%s15366_s7 + $0x1cc] sm:$0xf]  ;;  %v9435_v59 = vor.u32 %v10226_v49, %v9434_v48  ;;  %v10083_v48 = vld [vmem:[%s15366_s7 + $0x974] sm:$0xf] }
 0x2bf   :  { %5861 = vmatpush.bf16.msra.mxu3 %v8039_v34  ;;  %v9943_v34 = vld [vmem:[%s15366_s7 + $0x514] sm:$0xf]  ;;  %v9015_v51 = vor.u32 %v10121_v42, %v9014_v15  ;;  %v7899_v38 = vor.u32 %v9838_v44, %v7896_v45  ;;  %v8204_v44 = vld [vmem:[%s15366_s7 + $0x44c] sm:$0xf0] }
 0x2c0   :  { %5848 = vmatpush.bf16.msra.mxu2 %v7787_v9  ;;  %v8767_v9 = vor.u32 %v10055_v41, %v8764_v54  ;;  %v8652_v41 = vld [vmem:[%s15366_s7 + $0x7cc] sm:$0xf0]  ;;  %v8343_v54 = vor.u32 %v9953_v35, %v8342_v0  ;;  %v7874_v35 = vld [vmem:[%s15366_s7 + $0x198] sm:$0xf]  ;;  %v9915_v42 = vld [vmem:[%s15366_s7 + $0x434] sm:$0xf] }
 0x2c1   :  { %v8876_v49 = vld [vmem:[%s15366_s7 + $0x98c] sm:$0xf0]  ;;  %v8207_v1 = vor.u32 %v9915_v42, %v8204_v44 }
 0x2c2   :  { %5820 = vmatpush.bf16.msra.mxu0 %v9127_v58  ;;  %5778 = vmatpush.bf16.msrb.mxu1 %v8455_v50  ;;  %v10027_v58 = vld [vmem:[%s15366_s7 + $0x7b4] sm:$0xf] }
 0x2c3   :  { %5862 = vmatpush.bf16.msra.mxu3 %v8011_v61  ;;  %v9936_v61 = vld [vmem:[%s15366_s7 + $0x4dc] sm:$0xf]  ;;  %v8655_v3 = vor.u32 %v10027_v58, %v8652_v41 }
 0x2c4   :  { %5849 = vmatpush.bf16.msra.mxu2 %v7759_v10  ;;  %v9071_v10 = vor.u32 %v10135_v13, %v9070_v33  ;;  %v9929_v13 = vld [vmem:[%s15366_s7 + $0x4a4] sm:$0xf]  ;;  %v9908_v41 = vld [vmem:[%s15366_s7 + $0x3fc] sm:$0xf] }
 0x2c6   :  { %5821 = vmatpush.bf16.msra.mxu0 %v9099_v30  ;;  %5779 = vmatpush.bf16.msrb.mxu1 %v8427_v55  ;;  %v8960_v30 = vld [vmem:[%s15366_s7 + $0xa34] sm:$0xf0] }
 0x2c7   :  { %5863 = vmatpush.bf16.msra.mxu3 %v7983_v2  ;;  %v8260_v2 = vld [vmem:[%s15366_s7 + $0x4bc] sm:$0xf0]  ;;  %v8963_v14 = vor.u32 %v10104_v5, %v8960_v30  ;;  %v9901_v30 = vld [vmem:[%s15366_s7 + $0x3c4] sm:$0xf] }
 0x2c8   :  { %5850 = vmatpush.bf16.msra.mxu2 %v7731_v32  ;;  %v10034_v32 = vld [vmem:[%s15366_s7 + $0x7ec] sm:$0xf] }
 0x2c9   :  { %v8683_v11 = vor.u32 %v10034_v32, %v8680_v62  ;;  %v8904_v32 = vld [vmem:[%s15366_s7 + $0x9c4] sm:$0xf0] }
 0x2ca   :  { %5822 = vmatpush.bf16.msra.mxu0 %v9071_v10  ;;  %5780 = vmatpush.bf16.msrb.mxu1 %v8399_v26  ;;  %v8932_v10 = vld [vmem:[%s15366_s7 + $0x9fc] sm:$0xf0]  ;;  %v8263_v26 = vor.u32 %v9929_v13, %v8260_v2  ;;  %v8568_v62 = vld [vmem:[%s15366_s7 + $0x724] sm:$0xf0]  ;;  %v10069_v2 = vld [vmem:[%s15366_s7 + $0x904] sm:$0xf] }
 0x2cb   :  { %5864 = vmatpush.bf16.msra.mxu3 %v7955_v28  ;;  %v8232_v28 = vld [vmem:[%s15366_s7 + $0x484] sm:$0xf0]  ;;  %v8935_v19 = vor.u32 %v10097_v24, %v8932_v10  ;;  %v10177_v10 = vld [vmem:[%s15366_s7 + $0xc60] sm:$0xf0] }
 0x2cc   :  { %5851 = vmatpush.bf16.msra.mxu2 %v7703_v46  ;;  %v8316_v46 = vld [vmem:[%s15366_s7 + $0x52c] sm:$0xf0]  ;;  %v8235_v0 = vor.u32 %v9922_v63, %v8232_v28  ;;  %v9238_v24 = vld [vmem:[%s15366_s7 + $0xc48] sm:$0xf] }
 0x2cd   :  { %v8319_v50 = vor.u32 %v9943_v34, %v8316_v46  ;;  %v9322_v34 = vld [vmem:[%s15366_s7 + $0xcf0] sm:$0xf]  ;;  %v10198_v46 = vld [vmem:[%s15366_s7 + $0xd08] sm:$0xf0]  ;;  %v8792_v28 = vld [vmem:[%s15366_s7 + $0x8e4] sm:$0xf0] }
 0x2ce   :  { %5823 = vmatpush.bf16.msra.mxu0 %v9043_v18  ;;  %5781 = vmatpush.bf16.msrb.mxu1 %v8371_v36  ;;  %v10006_v18 = vld [vmem:[%s15366_s7 + $0x70c] sm:$0xf]  ;;  %v9835_v36 = vld [vmem:[%s15366_s7 + $0x1b0] sm:$0xf0]  ;;  %v9323_v58 = vor.u32 %v10198_v46, %v9322_v34 }
 0x2cf   :  { %5865 = vmatpush.bf16.msra.mxu3 %v7927_v22  ;;  %v8907_v22 = vor.u32 %v10090_v37, %v8904_v32  ;;  %v8571_v45 = vor.u32 %v10006_v18, %v8568_v62  ;;  %v8540_v37 = vld [vmem:[%s15366_s7 + $0x6ec] sm:$0xf0]  ;;  %v8098_v32 = vld [vmem:[%s15366_s7 + $0x358] sm:$0xf]  ;;  %v9891_v62 = vld [vmem:[%s15366_s7 + $0x370] sm:$0xf0] }
 0x2d0   :  { %5852 = vmatpush.bf16.msra.mxu2 %v7675_v21  ;;  %v8288_v21 = vld [vmem:[%s15366_s7 + $0x4f4] sm:$0xf0]  ;;  %v8099_v34 = vor.u32 %v9891_v62, %v8098_v32  ;;  %v9863_v62 = vld [vmem:[%s15366_s7 + $0x290] sm:$0xf0] }
 0x2d1   :  { %v8291_v55 = vor.u32 %v9936_v61, %v8288_v21  ;;  %v10076_v21 = vld [vmem:[%s15366_s7 + $0x93c] sm:$0xf] }
 0x2d2   :  { %5824 = vmatpush.bf16.msra.mxu0 %v9015_v51  ;;  %5782 = vmatpush.bf16.msrb.mxu1 %v8343_v54  ;;  %v7846_v51 = vld [vmem:[%s15366_s7 + $0x160] sm:$0xf]  ;;  %v8176_v54 = vld [vmem:[%s15366_s7 + $0x414] sm:$0xf0] }
 0x2d3   :  { %5853 = vmatmul.bf16.vlgmr.msra.gmra.mxu2 %v12657_v6  ;;  %5866 = vmatpush.bf16.msra.mxu3 %v7899_v38  ;;  %v9294_v38 = vld [vmem:[%s15366_s7 + $0xcb8] sm:$0xf]  ;;  %v7847_v61 = vor.u32 %v9828_v53, %v7846_v51  ;;  %v7734_v51 = vld [vmem:[%s15366_s7 + $0x80] sm:$0xf]  ;;  %v9800_v53 = vld [vmem:[%s15366_s7 + $0x98] sm:$0xf0] }
 0x2d4   :  { %5901 = vmatpush.bf16.msrb.mxu2 %v8767_v9  ;;  %v9406_v9 = vld [vmem:[%s15366_s7 + $0xd98] sm:$0xf] }
 0x2d5   :  { %v9407_v33 = vor.u32 %v10219_v4, %v9406_v9  ;;  %5783 = vmatmul.bf16.vlgmr.msrb.gmra.mxu1 %v12736_v16  ;;  %5825 = vmatmul.bf16.vlgmr.msra.gmra.mxu0 %v13218_v60  ;;  %v7818_v9 = vld [vmem:[%s15366_s7 + $0x128] sm:$0xf]  ;;  %v9821_v4 = vld [vmem:[%s15366_s7 + $0x140] sm:$0xf0] }
 0x2d6   :  { %5873 = vmatpush.bf16.msrb.mxu0 %v8319_v50  ;;  %5831 = vmatpush.bf16.msra.mxu1 %v9435_v59  ;;  %v8879_v50 = vor.u32 %v10083_v48, %v8876_v49  ;;  %v10191_v59 = vld [vmem:[%s15366_s7 + $0xcd0] sm:$0xf0]  ;;  %v7819_v13 = vor.u32 %v9821_v4, %v7818_v9  ;;  %v8512_v48 = vld [vmem:[%s15366_s7 + $0x6b4] sm:$0xf0]  ;;  %v8070_v49 = vld [vmem:[%s15366_s7 + $0x320] sm:$0xf] }
 0x2d7   :  { %5915 = vmatpush.bf16.msrb.mxu3 %v8991_v57  ;;  %v8848_v57 = vld [vmem:[%s15366_s7 + $0x954] sm:$0xf0]  ;;  %v9295_v5 = vor.u32 %v10191_v59, %v9294_v38  ;;  %v13987_v38 = vpop.f32.mrf.mxu2  ;;  %v9877_v9 = vld [vmem:[%s15366_s7 + $0x300] sm:$0xf0]  ;;  %v7706_v4 = vld [vmem:[%s15366_s7 + $0x48] sm:$0xf] }
 0x2d8   :  { %5902 = vmatpush.bf16.msrb.mxu2 %v8739_v56  ;;  %v9378_v56 = vld [vmem:[%s15366_s7 + $0xd60] sm:$0xf]  ;;  %5867 = vmatmul.bf16.vlgmr.msra.gmra.mxu3 %v12613_v39  ;;  %v8851_v43 = vor.u32 %v10076_v21, %v8848_v57  ;;  %v9985_v21 = vld [vmem:[%s15366_s7 + $0x664] sm:$0xf] }
 0x2d9   :  { %v9379_v27 = vor.u32 %v10212_v23, %v9378_v56  ;;  %v8151_v56 = vor.u32 %v9901_v30, %v8148_v7  ;;  %v9814_v23 = vld [vmem:[%s15366_s7 + $0x108] sm:$0xf0]  ;;  %v8484_v57 = vld [vmem:[%s15366_s7 + $0x67c] sm:$0xf0]  ;;  %v14009_v30 = vpop.f32.mrf.mxu3 }
 0x2da   :  { %5874 = vmatpush.bf16.msrb.mxu0 %v8291_v55  ;;  %5832 = vmatpush.bf16.msra.mxu1 %v9407_v33  ;;  %v9266_v55 = vld [vmem:[%s15366_s7 + $0xc80] sm:$0xf]  ;;  %v10184_v33 = vld [vmem:[%s15366_s7 + $0xc98] sm:$0xf0] }
 0x2db   :  { %5916 = vmatpush.bf16.msrb.mxu3 %v8963_v14  ;;  %v8820_v14 = vld [vmem:[%s15366_s7 + $0x91c] sm:$0xf0]  ;;  %v9267_v47 = vor.u32 %v10184_v33, %v9266_v55  ;;  %v10146_v55 = vld [vmem:[%s15366_s7 + $0xb6c] sm:$0xf]  ;;  %v9128_v33 = vld [vmem:[%s15366_s7 + $0xb84] sm:$0xf0] }
 0x2dc   :  { %5903 = vmatpush.bf16.msrb.mxu2 %v8711_v52  ;;  %v9350_v52 = vld [vmem:[%s15366_s7 + $0xd28] sm:$0xf]  ;;  %v8823_v63 = vor.u32 %v10069_v2, %v8820_v14  ;;  %v9978_v14 = vld [vmem:[%s15366_s7 + $0x62c] sm:$0xf] }
 0x2dd   :  { %v9351_v15 = vor.u32 %v10205_v29, %v9350_v52  ;;  %v9999_v29 = vld [vmem:[%s15366_s7 + $0x6d4] sm:$0xf] }
 0x2de   :  { %5875 = vmatpush.bf16.msrb.mxu0 %v8263_v26  ;;  %5833 = vmatpush.bf16.msra.mxu1 %v9379_v27  ;;  %v8120_v26 = vld [vmem:[%s15366_s7 + $0x3a4] sm:$0xf0]  ;;  %v10062_v27 = vld [vmem:[%s15366_s7 + $0x8cc] sm:$0xf]  ;;  %v8543_v44 = vor.u32 %v9999_v29, %v8540_v37  ;;  %v9971_v29 = vld [vmem:[%s15366_s7 + $0x5f4] sm:$0xf] }
 0x2df   :  { %5917 = vmatpush.bf16.msrb.mxu3 %v8935_v19  ;;  %v10167_v19 = vld [vmem:[%s15366_s7 + $0xc14] sm:$0xf]  ;;  %v8123_v18 = vor.u32 %v9894_v25, %v8120_v26  ;;  %v8795_v42 = vor.u32 %v10062_v27, %v8792_v28  ;;  %v9131_v25 = vor.u32 %v10146_v55, %v9128_v33  ;;  %v8770_v26 = vld [vmem:[%s15366_s7 + $0x898] sm:$0xf]  ;;  %v8428_v37 = vld [vmem:[%s15366_s7 + $0x60c] sm:$0xf0] }
 0x2e0   :  { %5904 = vmatpush.bf16.msrb.mxu2 %v8683_v11  ;;  %v7875_v11 = vor.u32 %v9835_v36, %v7874_v35  ;;  %v9807_v35 = vld [vmem:[%s15366_s7 + $0xd0] sm:$0xf0]  ;;  %v9239_v36 = vor.u32 %v10177_v10, %v9238_v24  ;;  %v7678_v24 = vld [vmem:[%s15366_s7 + $0x10] sm:$0xf]  ;;  %v9786_v10 = vld [vmem:[%s15366_s7 + $0x28] sm:$0xf0] }
 0x2e1   :  { %v10059_v27 = vld [vmem:[%s15366_s7 + $0x8b0] sm:$0xf0]  ;;  %v10038_v33 = vld [vmem:[%s15366_s7 + $0x808] sm:$0xf0] }
 0x2e2   :  { %5876 = vmatpush.bf16.msrb.mxu0 %v8235_v0  ;;  %5834 = vmatpush.bf16.msra.mxu1 %v9351_v15  ;;  %v7762_v0 = vld [vmem:[%s15366_s7 + $0xb8] sm:$0xf]  ;;  %v10139_v28 = vld [vmem:[%s15366_s7 + $0xb34] sm:$0xf]  ;;  %v8771_v32 = vor.u32 %v10059_v27, %v8770_v26 }
 0x2e3   :  { %5918 = vmatpush.bf16.msrb.mxu3 %v8907_v22  ;;  %v10160_v22 = vld [vmem:[%s15366_s7 + $0xbdc] sm:$0xf]  ;;  %v7763_v46 = vor.u32 %v9807_v35, %v7762_v0  ;;  %v14062_v0 = vpop.f32.mrf.mxu2  ;;  %v8322_v26 = vld [vmem:[%s15366_s7 + $0x518] sm:$0xf]  ;;  %v9947_v27 = vld [vmem:[%s15366_s7 + $0x530] sm:$0xf0] }
 0x2e4   :  { %5905 = vmatpush.bf16.msrb.mxu2 %v8655_v3  ;;  %v8179_v3 = vor.u32 %v9908_v41, %v8176_v54  ;;  %v10153_v54 = vld [vmem:[%s15366_s7 + $0xba4] sm:$0xf] }
 0x2e6   :  { %5877 = vmatpush.bf16.msrb.mxu0 %v8207_v1  ;;  %5835 = vmatpush.bf16.msra.mxu1 %v9323_v58  ;;  %v9884_v1 = vld [vmem:[%s15366_s7 + $0x338] sm:$0xf0] }
 0x2e7   :  { %5919 = vmatpush.bf16.msrb.mxu3 %v8879_v50  ;;  %v9156_v50 = vld [vmem:[%s15366_s7 + $0xbbc] sm:$0xf0]  ;;  %v8071_v59 = vor.u32 %v9884_v1, %v8070_v49  ;;  %v9856_v1 = vld [vmem:[%s15366_s7 + $0x258] sm:$0xf0] }
 0x2e8   :  { %5906 = vmatpush.bf16.msrb.mxu2 %v8627_v17  ;;  %v7790_v17 = vld [vmem:[%s15366_s7 + $0xf0] sm:$0xf]  ;;  %v9159_v7 = vor.u32 %v10153_v54, %v9156_v50  ;;  %v7958_v49 = vld [vmem:[%s15366_s7 + $0x240] sm:$0xf]  ;;  %v10125_v54 = vld [vmem:[%s15366_s7 + $0xac4] sm:$0xf] }
 0x2e9   :  { %v7791_v52 = vor.u32 %v9814_v23, %v7790_v17  ;;  %v8456_v17 = vld [vmem:[%s15366_s7 + $0x644] sm:$0xf0]  ;;  %v9870_v23 = vld [vmem:[%s15366_s7 + $0x2c8] sm:$0xf0]  ;;  %v9044_v50 = vld [vmem:[%s15366_s7 + $0xadc] sm:$0xf0] }
 0x2ea   :  { %5878 = vmatpush.bf16.msrb.mxu0 %v8179_v3  ;;  %5836 = vmatpush.bf16.msra.mxu1 %v9295_v5  ;;  %v8042_v3 = vld [vmem:[%s15366_s7 + $0x2e8] sm:$0xf]  ;;  %v9793_v5 = vld [vmem:[%s15366_s7 + $0x60] sm:$0xf0]  ;;  %v9047_v55 = vor.u32 %v10125_v54, %v9044_v50 }
 0x2eb   :  { %5920 = vmatpush.bf16.msrb.mxu3 %v8851_v43  ;;  %v8487_v43 = vor.u32 %v9985_v21, %v8484_v57  ;;  %v7707_v2 = vor.u32 %v9793_v5, %v7706_v4  ;;  %v9957_v21 = vld [vmem:[%s15366_s7 + $0x584] sm:$0xf]  ;;  %v8372_v57 = vld [vmem:[%s15366_s7 + $0x59c] sm:$0xf0]  ;;  %v8686_v5 = vld [vmem:[%s15366_s7 + $0x7f0] sm:$0xf] }
 0x2ec   :  { %5907 = vmatpush.bf16.msrb.mxu2 %v8599_v40  ;;  %v9212_v40 = vld [vmem:[%s15366_s7 + $0xc2c] sm:$0xf0]  ;;  %v9849_v4 = vld [vmem:[%s15366_s7 + $0x220] sm:$0xf0]  ;;  %v8266_v50 = vld [vmem:[%s15366_s7 + $0x4a8] sm:$0xf] }
 0x2ed   :  { %v9215_v15 = vor.u32 %v10167_v19, %v9212_v40  ;;  %v9100_v19 = vld [vmem:[%s15366_s7 + $0xb4c] sm:$0xf0] }
 0x2ee   :  { %5879 = vmatpush.bf16.msrb.mxu0 %v8151_v56  ;;  %5837 = vmatpush.bf16.msra.mxu1 %v9267_v47  ;;  %v8014_v56 = vld [vmem:[%s15366_s7 + $0x2b0] sm:$0xf]  ;;  %v14036_v47 = vpop.f32.mrf.mxu0  ;;  %v9103_v35 = vor.u32 %v10139_v28, %v9100_v19  ;;  %v10223_v28 = vld [vmem:[%s15366_s7 + $0xdd4] sm:$0xf] }
 0x2ef   :  { %5921 = vmatpush.bf16.msrb.mxu3 %v8823_v63  ;;  %v8459_v63 = vor.u32 %v9978_v14, %v8456_v17  ;;  %v8015_v40 = vor.u32 %v9870_v23, %v8014_v56  ;;  %v8375_v14 = vor.u32 %v9957_v21, %v8372_v57  ;;  %v10118_v17 = vld [vmem:[%s15366_s7 + $0xa8c] sm:$0xf]  ;;  %v9016_v56 = vld [vmem:[%s15366_s7 + $0xaa4] sm:$0xf0]  ;;  %v7902_v23 = vld [vmem:[%s15366_s7 + $0x1d0] sm:$0xf] }
 0x2f0   :  { %5908 = vmatpush.bf16.msrb.mxu2 %v8571_v45  ;;  %v9184_v45 = vld [vmem:[%s15366_s7 + $0xbf4] sm:$0xf0]  ;;  %v9436_v19 = vld [vmem:[%s15366_s7 + $0xdec] sm:$0xf0] }
 0x2f1   :  { %v9187_v58 = vor.u32 %v10160_v22, %v9184_v45  ;;  %v9072_v22 = vld [vmem:[%s15366_s7 + $0xb14] sm:$0xf0]  ;;  %v14076_v45 = vpop.f32.mrf.mxu3 }
 0x2f2   :  { %5880 = vmatpush.bf16.msrb.mxu0 %v8123_v18  ;;  %5838 = vmatpush.bf16.msra.mxu1 %v9239_v36  ;;  %v7986_v18 = vld [vmem:[%s15366_s7 + $0x278] sm:$0xf]  ;;  %v8742_v36 = vld [vmem:[%s15366_s7 + $0x860] sm:$0xf] }
 0x2f3   :  { %5909 = vmatmul.bf16.vlgmr.msrb.gmra.mxu2 %v12884_v8  ;;  %5922 = vmatpush.bf16.msrb.mxu3 %v8795_v42  ;;  %v8431_v42 = vor.u32 %v9971_v29, %v8428_v37  ;;  %v10115_v29 = vld [vmem:[%s15366_s7 + $0xa70] sm:$0xf0]  ;;  %v8658_v37 = vld [vmem:[%s15366_s7 + $0x7b8] sm:$0xf] }
 0x2f4   :  { %5957 = vmatpush.bf16.msra.mxu2 %v7875_v11  ;;  %v9992_v11 = vld [vmem:[%s15366_s7 + $0x69c] sm:$0xf] }
 0x2f5   :  { %v8515_v41 = vor.u32 %v9992_v11, %v8512_v48  ;;  %5839 = vmatmul.bf16.vlgmr.msra.gmra.mxu1 %v13366_v31  ;;  %5881 = vmatmul.bf16.vlgmr.msrb.gmra.mxu0 %v12757_v12  ;;  %v8400_v11 = vld [vmem:[%s15366_s7 + $0x5d4] sm:$0xf0] }
 0x2f6   :  { %5929 = vmatpush.bf16.msra.mxu0 %v9215_v15  ;;  %5887 = vmatpush.bf16.msrb.mxu1 %v8543_v44  ;;  %v10052_v15 = vld [vmem:[%s15366_s7 + $0x878] sm:$0xf0] }
 0x2f7   :  { %5971 = vmatpush.bf16.msra.mxu3 %v8099_v34  ;;  %v10132_v44 = vld [vmem:[%s15366_s7 + $0xafc] sm:$0xf]  ;;  %v7987_v34 = vor.u32 %v9863_v62, %v7986_v18  ;;  %v8743_v48 = vor.u32 %v10052_v15, %v8742_v36  ;;  %v8323_v62 = vor.u32 %v9947_v27, %v8322_v26  ;;  %v9439_v15 = vor.u32 %v10223_v28, %v9436_v19  ;;  %v9352_v26 = vld [vmem:[%s15366_s7 + $0xd44] sm:$0xf0]  ;;  %v8910_v27 = vld [vmem:[%s15366_s7 + $0x9b0] sm:$0xf] }
 0x2f8   :  { %5958 = vmatpush.bf16.msra.mxu2 %v7847_v61  ;;  %v7735_v61 = vor.u32 %v9800_v53, %v7734_v51  ;;  %5923 = vmatmul.bf16.vlgmr.msrb.gmra.mxu3 %v13054_v20  ;;  %v9075_v51 = vor.u32 %v10132_v44, %v9072_v22  ;;  %v8714_v53 = vld [vmem:[%s15366_s7 + $0x828] sm:$0xf]  ;;  %v9940_v44 = vld [vmem:[%s15366_s7 + $0x4f8] sm:$0xf0]  ;;  %v10094_v28 = vld [vmem:[%s15366_s7 + $0x9c8] sm:$0xf0] }
 0x2f9   :  { %v8574_v19 = vld [vmem:[%s15366_s7 + $0x710] sm:$0xf] }
 0x2fa   :  { %5930 = vmatpush.bf16.msra.mxu0 %v9187_v58  ;;  %5888 = vmatpush.bf16.msrb.mxu1 %v8515_v41  ;;  %v10045_v58 = vld [vmem:[%s15366_s7 + $0x840] sm:$0xf0] }
 0x2fb   :  { %5972 = vmatpush.bf16.msra.mxu3 %v8071_v59  ;;  %v14103_v59 = vpop.f32.mrf.mxu0 }
 0x2fc   :  { %5959 = vmatpush.bf16.msra.mxu2 %v7819_v13  ;;  %v8043_v13 = vor.u32 %v9877_v9, %v8042_v3  ;;  %v8715_v3 = vor.u32 %v10045_v58, %v8714_v53  ;;  %v7930_v9 = vld [vmem:[%s15366_s7 + $0x208] sm:$0xf] }
 0x2fe   :  { %5931 = vmatpush.bf16.msra.mxu0 %v9159_v7  ;;  %5889 = vmatpush.bf16.msrb.mxu1 %v8487_v43  ;;  %v14120_v7 = vpop.f32.mrf.mxu1  ;;  %v14122_v43 = vpop.f32.mrf.mxu2 }
 0x2ff   :  { %5973 = vmatpush.bf16.msra.mxu3 %v8043_v13  ;;  %v9950_v13 = vld [vmem:[%s15366_s7 + $0x54c] sm:$0xf] }
 0x300   :  { %5960 = vmatpush.bf16.msra.mxu2 %v7791_v52  ;;  %v7679_v52 = vor.u32 %v9786_v10, %v7678_v24  ;;  %v14142_v24 = vpop.f32.mrf.mxu3  ;;  %v7931_v10 = vor.u32 %v9849_v4, %v7930_v9  ;;  %v9380_v9 = vld [vmem:[%s15366_s7 + $0xd7c] sm:$0xf0]  ;;  %v8938_v4 = vld [vmem:[%s15366_s7 + $0x9e8] sm:$0xf] }
 0x302   :  { %5932 = vmatpush.bf16.msra.mxu0 %v9131_v25  ;;  %5890 = vmatpush.bf16.msrb.mxu1 %v8459_v63  ;;  %v9842_v25 = vld [vmem:[%s15366_s7 + $0x1e8] sm:$0xf0]  ;;  %v8687_v63 = vor.u32 %v10038_v33, %v8686_v5  ;;  %v8602_v33 = vld [vmem:[%s15366_s7 + $0x748] sm:$0xf] }
 0x303   :  { %5974 = vmatpush.bf16.msra.mxu3 %v8015_v40  ;;  %v8994_v40 = vld [vmem:[%s15366_s7 + $0xa58] sm:$0xf]  ;;  %v7903_v36 = vor.u32 %v9842_v25, %v7902_v23  ;;  %v10202_v25 = vld [vmem:[%s15366_s7 + $0xd2c] sm:$0xf] }
 0x304   :  { %5961 = vmatpush.bf16.msra.mxu2 %v7763_v46  ;;  %v9964_v46 = vld [vmem:[%s15366_s7 + $0x5bc] sm:$0xf]  ;;  %v8995_v22 = vor.u32 %v10115_v29, %v8994_v40  ;;  %v10010_v40 = vld [vmem:[%s15366_s7 + $0x728] sm:$0xf0] }
 0x305   :  { %v8403_v41 = vor.u32 %v9964_v46, %v8400_v11  ;;  %v10216_v46 = vld [vmem:[%s15366_s7 + $0xd9c] sm:$0xf]  ;;  %v9408_v11 = vld [vmem:[%s15366_s7 + $0xdb4] sm:$0xf0] }
 0x306   :  { %5933 = vmatpush.bf16.msra.mxu0 %v9103_v35  ;;  %5891 = vmatpush.bf16.msrb.mxu1 %v8431_v42  ;;  %v14171_v35 = vpop.f32.mrf.mxu0  ;;  %v8294_v42 = vld [vmem:[%s15366_s7 + $0x4e0] sm:$0xf]  ;;  %v14197_v58 = vpop.f32.mrf.mxu1  ;;  %v9411_v54 = vor.u32 %v10216_v46, %v9408_v11  ;;  %v9832_v29 = vld [vmem:[%s15366_s7 + $0x19c] sm:$0xf]  ;;  %v8882_v11 = vld [vmem:[%s15366_s7 + $0x978] sm:$0xf] }
 0x307   :  { %5975 = vmatpush.bf16.msra.mxu3 %v7987_v34  ;;  %v8295_v53 = vor.u32 %v9940_v44, %v8294_v42  ;;  %v8575_v42 = vor.u32 %v10010_v40, %v8574_v19  ;;  %v10195_v44 = vld [vmem:[%s15366_s7 + $0xcf4] sm:$0xf]  ;;  %v10181_v19 = vld [vmem:[%s15366_s7 + $0xc84] sm:$0xf]  ;;  %v9268_v40 = vld [vmem:[%s15366_s7 + $0xc9c] sm:$0xf0] }
 0x308   :  { %5962 = vmatpush.bf16.msra.mxu2 %v7735_v61  ;;  %v7959_v61 = vor.u32 %v9856_v1, %v7958_v49  ;;  %v10108_v49 = vld [vmem:[%s15366_s7 + $0xa38] sm:$0xf0]  ;;  %v8630_v1 = vld [vmem:[%s15366_s7 + $0x780] sm:$0xf]  ;;  %v14216_v5 = vpop.f32.mrf.mxu3 }
 0x30a   :  { %5934 = vmatpush.bf16.msra.mxu0 %v9075_v51  ;;  %5892 = vmatpush.bf16.msrb.mxu1 %v8403_v41  ;;  %v10024_v51 = vld [vmem:[%s15366_s7 + $0x798] sm:$0xf0]  ;;  %v14199_v41 = vpop.f32.mrf.mxu2 }
 0x30b   :  { %5976 = vmatpush.bf16.msra.mxu3 %v7959_v61  ;;  %v9933_v61 = vld [vmem:[%s15366_s7 + $0x4c0] sm:$0xf0]  ;;  %v8631_v57 = vor.u32 %v10024_v51, %v8630_v1  ;;  %v7848_v51 = vld [vmem:[%s15366_s7 + $0x17c] sm:$0xf0] }
 0x30c   :  { %5963 = vmatpush.bf16.msra.mxu2 %v7707_v2  ;;  %v8344_v2 = vld [vmem:[%s15366_s7 + $0x564] sm:$0xf0]  ;;  %v9825_v1 = vld [vmem:[%s15366_s7 + $0x164] sm:$0xf] }
 0x30d   :  { %v8347_v18 = vor.u32 %v9950_v13, %v8344_v2  ;;  %v10017_v13 = vld [vmem:[%s15366_s7 + $0x760] sm:$0xf0]  ;;  %v8267_v2 = vor.u32 %v9933_v61, %v8266_v50  ;;  %v8182_v50 = vld [vmem:[%s15366_s7 + $0x400] sm:$0xf]  ;;  %v9912_v61 = vld [vmem:[%s15366_s7 + $0x418] sm:$0xf0] }
 0x30e   :  { %5935 = vmatpush.bf16.msra.mxu0 %v9047_v55  ;;  %5893 = vmatpush.bf16.msrb.mxu1 %v8375_v14  ;;  %v10101_v55 = vld [vmem:[%s15366_s7 + $0xa00] sm:$0xf0] }
 0x30f   :  { %5977 = vmatpush.bf16.msra.mxu3 %v7931_v10  ;;  %v8939_v23 = vor.u32 %v10101_v55, %v8938_v4  ;;  %v8603_v10 = vor.u32 %v10017_v13, %v8602_v33  ;;  %v7851_v4 = vor.u32 %v9825_v1, %v7848_v51  ;;  %v8854_v55 = vld [vmem:[%s15366_s7 + $0x940] sm:$0xf]  ;;  %v10080_v33 = vld [vmem:[%s15366_s7 + $0x958] sm:$0xf0]  ;;  %v8183_v13 = vor.u32 %v9912_v61, %v8182_v50  ;;  %v10066_v51 = vld [vmem:[%s15366_s7 + $0x8e8] sm:$0xf0] }
 0x310   :  { %5964 = vmatpush.bf16.msra.mxu2 %v7679_v52  ;;  %v9019_v52 = vor.u32 %v10118_v17, %v9016_v56  ;;  %v8238_v17 = vld [vmem:[%s15366_s7 + $0x470] sm:$0xf]  ;;  %v9926_v56 = vld [vmem:[%s15366_s7 + $0x488] sm:$0xf0]  ;;  %v10171_v50 = vld [vmem:[%s15366_s7 + $0xc30] sm:$0xf0] }
 0x312   :  { %5936 = vmatpush.bf16.msra.mxu0 %v9019_v52  ;;  %5894 = vmatpush.bf16.msrb.mxu1 %v8347_v18  ;;  %v8239_v52 = vor.u32 %v9926_v56, %v8238_v17  ;;  %v9355_v18 = vor.u32 %v10202_v25, %v9352_v26  ;;  %v8154_v25 = vld [vmem:[%s15366_s7 + $0x3c8] sm:$0xf]  ;;  %v9905_v26 = vld [vmem:[%s15366_s7 + $0x3e0] sm:$0xf0] }
 0x313   :  { %5965 = vmatmul.bf16.vlgmr.msra.gmra.mxu2 %v12657_v6  ;;  %5978 = vmatpush.bf16.msra.mxu3 %v7903_v36  ;;  %v9919_v36 = vld [vmem:[%s15366_s7 + $0x450] sm:$0xf0] }
 0x314   :  { %6013 = vmatpush.bf16.msrb.mxu2 %v8771_v32  ;;  %v10031_v32 = vld [vmem:[%s15366_s7 + $0x7d0] sm:$0xf0] }
 0x315   :  { %v8659_v34 = vor.u32 %v10031_v32, %v8658_v37  ;;  %5895 = vmatmul.bf16.vlgmr.msrb.gmra.mxu1 %v12736_v16  ;;  %5937 = vmatmul.bf16.vlgmr.msra.gmra.mxu0 %v13218_v60  ;;  %v7876_v37 = vld [vmem:[%s15366_s7 + $0x1b4] sm:$0xf0]  ;;  %v14262_v32 = vpop.f32.mrf.mxu1 }
 0x316   :  { %5985 = vmatpush.bf16.msrb.mxu0 %v8323_v62  ;;  %5943 = vmatpush.bf16.msra.mxu1 %v9439_v15  ;;  %v8210_v62 = vld [vmem:[%s15366_s7 + $0x438] sm:$0xf]  ;;  %v8911_v15 = vor.u32 %v10094_v28, %v8910_v27  ;;  %v7879_v46 = vor.u32 %v9832_v29, %v7876_v37  ;;  %v8855_v28 = vor.u32 %v10080_v33, %v8854_v55  ;;  %v8826_v29 = vld [vmem:[%s15366_s7 + $0x908] sm:$0xf]  ;;  %v10073_v37 = vld [vmem:[%s15366_s7 + $0x920] sm:$0xf0] }
 0x317   :  { %6027 = vmatpush.bf16.msrb.mxu3 %v8995_v22  ;;  %v9324_v22 = vld [vmem:[%s15366_s7 + $0xd0c] sm:$0xf0]  ;;  %v8100_v33 = vld [vmem:[%s15366_s7 + $0x374] sm:$0xf0] }
 0x318   :  { %6014 = vmatpush.bf16.msrb.mxu2 %v8743_v48  ;;  %v8966_v48 = vld [vmem:[%s15366_s7 + $0xa20] sm:$0xf]  ;;  %5979 = vmatmul.bf16.vlgmr.msra.gmra.mxu3 %v12613_v39 }
 0x319   :  { %v8967_v21 = vor.u32 %v10108_v49, %v8966_v48  ;;  %v10087_v48 = vld [vmem:[%s15366_s7 + $0x990] sm:$0xf0]  ;;  %v8211_v49 = vor.u32 %v9919_v36, %v8210_v62  ;;  %v8155_v62 = vor.u32 %v9905_v26, %v8154_v25  ;;  %v7792_v36 = vld [vmem:[%s15366_s7 + $0x10c] sm:$0xf0] }
 0x31a   :  { %5986 = vmatpush.bf16.msrb.mxu0 %v8295_v53  ;;  %5944 = vmatpush.bf16.msra.mxu1 %v9411_v54  ;;  %v5644_v53 = vpop.f32.mrf.mxu3  ;;  %v9327_v54 = vor.u32 %v10195_v44, %v9324_v22 }
 0x31b   :  { %6028 = vmatpush.bf16.msrb.mxu3 %v8967_v21  ;;  %v14297_v21 = vld [vmem:[%s15367_s8] sm:$0x7f] }
 0x31c   :  { %6015 = vmatpush.bf16.msrb.mxu2 %v8715_v3  ;;  %v10209_v3 = vld [vmem:[%s15366_s7 + $0xd64] sm:$0xf]  ;;  %v3191_v17 = vperm.slane %v14297_v21, 0  ;;  %v3192_v27 = vperm.slane %v14297_v21, 1  ;;  %v8490_v21 = vld [vmem:[%s15366_s7 + $0x668] sm:$0xf] }
 0x31d   :  { %v9383_v14 = vor.u32 %v10209_v3, %v9380_v9  ;;  %v10188_v3 = vld [vmem:[%s15366_s7 + $0xcbc] sm:$0xf]  ;;  %v9296_v9 = vld [vmem:[%s15366_s7 + $0xcd4] sm:$0xf0] }
 0x31e   :  { %5987 = vmatpush.bf16.msrb.mxu0 %v8267_v2  ;;  %v9818_v2 = vld [vmem:[%s15366_s7 + $0x12c] sm:$0xf]  ;;  %v5519_v44 = vadd.f32 %v13987_v38, %v3191_v17  ;;  %v8827_v38 = vor.u32 %v10073_v37, %v8826_v29 }
 0x31f   :  { %5945 = vmatpush.bf16.msra.mxu1 %v9383_v14  ;;  %6029 = vmatpush.bf16.msrb.mxu3 %v8939_v23  ;;  %v7820_v14 = vld [vmem:[%s15366_s7 + $0x144] sm:$0xf0]  ;;  %v14319_v23 = vpop.f32.mrf.mxu1 }
 0x320   :  { %6016 = vmatpush.bf16.msrb.mxu2 %v8687_v63  ;;  %v14245_v63 = vpop.f32.mrf.mxu0 }
 0x322   :  { %5988 = vmatpush.bf16.msrb.mxu0 %v8239_v52  ;;  %v7823_v52 = vor.u32 %v9818_v2, %v7820_v14  ;;  %v5646_v61 = vpop.f32.mrf.mxu3  ;;  %v7764_v2 = vld [vmem:[%s15366_s7 + $0xd4] sm:$0xf0]  ;;  %v5533_v14 = vadd.f32 %v14009_v30, %v5519_v44  ;;  %v9797_v44 = vld [vmem:[%s15366_s7 + $0x84] sm:$0xf] }
 0x323   :  { %5946 = vmatpush.bf16.msra.mxu1 %v9355_v18  ;;  %6030 = vmatpush.bf16.msrb.mxu3 %v8911_v15  ;;  %v9811_v18 = vld [vmem:[%s15366_s7 + $0xf4] sm:$0xf]  ;;  %v10174_v15 = vld [vmem:[%s15366_s7 + $0xc4c] sm:$0xf] }
 0x324   :  { %6017 = vmatpush.bf16.msrb.mxu2 %v8659_v34  ;;  %v5630_v34 = vpop.f32.mrf.mxu2  ;;  %v5547_v29 = vadd.f32 %v14036_v47, %v5533_v14  ;;  %v5521_v47 = vadd.f32 %v14062_v0, %v3191_v17  ;;  %v9134_v14 = vld [vmem:[%s15366_s7 + $0xb70] sm:$0xf] }
 0x325   :  { %v5631_v1 = vadd.f32 %v5630_v34, %v3192_v27  ;;  %v8546_v34 = vld [vmem:[%s15366_s7 + $0x6d8] sm:$0xf] }
 0x326   :  { %5989 = vmatpush.bf16.msrb.mxu0 %v8211_v49  ;;  %v8798_v49 = vld [vmem:[%s15366_s7 + $0x8d0] sm:$0xf] }
 0x327   :  { %5947 = vmatpush.bf16.msra.mxu1 %v9327_v54  ;;  %v9218_v54 = vld [vmem:[%s15366_s7 + $0xc18] sm:$0xf] }
 0x328   :  { %6018 = vmatpush.bf16.msrb.mxu2 %v8631_v57  ;;  %v8883_v57 = vor.u32 %v10087_v48, %v8882_v11  ;;  %v5658_v56 = vpop.f32.mrf.mxu0  ;;  %v8126_v11 = vld [vmem:[%s15366_s7 + $0x390] sm:$0xf]  ;;  %v9898_v48 = vld [vmem:[%s15366_s7 + $0x3a8] sm:$0xf0] }
 0x329   :  { %v8127_v55 = vor.u32 %v9898_v48, %v8126_v11 }
 0x32a   :  { %6031 = vmatpush.bf16.msrb.mxu3 %v8883_v57  ;;  %5990 = vmatpush.bf16.msrb.mxu0 %v8183_v13  ;;  %v7795_v57 = vor.u32 %v9811_v18, %v7792_v36  ;;  %v9804_v13 = vld [vmem:[%s15366_s7 + $0xbc] sm:$0xf]  ;;  %v9881_v36 = vld [vmem:[%s15366_s7 + $0x324] sm:$0xf] }
 0x32b   :  { %v7767_v18 = vor.u32 %v9804_v13, %v7764_v2 }
 0x32c   :  { %6019 = vmatpush.bf16.msrb.mxu2 %v8603_v10  ;;  %v9299_v10 = vor.u32 %v10188_v3, %v9296_v9  ;;  %v5632_v22 = vpop.f32.mrf.mxu2  ;;  %v10003_v3 = vld [vmem:[%s15366_s7 + $0x6f0] sm:$0xf0]  ;;  %v9888_v9 = vld [vmem:[%s15366_s7 + $0x35c] sm:$0xf] }
 0x32d   :  { %v8103_v30 = vor.u32 %v9888_v9, %v8100_v33  ;;  %v5633_v0 = vadd.f32 %v5632_v22, %v3192_v27  ;;  %v9989_v27 = vld [vmem:[%s15366_s7 + $0x680] sm:$0xf0]  ;;  %v9874_v22 = vld [vmem:[%s15366_s7 + $0x2ec] sm:$0xf]  ;;  %v7708_v9 = vld [vmem:[%s15366_s7 + $0x64] sm:$0xf0] }
 0x32e   :  { %5948 = vmatpush.bf16.msra.mxu1 %v9299_v10  ;;  %6032 = vmatpush.bf16.msrb.mxu3 %v8855_v28  ;;  %v5672_v10 = vpop.f32.mrf.mxu1  ;;  %v8799_v28 = vor.u32 %v10066_v51, %v8798_v49  ;;  %v9162_v49 = vld [vmem:[%s15366_s7 + $0xba8] sm:$0xf]  ;;  %v8491_v2 = vor.u32 %v9989_v27, %v8490_v21  ;;  %v10049_v21 = vld [vmem:[%s15366_s7 + $0x864] sm:$0xf]  ;;  %v8744_v27 = vld [vmem:[%s15366_s7 + $0x87c] sm:$0xf0] }
 0x32f   :  { %5991 = vmatpush.bf16.msrb.mxu0 %v8155_v62  ;;  %v9996_v62 = vld [vmem:[%s15366_s7 + $0x6b8] sm:$0xf0] }
 0x330   :  { %6020 = vmatpush.bf16.msrb.mxu2 %v8575_v42  ;;  %v9240_v42 = vld [vmem:[%s15366_s7 + $0xc64] sm:$0xf0]  ;;  %v5660_v37 = vpop.f32.mrf.mxu0 }
 0x331   :  { %v9243_v25 = vor.u32 %v10174_v15, %v9240_v42  ;;  %v8072_v42 = vld [vmem:[%s15366_s7 + $0x33c] sm:$0xf0] }
 0x332   :  { %6033 = vmatpush.bf16.msrb.mxu3 %v8827_v38  ;;  %v5561_v38 = vadd.f32 %v14120_v7, %v5547_v29  ;;  %v8075_v51 = vor.u32 %v9881_v36, %v8072_v42  ;;  %v7680_v29 = vld [vmem:[%s15366_s7 + $0x2c] sm:$0xf0] }
 0x333   :  { %6021 = vmatmul.bf16.vlgmr.msrb.gmra.mxu2 %v12884_v8  ;;  %5992 = vmatpush.bf16.msrb.mxu0 %v8127_v55 }
 0x334   :  { %6069 = vmatpush.bf16.msra.mxu2 %v7879_v46  ;;  %v9271_v46 = vor.u32 %v10181_v19, %v9268_v40  ;;  %v8547_v19 = vor.u32 %v10003_v3, %v8546_v34  ;;  %v9190_v40 = vld [vmem:[%s15366_s7 + $0xbe0] sm:$0xf]  ;;  %v5686_v11 = vpop.f32.mrf.mxu2  ;;  %v8044_v34 = vld [vmem:[%s15366_s7 + $0x304] sm:$0xf0]  ;;  %v9790_v3 = vld [vmem:[%s15366_s7 + $0x4c] sm:$0xf] }
 0x336   :  { %5949 = vmatpush.bf16.msra.mxu1 %v9271_v46  ;;  %v7736_v46 = vld [vmem:[%s15366_s7 + $0x9c] sm:$0xf0]  ;;  %6034 = vmatpush.bf16.msrb.mxu3 %v8799_v28  ;;  %v9867_v28 = vld [vmem:[%s15366_s7 + $0x2b4] sm:$0xf] }
 0x337   :  { %5993 = vmatmul.bf16.vlgmr.msrb.gmra.mxu0 %v12757_v12 }
 0x338   :  { %6070 = vmatpush.bf16.msra.mxu2 %v7851_v4  ;;  %v5645_v4 = vadd.f32 %v5644_v53, %v5631_v1  ;;  %v9219_v53 = vor.u32 %v10171_v50, %v9218_v54  ;;  %v10157_v1 = vld [vmem:[%s15366_s7 + $0xbc0] sm:$0xf0]  ;;  %v7739_v54 = vor.u32 %v9797_v44, %v7736_v46  ;;  %v5535_v50 = vadd.f32 %v14076_v45, %v5521_v47 }
 0x339   :  { %v5575_v45 = vadd.f32 %v14122_v43, %v5561_v38  ;;  %6035 = vmatmul.bf16.vlgmr.msrb.gmra.mxu3 %v13054_v20  ;;  %v9163_v55 = vor.u32 %v10157_v1, %v9162_v49  ;;  %v9860_v1 = vld [vmem:[%s15366_s7 + $0x27c] sm:$0xf] }
 0x33a   :  { %v5659_v26 = vadd.f32 %v5658_v56, %v5645_v4  ;;  %v8518_v56 = vld [vmem:[%s15366_s7 + $0x6a0] sm:$0xf]  ;;  %5950 = vmatpush.bf16.msra.mxu1 %v9243_v25  ;;  %6041 = vmatpush.bf16.msra.mxu0 %v9219_v53  ;;  %v5674_v4 = vpop.f32.mrf.mxu1  ;;  %v5549_v33 = vadd.f32 %v14103_v59, %v5535_v50  ;;  %v8047_v25 = vor.u32 %v9874_v22, %v8044_v34  ;;  %v8462_v59 = vld [vmem:[%s15366_s7 + $0x630] sm:$0xf] }
 0x33b   :  { %v8519_v17 = vor.u32 %v9996_v62, %v8518_v56  ;;  %6083 = vmatpush.bf16.msra.mxu3 %v8103_v30  ;;  %v5589_v43 = vadd.f32 %v14142_v24, %v5575_v45  ;;  %v7711_v53 = vor.u32 %v9790_v3, %v7708_v9  ;;  %v8016_v24 = vld [vmem:[%s15366_s7 + $0x2cc] sm:$0xf0]  ;;  %v5714_v30 = vpop.f32.mrf.mxu0  ;;  %v10056_v56 = vld [vmem:[%s15366_s7 + $0x89c] sm:$0xf]  ;;  %v8772_v62 = vld [vmem:[%s15366_s7 + $0x8b4] sm:$0xf0] }
 0x33c   :  { %6071 = vmatpush.bf16.msra.mxu2 %v7823_v52  ;;  %v10164_v52 = vld [vmem:[%s15366_s7 + $0xbf8] sm:$0xf0]  ;;  %v5673_v15 = vadd.f32 %v5672_v10, %v5659_v26  ;;  %v10150_v10 = vld [vmem:[%s15366_s7 + $0xb88] sm:$0xf0]  ;;  %v5563_v36 = vadd.f32 %v14197_v58, %v5549_v33  ;;  %v5688_v42 = vpop.f32.mrf.mxu2  ;;  %v8019_v46 = vor.u32 %v9867_v28, %v8016_v24  ;;  %v8434_v58 = vld [vmem:[%s15366_s7 + $0x5f8] sm:$0xf]  ;;  %v8775_v49 = vor.u32 %v10056_v56, %v8772_v62 }
 0x33d   :  { %v9191_v48 = vor.u32 %v10164_v52, %v9190_v40  ;;  %5951 = vmatmul.bf16.vlgmr.msra.gmra.mxu1 %v13366_v31  ;;  %v9982_v26 = vld [vmem:[%s15366_s7 + $0x648] sm:$0xf0]  ;;  %v9783_v52 = vld [vmem:[%s15366_s7 + $0x14] sm:$0xf]  ;;  %v8406_v9 = vld [vmem:[%s15366_s7 + $0x5c0] sm:$0xf] }
 0x33e   :  { %5999 = vmatpush.bf16.msrb.mxu1 %v8547_v19  ;;  %v5687_v7 = vadd.f32 %v5686_v11, %v5673_v15  ;;  %v8463_v47 = vor.u32 %v9982_v26, %v8462_v59  ;;  %v9106_v15 = vld [vmem:[%s15366_s7 + $0xb38] sm:$0xf]  ;;  %v7683_v11 = vor.u32 %v9783_v52, %v7680_v29  ;;  %v5577_v38 = vadd.f32 %v14199_v41, %v5563_v36  ;;  %v10136_v41 = vld [vmem:[%s15366_s7 + $0xb18] sm:$0xf0]  ;;  %v8378_v26 = vld [vmem:[%s15366_s7 + $0x588] sm:$0xf] }
 0x33f   :  { %6042 = vmatpush.bf16.msra.mxu0 %v9191_v48  ;;  %6084 = vmatpush.bf16.msra.mxu3 %v8075_v51  ;;  %v9975_v48 = vld [vmem:[%s15366_s7 + $0x610] sm:$0xf0]  ;;  %v9968_v45 = vld [vmem:[%s15366_s7 + $0x5d8] sm:$0xf0]  ;;  %v9961_v28 = vld [vmem:[%s15366_s7 + $0x5a0] sm:$0xf0] }
 0x340   :  { %6072 = vmatpush.bf16.msra.mxu2 %v7795_v57  ;;  %v5647_v57 = vadd.f32 %v5646_v61, %v5633_v0  ;;  %v5700_v61 = vpop.f32.mrf.mxu3  ;;  %v8435_v50 = vor.u32 %v9975_v48, %v8434_v58  ;;  %v10035_v52 = vld [vmem:[%s15366_s7 + $0x7f4] sm:$0xf]  ;;  %v8688_v29 = vld [vmem:[%s15366_s7 + $0x80c] sm:$0xf0]  ;;  %v9954_v62 = vld [vmem:[%s15366_s7 + $0x568] sm:$0xf0] }
 0x341   :  { %v5701_v40 = vadd.f32 %v5700_v61, %v5687_v7  ;;  %v5591_v7 = vadd.f32 %v14216_v5, %v5577_v38  ;;  %v8747_v61 = vor.u32 %v10049_v21, %v8744_v27  ;;  %v9853_v5 = vld [vmem:[%s15366_s7 + $0x244] sm:$0xf]  ;;  %v8350_v56 = vld [vmem:[%s15366_s7 + $0x550] sm:$0xf]  ;;  %v9442_v48 = vld [vmem:[%s15366_s7 + $0xdd8] sm:$0xf] }
 0x342   :  { %v5661_v13 = vadd.f32 %v5660_v37, %v5647_v57  ;;  %6000 = vmatpush.bf16.msrb.mxu1 %v8519_v17  ;;  %v5603_v37 = vadd.f32 %v14171_v35, %v5589_v43  ;;  %v10143_v35 = vld [vmem:[%s15366_s7 + $0xb50] sm:$0xf0]  ;;  %v5728_v51 = vpop.f32.mrf.mxu1  ;;  %v9078_v57 = vld [vmem:[%s15366_s7 + $0xb00] sm:$0xf]  ;;  %v9050_v43 = vld [vmem:[%s15366_s7 + $0xac8] sm:$0xf]  ;;  %v8351_v27 = vor.u32 %v9954_v62, %v8350_v56 }
 0x343   :  { %6043 = vmatpush.bf16.msra.mxu0 %v9163_v55  ;;  %6085 = vmatpush.bf16.msra.mxu3 %v8047_v25  ;;  %v5715_v17 = vadd.f32 %v5714_v30, %v5701_v40  ;;  %v7960_v55 = vld [vmem:[%s15366_s7 + $0x25c] sm:$0xf0]  ;;  %v5605_v33 = vadd.f32 %v14245_v63, %v5591_v7  ;;  %v10129_v63 = vld [vmem:[%s15366_s7 + $0xae0] sm:$0xf0]  ;;  %v9022_v36 = vld [vmem:[%s15366_s7 + $0xa90] sm:$0xf] }
 0x344   :  { %6073 = vmatpush.bf16.msra.mxu2 %v7767_v18  ;;  %v5675_v19 = vadd.f32 %v5674_v4, %v5661_v13  ;;  %v9135_v18 = vor.u32 %v10150_v10, %v9134_v14  ;;  %v5617_v44 = vadd.f32 %v14262_v32, %v5603_v37  ;;  %v7988_v32 = vld [vmem:[%s15366_s7 + $0x294] sm:$0xf0]  ;;  %v9079_v13 = vor.u32 %v10136_v41, %v9078_v57  ;;  %v8716_v14 = vld [vmem:[%s15366_s7 + $0x844] sm:$0xf0]  ;;  %v9937_v41 = vld [vmem:[%s15366_s7 + $0x4e4] sm:$0xf] }
 0x345   :  { %v5729_v22 = vadd.f32 %v5728_v51, %v5715_v17  ;;  %v7991_v3 = vor.u32 %v9860_v1, %v7988_v32  ;;  %v8407_v10 = vor.u32 %v9968_v45, %v8406_v9  ;;  %v5619_v25 = vadd.f32 %v14319_v23, %v5605_v33  ;;  %v7932_v23 = vld [vmem:[%s15366_s7 + $0x224] sm:$0xf0]  ;;  %v8324_v17 = vld [vmem:[%s15366_s7 + $0x534] sm:$0xf0]  ;;  %v10227_v1 = vld [vmem:[%s15366_s7 + $0xdf0] sm:$0xf0] }
 0x346   :  { %6001 = vmatpush.bf16.msrb.mxu1 %v8491_v2  ;;  %v5689_v0 = vadd.f32 %v5688_v42, %v5675_v19  ;;  %10232 = vtanh.f32 %v5617_v44  ;;  %v10042_v2 = vld [vmem:[%s15366_s7 + $0x82c] sm:$0xf]  ;;  %v7963_v59 = vor.u32 %v9853_v5, %v7960_v55  ;;  %v9839_v44 = vld [vmem:[%s15366_s7 + $0x1d4] sm:$0xf]  ;;  %v10112_v32 = vld [vmem:[%s15366_s7 + $0xa5c] sm:$0xf]  ;;  %v9443_v57 = vor.u32 %v10227_v1, %v9442_v48 }
 0x347   :  { %6044 = vmatpush.bf16.msra.mxu0 %v9135_v18  ;;  %6086 = vmatpush.bf16.msra.mxu3 %v8019_v46  ;;  %10234 = vtanh.f32 %v5729_v22  ;;  %v9846_v19 = vld [vmem:[%s15366_s7 + $0x20c] sm:$0xf]  ;;  %v8719_v24 = vor.u32 %v10042_v2, %v8716_v14  ;;  %v9051_v18 = vor.u32 %v10129_v63, %v9050_v43  ;;  %v7904_v46 = vld [vmem:[%s15366_s7 + $0x1ec] sm:$0xf0]  ;;  %v8996_v38 = vld [vmem:[%s15366_s7 + $0xa74] sm:$0xf0] }
 0x348   :  { %6074 = vmatpush.bf16.msra.mxu2 %v7739_v54  ;;  %v9107_v54 = vor.u32 %v10143_v35, %v9106_v15  ;;  %v5702_v34 = vpop.f32.mrf.mxu3  ;;  %v8379_v35 = vor.u32 %v9961_v28, %v8378_v26  ;;  %v10122_v42 = vld [vmem:[%s15366_s7 + $0xaa8] sm:$0xf0]  ;;  %10236 = vtanh.f32 %v5619_v25  ;;  %v7935_v58 = vor.u32 %v9846_v19, %v7932_v23  ;;  %v8660_v21 = vld [vmem:[%s15366_s7 + $0x7d4] sm:$0xf0]  ;;  %v8296_v7 = vld [vmem:[%s15366_s7 + $0x4fc] sm:$0xf0] }
 0x349   :  { %v5703_v4 = vadd.f32 %v5702_v34, %v5689_v0  ;;  %v9944_v0 = vld [vmem:[%s15366_s7 + $0x51c] sm:$0xf]  ;;  %v9023_v51 = vor.u32 %v10122_v42, %v9022_v36  ;;  %v8999_v34 = vor.u32 %v10112_v32, %v8996_v38  ;;  %v9414_v9 = vld [vmem:[%s15366_s7 + $0xda0] sm:$0xf]  ;;  %v10021_v55 = vld [vmem:[%s15366_s7 + $0x784] sm:$0xf]  ;;  %v8299_v2 = vor.u32 %v9937_v41, %v8296_v7 }
 0x34a   :  { %6002 = vmatpush.bf16.msrb.mxu1 %v8463_v47  ;;  %v5730_v30 = vpop.f32.mrf.mxu1  ;;  %v8327_v22 = vor.u32 %v9944_v0, %v8324_v17  ;;  %v10220_v45 = vld [vmem:[%s15366_s7 + $0xdb8] sm:$0xf0]  ;;  %v8968_v5 = vld [vmem:[%s15366_s7 + $0xa3c] sm:$0xf0]  ;;  %v9386_v43 = vld [vmem:[%s15366_s7 + $0xd68] sm:$0xf] }
 0x34b   :  { %6045 = vmatpush.bf16.msra.mxu0 %v9107_v54  ;;  %6087 = vmatpush.bf16.msra.mxu3 %v7991_v3  ;;  %v10028_v54 = vld [vmem:[%s15366_s7 + $0x7bc] sm:$0xf]  ;;  %v8632_v33 = vld [vmem:[%s15366_s7 + $0x79c] sm:$0xf0]  ;;  %v9930_v63 = vld [vmem:[%s15366_s7 + $0x4ac] sm:$0xf] }
 0x34c   :  { %6075 = vmatpush.bf16.msra.mxu2 %v7711_v53  ;;  %v5716_v53 = vpop.f32.mrf.mxu0  ;;  %v10233_v37 = vpop.eup %10232  ;;  %v8663_v3 = vor.u32 %v10028_v54, %v8660_v21  ;;  %v8268_v25 = vld [vmem:[%s15366_s7 + $0x4c4] sm:$0xf0]  ;;  %v10213_v26 = vld [vmem:[%s15366_s7 + $0xd80] sm:$0xf0]  ;;  %v10098_v28 = vld [vmem:[%s15366_s7 + $0x9ec] sm:$0xf] }
 0x34d   :  { %v5717_v40 = vadd.f32 %v5716_v53, %v5703_v4  ;;  %v10235_v47 = vpop.eup %10234  ;;  %v8940_v19 = vld [vmem:[%s15366_s7 + $0xa04] sm:$0xf0]  ;;  %v8271_v23 = vor.u32 %v9930_v63, %v8268_v25  ;;  %v9358_v56 = vld [vmem:[%s15366_s7 + $0xd30] sm:$0xf]  ;;  %v10206_v62 = vld [vmem:[%s15366_s7 + $0xd48] sm:$0xf0] }
 0x34e   :  { %6003 = vmatpush.bf16.msrb.mxu1 %v8435_v50  ;;  %v7907_v50 = vor.u32 %v9839_v44, %v7904_v46  ;;  %v10237_v4 = vpop.eup %10236  ;;  %v10091_v36 = vld [vmem:[%s15366_s7 + $0x9b4] sm:$0xf]  ;;  %v7882_v44 = vld [vmem:[%s15366_s7 + $0x1a0] sm:$0xf]  ;;  %v9836_v46 = vld [vmem:[%s15366_s7 + $0x1b8] sm:$0xf0] }
 0x34f   :  { %6046 = vmatpush.bf16.msra.mxu0 %v9079_v13  ;;  %v5731_v15 = vadd.f32 %v5730_v30, %v5717_v40  ;;  %6088 = vmatpush.bf16.msra.mxu3 %v7963_v59  ;;  %v8635_v59 = vor.u32 %v10021_v55, %v8632_v33  ;;  %v10014_v40 = vld [vmem:[%s15366_s7 + $0x74c] sm:$0xf]  ;;  %v8943_v30 = vor.u32 %v10098_v28, %v8940_v19  ;;  %v8212_v48 = vld [vmem:[%s15366_s7 + $0x454] sm:$0xf0]  ;;  %v10199_v1 = vld [vmem:[%s15366_s7 + $0xd10] sm:$0xf0] }
 0x350   :  { %6076 = vmatpush.bf16.msra.mxu2 %v7683_v11  ;;  %v6307_v11 = vpack.c.bf16 %v10235_v47, %v10233_v37  ;;  %v8240_v37 = vld [vmem:[%s15366_s7 + $0x48c] sm:$0xf0]  ;;  %v7883_v32 = vor.u32 %v9836_v46, %v7882_v44  ;;  %v10084_v38 = vld [vmem:[%s15366_s7 + $0x97c] sm:$0xf]  ;;  %v7854_v21 = vld [vmem:[%s15366_s7 + $0x168] sm:$0xf] }
 0x351   :  { %10238 = vtanh.f32 %v5731_v15  ;;  %v8912_v47 = vld [vmem:[%s15366_s7 + $0x9cc] sm:$0xf0]  ;;  %v10007_v15 = vld [vmem:[%s15366_s7 + $0x714] sm:$0xf]  ;;  %v9302_v7 = vld [vmem:[%s15366_s7 + $0xcc0] sm:$0xf] }
 0x352   :  { %6004 = vmatpush.bf16.msrb.mxu1 %v8407_v10  ;;  %6315 = vst [vmem:[#allocation2] sm:$0xff] %v6307_v11  ;;  %v9415_v10 = vor.u32 %v10220_v45, %v9414_v9  ;;  %v9359_v11 = vor.u32 %v10206_v62, %v9358_v56  ;;  %v8915_v0 = vor.u32 %v10091_v36, %v8912_v47  ;;  %v10077_v9 = vld [vmem:[%s15366_s7 + $0x944] sm:$0xf]  ;;  %v8856_v45 = vld [vmem:[%s15366_s7 + $0x95c] sm:$0xf0] }
 0x353   :  { %6077 = vmatmul.bf16.vlgmr.msra.gmra.mxu2 %v12657_v6  ;;  %6047 = vmatpush.bf16.msra.mxu0 %v9051_v18  ;;  %v9902_v33 = vld [vmem:[%s15366_s7 + $0x3cc] sm:$0xf]  ;;  %v8828_v25 = vld [vmem:[%s15366_s7 + $0x924] sm:$0xf0]  ;;  %v9246_v28 = vld [vmem:[%s15366_s7 + $0xc50] sm:$0xf] }
 0x354   :  { %6125 = vmatpush.bf16.msrb.mxu2 %v8775_v49  ;;  %v8691_v49 = vor.u32 %v10035_v52, %v8688_v29  ;;  %6089 = vmatpush.bf16.msra.mxu3 %v7935_v58  ;;  %v9387_v52 = vor.u32 %v10213_v26, %v9386_v43  ;;  %v9923_v29 = vld [vmem:[%s15366_s7 + $0x474] sm:$0xf]  ;;  %v9916_v58 = vld [vmem:[%s15366_s7 + $0x43c] sm:$0xf]  ;;  %v10070_v63 = vld [vmem:[%s15366_s7 + $0x90c] sm:$0xf] }
 0x355   :  { %v8243_v42 = vor.u32 %v9923_v29, %v8240_v37  ;;  %v8215_v54 = vor.u32 %v9916_v58, %v8212_v48  ;;  %v9815_v26 = vld [vmem:[%s15366_s7 + $0x110] sm:$0xf0]  ;;  %v10178_v19 = vld [vmem:[%s15366_s7 + $0xc68] sm:$0xf0]  ;;  %v8831_v29 = vor.u32 %v10070_v63, %v8828_v25  ;;  %v8800_v37 = vld [vmem:[%s15366_s7 + $0x8ec] sm:$0xf0] }
 0x356   :  { %6005 = vmatpush.bf16.msrb.mxu1 %v8379_v35  ;;  %v8576_v35 = vld [vmem:[%s15366_s7 + $0x72c] sm:$0xf0]  ;;  %v10000_v62 = vld [vmem:[%s15366_s7 + $0x6dc] sm:$0xf]  ;;  %v8548_v36 = vld [vmem:[%s15366_s7 + $0x6f4] sm:$0xf0]  ;;  %v9247_v46 = vor.u32 %v10178_v19, %v9246_v28  ;;  %v14881_v19 = vpop.f32.mrf.mxu3 }
 0x357   :  { %6048 = vmatpush.bf16.msra.mxu0 %v9023_v51  ;;  %v10239_v13 = vpop.eup %10238  ;;  %v8579_v17 = vor.u32 %v10007_v15, %v8576_v35  ;;  %v8884_v51 = vld [vmem:[%s15366_s7 + $0x994] sm:$0xf0]  ;;  %v8106_v47 = vld [vmem:[%s15366_s7 + $0x360] sm:$0xf]  ;;  %v9892_v35 = vld [vmem:[%s15366_s7 + $0x378] sm:$0xf0]  ;;  %v8551_v48 = vor.u32 %v10000_v62, %v8548_v36 }
 0x358   :  { %6126 = vmatpush.bf16.msrb.mxu2 %v8747_v61  ;;  %v10105_v61 = vld [vmem:[%s15366_s7 + $0xa24] sm:$0xf]  ;;  %v6311_v14 = vpack.c.bf16 %v10239_v13, %v10237_v4  ;;  %6090 = vmatpush.bf16.msra.mxu3 %v7907_v50  ;;  %v8887_v41 = vor.u32 %v10084_v38, %v8884_v51  ;;  %v7826_v4 = vld [vmem:[%s15366_s7 + $0x130] sm:$0xf]  ;;  %v8156_v13 = vld [vmem:[%s15366_s7 + $0x3e4] sm:$0xf0] }
 0x359   :  { %v8971_v53 = vor.u32 %v10105_v61, %v8968_v5  ;;  %v9909_v50 = vld [vmem:[%s15366_s7 + $0x404] sm:$0xf]  ;;  %v9822_v5 = vld [vmem:[%s15366_s7 + $0x148] sm:$0xf0]  ;;  %v9808_v44 = vld [vmem:[%s15366_s7 + $0xd8] sm:$0xf0] }
 0x35a   :  { %6006 = vmatpush.bf16.msrb.mxu1 %v8351_v27  ;;  %6320 = vst [vmem:[#allocation2 + $0x1c] sm:$0xff] %v6311_v14  ;;  %6049 = vmatmul.bf16.vlgmr.msra.gmra.mxu0 %v13218_v60  ;;  %v9829_v27 = vld [vmem:[%s15366_s7 + $0x180] sm:$0xf0]  ;;  %v9274_v14 = vld [vmem:[%s15366_s7 + $0xc88] sm:$0xf]  ;;  %v7827_v43 = vor.u32 %v9822_v5, %v7826_v4 }
 0x35b   :  { %6097 = vmatpush.bf16.msrb.mxu0 %v8327_v22  ;;  %6091 = vmatmul.bf16.vlgmr.msra.gmra.mxu3 %v12613_v39  ;;  %v8520_v38 = vld [vmem:[%s15366_s7 + $0x6bc] sm:$0xf0]  ;;  %v8078_v51 = vld [vmem:[%s15366_s7 + $0x328] sm:$0xf]  ;;  %v7714_v4 = vld [vmem:[%s15366_s7 + $0x50] sm:$0xf] }
 0x35c   :  { %6127 = vmatpush.bf16.msrb.mxu2 %v8719_v24  ;;  %6139 = vmatpush.bf16.msrb.mxu3 %v8999_v34  ;;  %v8604_v24 = vld [vmem:[%s15366_s7 + $0x764] sm:$0xf0]  ;;  %v10192_v34 = vld [vmem:[%s15366_s7 + $0xcd8] sm:$0xf0]  ;;  %v9794_v5 = vld [vmem:[%s15366_s7 + $0x68] sm:$0xf0] }
 0x35d   :  { %6007 = vmatmul.bf16.vlgmr.msrb.gmra.mxu1 %v12736_v16  ;;  %v8607_v18 = vor.u32 %v10014_v40, %v8604_v24  ;;  %v9303_v55 = vor.u32 %v10192_v34, %v9302_v7  ;;  %v9895_v24 = vld [vmem:[%s15366_s7 + $0x394] sm:$0xf]  ;;  %v8464_v25 = vld [vmem:[%s15366_s7 + $0x64c] sm:$0xf0]  ;;  %v8436_v62 = vld [vmem:[%s15366_s7 + $0x614] sm:$0xf0] }
 0x35e   :  { %6055 = vmatpush.bf16.msra.mxu1 %v9443_v57  ;;  %v8184_v57 = vld [vmem:[%s15366_s7 + $0x41c] sm:$0xf0]  ;;  %v9979_v63 = vld [vmem:[%s15366_s7 + $0x634] sm:$0xf] }
 0x35f   :  { %6098 = vmatpush.bf16.msrb.mxu0 %v8299_v2  ;;  %v8187_v61 = vor.u32 %v9909_v50, %v8184_v57  ;;  %v8859_v2 = vor.u32 %v10077_v9, %v8856_v45  ;;  %v10154_v57 = vld [vmem:[%s15366_s7 + $0xbac] sm:$0xf]  ;;  %v8492_v9 = vld [vmem:[%s15366_s7 + $0x684] sm:$0xf0]  ;;  %v8050_v45 = vld [vmem:[%s15366_s7 + $0x2f0] sm:$0xf] }
 0x360   :  { %6128 = vmatpush.bf16.msrb.mxu2 %v8691_v49  ;;  %6140 = vmatpush.bf16.msrb.mxu3 %v8971_v53  ;;  %v9330_v49 = vld [vmem:[%s15366_s7 + $0xcf8] sm:$0xf]  ;;  %v9787_v28 = vld [vmem:[%s15366_s7 + $0x30] sm:$0xf0] }
 0x361   :  { %v9331_v22 = vor.u32 %v10199_v1, %v9330_v49  ;;  %v7798_v53 = vld [vmem:[%s15366_s7 + $0xf8] sm:$0xf]  ;;  %v8107_v49 = vor.u32 %v9892_v35, %v8106_v47  ;;  %v7994_v47 = vld [vmem:[%s15366_s7 + $0x280] sm:$0xf]  ;;  %v14907_v35 = vpop.f32.mrf.mxu0 }
 0x362   :  { %6056 = vmatpush.bf16.msra.mxu1 %v9415_v10  ;;  %v10185_v10 = vld [vmem:[%s15366_s7 + $0xca0] sm:$0xf0]  ;;  %v7799_v56 = vor.u32 %v9815_v26, %v7798_v53  ;;  %v8022_v53 = vld [vmem:[%s15366_s7 + $0x2b8] sm:$0xf] }
 0x363   :  { %6099 = vmatpush.bf16.msrb.mxu0 %v8271_v23  ;;  %v9275_v40 = vor.u32 %v10185_v10, %v9274_v14  ;;  %v8128_v23 = vld [vmem:[%s15366_s7 + $0x3ac] sm:$0xf0]  ;;  %v7686_v26 = vld [vmem:[%s15366_s7 + $0x18] sm:$0xf] }
 0x364   :  { %6129 = vmatpush.bf16.msrb.mxu2 %v8663_v3  ;;  %6141 = vmatpush.bf16.msrb.mxu3 %v8943_v30  ;;  %v7855_v3 = vor.u32 %v9829_v27, %v7854_v21  ;;  %v10168_v30 = vld [vmem:[%s15366_s7 + $0xc1c] sm:$0xf]  ;;  %v8131_v15 = vor.u32 %v9895_v24, %v8128_v23  ;;  %v7742_v21 = vld [vmem:[%s15366_s7 + $0x88] sm:$0xf]  ;;  %v9801_v27 = vld [vmem:[%s15366_s7 + $0xa0] sm:$0xf0] }
 0x365   :  { %v7743_v34 = vor.u32 %v9801_v27, %v7742_v21  ;;  %v9136_v14 = vld [vmem:[%s15366_s7 + $0xb8c] sm:$0xf0]  ;;  %v8778_v24 = vld [vmem:[%s15366_s7 + $0x8a0] sm:$0xf]  ;;  %v10060_v23 = vld [vmem:[%s15366_s7 + $0x8b8] sm:$0xf0] }
 0x366   :  { %6057 = vmatpush.bf16.msra.mxu1 %v9387_v52  ;;  %v10063_v52 = vld [vmem:[%s15366_s7 + $0x8d4] sm:$0xf]  ;;  %v8779_v36 = vor.u32 %v10060_v23, %v8778_v24  ;;  %v8722_v27 = vld [vmem:[%s15366_s7 + $0x830] sm:$0xf]  ;;  %v10224_v23 = vld [vmem:[%s15366_s7 + $0xddc] sm:$0xf] }
 0x367   :  { %6100 = vmatpush.bf16.msrb.mxu0 %v8243_v42  ;;  %v7770_v42 = vld [vmem:[%s15366_s7 + $0xc0] sm:$0xf]  ;;  %v8803_v58 = vor.u32 %v10063_v52, %v8800_v37  ;;  %v8467_v52 = vor.u32 %v9979_v63, %v8464_v25  ;;  %v9108_v37 = vld [vmem:[%s15366_s7 + $0xb54] sm:$0xf0] }
 0x368   :  { %6130 = vmatpush.bf16.msrb.mxu2 %v8635_v59  ;;  %6142 = vmatpush.bf16.msrb.mxu3 %v8915_v0  ;;  %v8159_v59 = vor.u32 %v9902_v33, %v8156_v13  ;;  %v10161_v0 = vld [vmem:[%s15366_s7 + $0xbe4] sm:$0xf]  ;;  %v7771_v1 = vor.u32 %v9808_v44, %v7770_v42  ;;  %v8750_v44 = vld [vmem:[%s15366_s7 + $0x868] sm:$0xf]  ;;  %v7910_v63 = vld [vmem:[%s15366_s7 + $0x1d8] sm:$0xf] }
 0x36a   :  { %6058 = vmatpush.bf16.msra.mxu1 %v9359_v11 }
 0x36b   :  { %6101 = vmatpush.bf16.msrb.mxu0 %v8215_v54  ;;  %v9885_v54 = vld [vmem:[%s15366_s7 + $0x340] sm:$0xf0] }
 0x36c   :  { %6131 = vmatpush.bf16.msrb.mxu2 %v8607_v18  ;;  %6143 = vmatpush.bf16.msrb.mxu3 %v8887_v41  ;;  %v9220_v18 = vld [vmem:[%s15366_s7 + $0xc34] sm:$0xf0]  ;;  %v9164_v41 = vld [vmem:[%s15366_s7 + $0xbc4] sm:$0xf0]  ;;  %v8079_v7 = vor.u32 %v9885_v54, %v8078_v51  ;;  %v9857_v51 = vld [vmem:[%s15366_s7 + $0x260] sm:$0xf0]  ;;  %v14935_v54 = vpop.f32.mrf.mxu1 }
 0x36d   :  { %v9223_v11 = vor.u32 %v10168_v30, %v9220_v18  ;;  %v9167_v33 = vor.u32 %v10154_v57, %v9164_v41  ;;  %v7687_v18 = vor.u32 %v9787_v28, %v7686_v26  ;;  %v10126_v57 = vld [vmem:[%s15366_s7 + $0xacc] sm:$0xf]  ;;  %v9052_v41 = vld [vmem:[%s15366_s7 + $0xae4] sm:$0xf0]  ;;  %v9843_v26 = vld [vmem:[%s15366_s7 + $0x1f0] sm:$0xf0] }
 0x36e   :  { %6059 = vmatpush.bf16.msra.mxu1 %v9331_v22  ;;  %v8330_v28 = vld [vmem:[%s15366_s7 + $0x520] sm:$0xf] }
 0x36f   :  { %6102 = vmatpush.bf16.msrb.mxu0 %v8187_v61  ;;  %v9878_v61 = vld [vmem:[%s15366_s7 + $0x308] sm:$0xf0] }
 0x370   :  { %6132 = vmatpush.bf16.msrb.mxu2 %v8579_v17  ;;  %6144 = vmatpush.bf16.msrb.mxu3 %v8859_v2  ;;  %v9192_v17 = vld [vmem:[%s15366_s7 + $0xbfc] sm:$0xf0]  ;;  %v10147_v2 = vld [vmem:[%s15366_s7 + $0xb74] sm:$0xf]  ;;  %v8051_v10 = vor.u32 %v9878_v61, %v8050_v45  ;;  %v7938_v45 = vld [vmem:[%s15366_s7 + $0x210] sm:$0xf] }
 0x371   :  { %v9195_v22 = vor.u32 %v10161_v0, %v9192_v17  ;;  %v9850_v61 = vld [vmem:[%s15366_s7 + $0x228] sm:$0xf0] }
 0x372   :  { %6060 = vmatpush.bf16.msra.mxu1 %v9303_v55  ;;  %v14854_v55 = vpop.f32.mrf.mxu2 }
 0x373   :  { %6133 = vmatmul.bf16.vlgmr.msrb.gmra.mxu2 %v12884_v8  ;;  %6103 = vmatpush.bf16.msrb.mxu0 %v8159_v59  ;;  %v9871_v59 = vld [vmem:[%s15366_s7 + $0x2d0] sm:$0xf0] }
 0x374   :  { %6181 = vmatpush.bf16.msra.mxu2 %v7883_v32  ;;  %6145 = vmatpush.bf16.msrb.mxu3 %v8831_v29  ;;  %v9993_v32 = vld [vmem:[%s15366_s7 + $0x6a4] sm:$0xf]  ;;  %v10140_v29 = vld [vmem:[%s15366_s7 + $0xb3c] sm:$0xf]  ;;  %v8023_v30 = vor.u32 %v9871_v59, %v8022_v53  ;;  %v14987_v53 = vpop.f32.mrf.mxu0  ;;  %v7939_v59 = vor.u32 %v9850_v61, %v7938_v45  ;;  %v10102_v61 = vld [vmem:[%s15366_s7 + $0xa08] sm:$0xf0] }
 0x375   :  { %v8523_v50 = vor.u32 %v9993_v32, %v8520_v38  ;;  %v9111_v42 = vor.u32 %v10140_v29, %v9108_v37  ;;  %v7966_v38 = vld [vmem:[%s15366_s7 + $0x248] sm:$0xf]  ;;  %v9002_v29 = vld [vmem:[%s15366_s7 + $0xa60] sm:$0xf] }
 0x376   :  { %6061 = vmatpush.bf16.msra.mxu1 %v9275_v40  ;;  %v9139_v40 = vor.u32 %v10147_v2, %v9136_v14  ;;  %v8352_v2 = vld [vmem:[%s15366_s7 + $0x56c] sm:$0xf0] }
 0x377   :  { %6104 = vmatpush.bf16.msrb.mxu0 %v8131_v15  ;;  %v9864_v15 = vld [vmem:[%s15366_s7 + $0x298] sm:$0xf0] }
 0x378   :  { %6182 = vmatpush.bf16.msra.mxu2 %v7855_v3  ;;  %6146 = vmatpush.bf16.msrb.mxu3 %v8803_v58  ;;  %v9986_v3 = vld [vmem:[%s15366_s7 + $0x66c] sm:$0xf]  ;;  %v10133_v58 = vld [vmem:[%s15366_s7 + $0xb04] sm:$0xf]  ;;  %v7995_v17 = vor.u32 %v9864_v15, %v7994_v47  ;;  %v15018_v15 = vpop.f32.mrf.mxu1 }
 0x379   :  { %v8495_v13 = vor.u32 %v9986_v3, %v8492_v9  ;;  %v9958_v3 = vld [vmem:[%s15366_s7 + $0x58c] sm:$0xf] }
 0x37a   :  { %6062 = vmatpush.bf16.msra.mxu1 %v9247_v46  ;;  %6105 = vmatmul.bf16.vlgmr.msrb.gmra.mxu0 %v12757_v12  ;;  %v10053_v46 = vld [vmem:[%s15366_s7 + $0x880] sm:$0xf0]  ;;  %v14921_v0 = vpop.f32.mrf.mxu2 }
 0x37b   :  { %6153 = vmatpush.bf16.msra.mxu0 %v9223_v11  ;;  %6147 = vmatmul.bf16.vlgmr.msrb.gmra.mxu3 %v13054_v20  ;;  %v8751_v32 = vor.u32 %v10053_v46, %v8750_v44  ;;  %v8302_v46 = vld [vmem:[%s15366_s7 + $0x4e8] sm:$0xf] }
 0x37c   :  { %6183 = vmatpush.bf16.msra.mxu2 %v7827_v43  ;;  %6195 = vmatpush.bf16.msra.mxu3 %v8107_v49  ;;  %v7715_v43 = vor.u32 %v9794_v5, %v7714_v4  ;;  %v9965_v49 = vld [vmem:[%s15366_s7 + $0x5c4] sm:$0xf]  ;;  %v8694_v4 = vld [vmem:[%s15366_s7 + $0x7f8] sm:$0xf]  ;;  %v9055_v5 = vor.u32 %v10126_v57, %v9052_v41  ;;  %v9934_v57 = vld [vmem:[%s15366_s7 + $0x4c8] sm:$0xf0] }
 0x37d   :  { %6063 = vmatmul.bf16.vlgmr.msra.gmra.mxu1 %v13366_v31 }
 0x37e   :  { %6111 = vmatpush.bf16.msrb.mxu1 %v8551_v48  ;;  %v9080_v48 = vld [vmem:[%s15366_s7 + $0xb1c] sm:$0xf0] }
 0x37f   :  { %6154 = vmatpush.bf16.msra.mxu0 %v9195_v22  ;;  %v9083_v21 = vor.u32 %v10133_v58, %v9080_v48  ;;  %v10046_v22 = vld [vmem:[%s15366_s7 + $0x848] sm:$0xf0] }
 0x380   :  { %6184 = vmatpush.bf16.msra.mxu2 %v7799_v56  ;;  %6196 = vmatpush.bf16.msra.mxu3 %v8079_v7  ;;  %v9972_v56 = vld [vmem:[%s15366_s7 + $0x5fc] sm:$0xf]  ;;  %v14950_v7 = vpop.f32.mrf.mxu3  ;;  %v8723_v9 = vor.u32 %v10046_v22, %v8722_v27  ;;  %v15044_v27 = vpop.f32.mrf.mxu0 }
 0x381   :  { %v8439_v11 = vor.u32 %v9972_v56, %v8436_v62  ;;  %v10032_v56 = vld [vmem:[%s15366_s7 + $0x7d8] sm:$0xf0] }
 0x382   :  { %6112 = vmatpush.bf16.msrb.mxu1 %v8523_v50  ;;  %v14985_v25 = vpop.f32.mrf.mxu2 }
 0x383   :  { %6155 = vmatpush.bf16.msra.mxu0 %v9167_v33  ;;  %v10039_v33 = vld [vmem:[%s15366_s7 + $0x810] sm:$0xf0] }
 0x384   :  { %6185 = vmatpush.bf16.msra.mxu2 %v7771_v1  ;;  %6197 = vmatpush.bf16.msra.mxu3 %v8051_v10  ;;  %v8408_v1 = vld [vmem:[%s15366_s7 + $0x5dc] sm:$0xf0]  ;;  %v10119_v10 = vld [vmem:[%s15366_s7 + $0xa94] sm:$0xf]  ;;  %v8695_v24 = vor.u32 %v10039_v33, %v8694_v4  ;;  %v8610_v4 = vld [vmem:[%s15366_s7 + $0x750] sm:$0xf] }
 0x385   :  { %v8411_v50 = vor.u32 %v9965_v49, %v8408_v1  ;;  %v9416_v49 = vld [vmem:[%s15366_s7 + $0xdbc] sm:$0xf0]  ;;  %v8974_v1 = vld [vmem:[%s15366_s7 + $0xa28] sm:$0xf] }
 0x386   :  { %6113 = vmatpush.bf16.msrb.mxu1 %v8495_v13  ;;  %v9951_v13 = vld [vmem:[%s15366_s7 + $0x554] sm:$0xf] }
 0x387   :  { %6156 = vmatpush.bf16.msra.mxu0 %v9139_v40  ;;  %v9948_v40 = vld [vmem:[%s15366_s7 + $0x538] sm:$0xf0]  ;;  %v8355_v62 = vor.u32 %v9951_v13, %v8352_v2  ;;  %v15075_v13 = vpop.f32.mrf.mxu1 }
 0x388   :  { %6186 = vmatpush.bf16.msra.mxu2 %v7743_v34  ;;  %6198 = vmatpush.bf16.msra.mxu3 %v8023_v30  ;;  %v7967_v34 = vor.u32 %v9857_v51, %v7966_v38  ;;  %v10116_v30 = vld [vmem:[%s15366_s7 + $0xa78] sm:$0xf0]  ;;  %v15016_v47 = vpop.f32.mrf.mxu3  ;;  %v8638_v38 = vld [vmem:[%s15366_s7 + $0x788] sm:$0xf]  ;;  %v10025_v51 = vld [vmem:[%s15366_s7 + $0x7a0] sm:$0xf0] }
 0x389   :  { %v9003_v58 = vor.u32 %v10116_v30, %v9002_v29  ;;  %v9920_v30 = vld [vmem:[%s15366_s7 + $0x458] sm:$0xf0] }
 0x38a   :  { %6114 = vmatpush.bf16.msrb.mxu1 %v8467_v52  ;;  %v9444_v52 = vld [vmem:[%s15366_s7 + $0xdf4] sm:$0xf0]  ;;  %v15061_v45 = vpop.f32.mrf.mxu2 }
 0x38b   :  { %6157 = vmatpush.bf16.msra.mxu0 %v9111_v42  ;;  %v7911_v42 = vor.u32 %v9843_v26, %v7910_v63  ;;  %v9447_v44 = vor.u32 %v10224_v23, %v9444_v52  ;;  %v8918_v26 = vld [vmem:[%s15366_s7 + $0x9b8] sm:$0xf]  ;;  %v10011_v23 = vld [vmem:[%s15366_s7 + $0x730] sm:$0xf0] }
 0x38c   :  { %6187 = vmatpush.bf16.msra.mxu2 %v7715_v43  ;;  %6199 = vmatpush.bf16.msra.mxu3 %v7995_v17  ;;  %v9024_v43 = vld [vmem:[%s15366_s7 + $0xaac] sm:$0xf0]  ;;  %v10217_v17 = vld [vmem:[%s15366_s7 + $0xda4] sm:$0xf] }
 0x38d   :  { %v9027_v37 = vor.u32 %v10119_v10, %v9024_v43  ;;  %v9419_v22 = vor.u32 %v10217_v17, %v9416_v49  ;;  %v9927_v10 = vld [vmem:[%s15366_s7 + $0x490] sm:$0xf0]  ;;  %v8190_v17 = vld [vmem:[%s15366_s7 + $0x408] sm:$0xf]  ;;  %v9913_v49 = vld [vmem:[%s15366_s7 + $0x420] sm:$0xf0] }
 0x38e   :  { %6115 = vmatpush.bf16.msrb.mxu1 %v8439_v11  ;;  %v9941_v11 = vld [vmem:[%s15366_s7 + $0x500] sm:$0xf0] }
 0x38f   :  { %6158 = vmatpush.bf16.msra.mxu0 %v9083_v21  ;;  %v8303_v21 = vor.u32 %v9941_v11, %v8302_v46  ;;  %v8890_v46 = vld [vmem:[%s15366_s7 + $0x980] sm:$0xf]  ;;  %v10088_v11 = vld [vmem:[%s15366_s7 + $0x998] sm:$0xf0] }
 0x390   :  { %6188 = vmatpush.bf16.msra.mxu2 %v7687_v18  ;;  %6200 = vmatpush.bf16.msra.mxu3 %v7967_v34  ;;  %v8666_v18 = vld [vmem:[%s15366_s7 + $0x7c0] sm:$0xf]  ;;  %v8639_v34 = vor.u32 %v10025_v51, %v8638_v38 }
 0x391   :  { %v8667_v48 = vor.u32 %v10032_v56, %v8666_v18  ;;  %v9304_v38 = vld [vmem:[%s15366_s7 + $0xcdc] sm:$0xf0] }
 0x392   :  { %6116 = vmatpush.bf16.msrb.mxu1 %v8411_v50  ;;  %v8274_v50 = vld [vmem:[%s15366_s7 + $0x4b0] sm:$0xf]  ;;  %v15138_v51 = vld [vmem:[%s15367_s8] sm:$0x7f] }
 0x393   :  { %6189 = vmatmul.bf16.vlgmr.msra.gmra.mxu2 %v12657_v6  ;;  %v8380_v6 = vld [vmem:[%s15366_s7 + $0x5a4] sm:$0xf0]  ;;  %6159 = vmatpush.bf16.msra.mxu0 %v9055_v5  ;;  %v10018_v5 = vld [vmem:[%s15366_s7 + $0x768] sm:$0xf0]  ;;  %v8275_v33 = vor.u32 %v9934_v57, %v8274_v50  ;;  %v15141_v50 = vpop.f32.mrf.mxu1 }
 0x394   :  { %6237 = vmatpush.bf16.msrb.mxu2 %v8779_v36  ;;  %v8383_v14 = vor.u32 %v9958_v3, %v8380_v6  ;;  %v8331_v36 = vor.u32 %v9948_v40, %v8330_v28  ;;  %6201 = vmatpush.bf16.msra.mxu3 %v7939_v59  ;;  %v10210_v3 = vld [vmem:[%s15366_s7 + $0xd6c] sm:$0xf]  ;;  %v9388_v6 = vld [vmem:[%s15366_s7 + $0xd84] sm:$0xf0]  ;;  %v8611_v63 = vor.u32 %v10018_v5, %v8610_v4  ;;  %v9360_v59 = vld [vmem:[%s15366_s7 + $0xd4c] sm:$0xf0]  ;;  %v15092_v28 = vpop.f32.mrf.mxu3 }
 0x395   :  { %v9391_v2 = vor.u32 %v10210_v3, %v9388_v6  ;;  %v10095_v40 = vld [vmem:[%s15366_s7 + $0x9d0] sm:$0xf0]  ;;  %v8862_v57 = vld [vmem:[%s15366_s7 + $0x948] sm:$0xf]  ;;  %v8162_v6 = vld [vmem:[%s15366_s7 + $0x3d0] sm:$0xf] }
 0x396   :  { %6117 = vmatpush.bf16.msrb.mxu1 %v8383_v14  ;;  %v8246_v14 = vld [vmem:[%s15366_s7 + $0x478] sm:$0xf]  ;;  %v8919_v18 = vor.u32 %v10095_v40, %v8918_v26  ;;  %v10182_v5 = vld [vmem:[%s15366_s7 + $0xc8c] sm:$0xf]  ;;  %v9248_v26 = vld [vmem:[%s15366_s7 + $0xc6c] sm:$0xf0] }
 0x397   :  { %6160 = vmatpush.bf16.msra.mxu0 %v9027_v37  ;;  %v8247_v52 = vor.u32 %v9927_v10, %v8246_v14  ;;  %v8218_v37 = vld [vmem:[%s15366_s7 + $0x440] sm:$0xf]  ;;  %v8834_v14 = vld [vmem:[%s15366_s7 + $0x910] sm:$0xf]  ;;  %v10074_v10 = vld [vmem:[%s15366_s7 + $0x928] sm:$0xf0] }
 0x398   :  { %6238 = vmatpush.bf16.msrb.mxu2 %v8751_v32  ;;  %v10109_v32 = vld [vmem:[%s15366_s7 + $0xa40] sm:$0xf0]  ;;  %6202 = vmatpush.bf16.msra.mxu3 %v7911_v42  ;;  %v5854_v42 = vpop.f32.mrf.mxu2  ;;  %v8134_v40 = vld [vmem:[%s15366_s7 + $0x398] sm:$0xf] }
 0x399   :  { %v8975_v41 = vor.u32 %v10109_v32, %v8974_v1  ;;  %v8891_v1 = vor.u32 %v10088_v11, %v8890_v46  ;;  %v10189_v32 = vld [vmem:[%s15366_s7 + $0xcc4] sm:$0xf] }
 0x39a   :  { %6118 = vmatpush.bf16.msrb.mxu1 %v8355_v62  ;;  %6161 = vmatmul.bf16.vlgmr.msra.gmra.mxu0 %v13218_v60  ;;  %v10196_v62 = vld [vmem:[%s15366_s7 + $0xcfc] sm:$0xf]  ;;  %v9307_v3 = vor.u32 %v10189_v32, %v9304_v38  ;;  %v9198_v32 = vld [vmem:[%s15366_s7 + $0xbe8] sm:$0xf]  ;;  %v10165_v38 = vld [vmem:[%s15366_s7 + $0xc00] sm:$0xf0] }
 0x39b   :  { %6209 = vmatpush.bf16.msrb.mxu0 %v8331_v36  ;;  %6203 = vmatmul.bf16.vlgmr.msra.gmra.mxu3 %v12613_v39  ;;  %v10203_v39 = vld [vmem:[%s15366_s7 + $0xd34] sm:$0xf]  ;;  %v9332_v36 = vld [vmem:[%s15366_s7 + $0xd14] sm:$0xf0] }
 0x39c   :  { %6239 = vmatpush.bf16.msrb.mxu2 %v8723_v9  ;;  %6251 = vmatpush.bf16.msrb.mxu3 %v9003_v58  ;;  %v8946_v9 = vld [vmem:[%s15366_s7 + $0x9f0] sm:$0xf]  ;;  %v9363_v29 = vor.u32 %v10203_v39, %v9360_v59  ;;  %v8219_v58 = vor.u32 %v9920_v30, %v8218_v37  ;;  %v10172_v37 = vld [vmem:[%s15366_s7 + $0xc38] sm:$0xf0] }
 0x39d   :  { %6119 = vmatmul.bf16.vlgmr.msrb.gmra.mxu1 %v12736_v16  ;;  %v8947_v43 = vor.u32 %v10102_v61, %v8946_v9  ;;  %v9906_v9 = vld [vmem:[%s15366_s7 + $0x3e8] sm:$0xf0]  ;;  %v3194_v61 = vperm.slane %v15138_v51, 3 }
 0x39e   :  { %6167 = vmatpush.bf16.msra.mxu1 %v9447_v44  ;;  %v15115_v44 = vpop.f32.mrf.mxu0 }
 0x39f   :  { %6210 = vmatpush.bf16.msrb.mxu0 %v8303_v21  ;;  %v3193_v21 = vperm.slane %v15138_v51, 2 }
 0x3a0   :  { %6240 = vmatpush.bf16.msrb.mxu2 %v8695_v24  ;;  %6252 = vmatpush.bf16.msrb.mxu3 %v8975_v41  ;;  %v8582_v24 = vld [vmem:[%s15366_s7 + $0x718] sm:$0xf]  ;;  %v10081_v41 = vld [vmem:[%s15366_s7 + $0x960] sm:$0xf0]  ;;  %v5856_v59 = vpop.f32.mrf.mxu2 }
 0x3a1   :  { %v8583_v56 = vor.u32 %v10011_v23, %v8582_v24  ;;  %v8863_v4 = vor.u32 %v10081_v41, %v8862_v57  ;;  %v9899_v24 = vld [vmem:[%s15366_s7 + $0x3b0] sm:$0xf0]  ;;  %v5855_v23 = vadd.f32 %v5854_v42, %v3194_v61  ;;  %v9997_v57 = vld [vmem:[%s15366_s7 + $0x6c0] sm:$0xf0] }
 0x3a2   :  { %6168 = vmatpush.bf16.msra.mxu1 %v9419_v22  ;;  %v5868_v22 = vpop.f32.mrf.mxu3  ;;  %v8135_v46 = vor.u32 %v9899_v24, %v8134_v40 }
 0x3a3   :  { %6211 = vmatpush.bf16.msrb.mxu0 %v8275_v33  ;;  %v5743_v33 = vadd.f32 %v14854_v55, %v3193_v21  ;;  %v5869_v42 = vadd.f32 %v5868_v22, %v5855_v23  ;;  %v5745_v22 = vadd.f32 %v14921_v0, %v3193_v21  ;;  %v5857_v0 = vadd.f32 %v5856_v59, %v3194_v61  ;;  %v9990_v61 = vld [vmem:[%s15366_s7 + $0x688] sm:$0xf0]  ;;  %v9142_v59 = vld [vmem:[%s15366_s7 + $0xb78] sm:$0xf] }
 0x3a4   :  { %6241 = vmatpush.bf16.msrb.mxu2 %v8667_v48  ;;  %6253 = vmatpush.bf16.msrb.mxu3 %v8947_v43  ;;  %v9335_v48 = vor.u32 %v10196_v62, %v9332_v36  ;;  %v8163_v43 = vor.u32 %v9906_v9, %v8162_v6  ;;  %v8554_v62 = vld [vmem:[%s15366_s7 + $0x6e0] sm:$0xf]  ;;  %v10004_v36 = vld [vmem:[%s15366_s7 + $0x6f8] sm:$0xf0] }
 0x3a5   :  { %v5757_v39 = vadd.f32 %v14881_v19, %v5743_v33  ;;  %v8806_v19 = vld [vmem:[%s15366_s7 + $0x8d8] sm:$0xf] }
 0x3a6   :  { %6169 = vmatpush.bf16.msra.mxu1 %v9391_v2  ;;  %v5882_v2 = vpop.f32.mrf.mxu0 }
 0x3a7   :  { %6212 = vmatpush.bf16.msrb.mxu0 %v8247_v52  ;;  %v8835_v52 = vor.u32 %v10074_v10, %v8834_v14  ;;  %v5771_v30 = vadd.f32 %v14907_v35, %v5757_v39 }
 0x3a8   :  { %6242 = vmatpush.bf16.msrb.mxu2 %v8639_v34  ;;  %6254 = vmatpush.bf16.msrb.mxu3 %v8919_v18  ;;  %v8191_v34 = vor.u32 %v9913_v49, %v8190_v17  ;;  %v5896_v18 = vpop.f32.mrf.mxu1  ;;  %v5883_v17 = vadd.f32 %v5882_v2, %v5869_v42  ;;  %v5910_v6 = vpop.f32.mrf.mxu2 }
 0x3a9   :  { %v5785_v11 = vadd.f32 %v14935_v54, %v5771_v30  ;;  %v8526_v54 = vld [vmem:[%s15366_s7 + $0x6a8] sm:$0xf] }
 0x3aa   :  { %6170 = vmatpush.bf16.msra.mxu1 %v9363_v29  ;;  %v9226_v29 = vld [vmem:[%s15366_s7 + $0xc20] sm:$0xf]  ;;  %v5897_v41 = vadd.f32 %v5896_v18, %v5883_v17  ;;  %v8527_v21 = vor.u32 %v9997_v57, %v8526_v54  ;;  %v9969_v17 = vld [vmem:[%s15366_s7 + $0x5e0] sm:$0xf0]  ;;  %v10130_v54 = vld [vmem:[%s15366_s7 + $0xae8] sm:$0xf0] }
 0x3ab   :  { %6213 = vmatpush.bf16.msrb.mxu0 %v8219_v58  ;;  %v5870_v58 = vpop.f32.mrf.mxu3 }
 0x3ac   :  { %6243 = vmatpush.bf16.msrb.mxu2 %v8611_v63  ;;  %6255 = vmatpush.bf16.msrb.mxu3 %v8891_v1  ;;  %v10175_v63 = vld [vmem:[%s15366_s7 + $0xc54] sm:$0xf]  ;;  %v8555_v1 = vor.u32 %v10004_v36, %v8554_v62  ;;  %v5871_v33 = vadd.f32 %v5870_v58, %v5857_v0  ;;  %v5911_v2 = vadd.f32 %v5910_v6, %v5897_v41 }
 0x3ad   :  { %v9251_v35 = vor.u32 %v10175_v63, %v9248_v26 }
 0x3ae   :  { %6171 = vmatpush.bf16.msra.mxu1 %v9335_v48  ;;  %v9227_v48 = vor.u32 %v10172_v37, %v9226_v29  ;;  %v5884_v9 = vpop.f32.mrf.mxu0  ;;  %v9114_v29 = vld [vmem:[%s15366_s7 + $0xb40] sm:$0xf]  ;;  %v10144_v37 = vld [vmem:[%s15366_s7 + $0xb58] sm:$0xf0] }
 0x3af   :  { %6214 = vmatpush.bf16.msrb.mxu0 %v8191_v34  ;;  %v5759_v34 = vadd.f32 %v14950_v7, %v5745_v22  ;;  %v5885_v63 = vadd.f32 %v5884_v9, %v5871_v33  ;;  %v9058_v22 = vld [vmem:[%s15366_s7 + $0xad0] sm:$0xf]  ;;  %v9450_v33 = vld [vmem:[%s15366_s7 + $0xde0] sm:$0xf] }
 0x3b0   :  { %6244 = vmatpush.bf16.msrb.mxu2 %v8583_v56  ;;  %6256 = vmatpush.bf16.msrb.mxu3 %v8863_v4  ;;  %v10067_v56 = vld [vmem:[%s15366_s7 + $0x8f0] sm:$0xf0]  ;;  %v9199_v4 = vor.u32 %v10165_v38, %v9198_v32  ;;  %v5912_v30 = vpop.f32.mrf.mxu2 }
 0x3b1   :  { %v8807_v49 = vor.u32 %v10067_v56, %v8806_v19  ;;  %v5773_v7 = vadd.f32 %v14987_v53, %v5759_v34  ;;  %v5898_v53 = vpop.f32.mrf.mxu1  ;;  %v8386_v34 = vld [vmem:[%s15366_s7 + $0x590] sm:$0xf] }
 0x3b2   :  { %6172 = vmatpush.bf16.msra.mxu1 %v9307_v3  ;;  %v5799_v3 = vadd.f32 %v14985_v25, %v5785_v11  ;;  %v8498_v25 = vld [vmem:[%s15366_s7 + $0x670] sm:$0xf]  ;;  %v5899_v26 = vadd.f32 %v5898_v53, %v5885_v63  ;;  %v9422_v53 = vld [vmem:[%s15366_s7 + $0xda8] sm:$0xf] }
 0x3b3   :  { %6245 = vmatmul.bf16.vlgmr.msrb.gmra.mxu2 %v12884_v8  ;;  %v9276_v8 = vld [vmem:[%s15366_s7 + $0xca4] sm:$0xf0]  ;;  %6215 = vmatpush.bf16.msrb.mxu0 %v8163_v43  ;;  %v5787_v10 = vadd.f32 %v15018_v15, %v5773_v7  ;;  %v5924_v43 = vpop.f32.mrf.mxu3  ;;  %v8499_v39 = vor.u32 %v9990_v61, %v8498_v25  ;;  %v8358_v25 = vld [vmem:[%s15366_s7 + $0x558] sm:$0xf]  ;;  %v9955_v61 = vld [vmem:[%s15366_s7 + $0x570] sm:$0xf0] }
 0x3b4   :  { %v9279_v55 = vor.u32 %v10182_v5, %v9276_v8  ;;  %6257 = vmatpush.bf16.msrb.mxu3 %v8835_v52  ;;  %v9170_v5 = vld [vmem:[%s15366_s7 + $0xbb0] sm:$0xf]  ;;  %v10158_v8 = vld [vmem:[%s15366_s7 + $0xbc8] sm:$0xf0]  ;;  %v5813_v14 = vadd.f32 %v15016_v47, %v5799_v3  ;;  %v8470_v47 = vld [vmem:[%s15366_s7 + $0x638] sm:$0xf]  ;;  %v5925_v15 = vadd.f32 %v5924_v43, %v5911_v2  ;;  %v5913_v62 = vadd.f32 %v5912_v30, %v5899_v26 }
 0x3b5   :  { %v5801_v24 = vadd.f32 %v15061_v45, %v5787_v10  ;;  %v9976_v45 = vld [vmem:[%s15366_s7 + $0x618] sm:$0xf0]  ;;  %v8359_v10 = vor.u32 %v9955_v61, %v8358_v25  ;;  %v9366_v26 = vld [vmem:[%s15366_s7 + $0xd38] sm:$0xf]  ;;  %v10186_v30 = vld [vmem:[%s15366_s7 + $0xca8] sm:$0xf0] }
 0x3b6   :  { %6173 = vmatpush.bf16.msra.mxu1 %v9279_v55  ;;  %v10151_v55 = vld [vmem:[%s15366_s7 + $0xb90] sm:$0xf0]  ;;  %v5827_v40 = vadd.f32 %v15044_v27, %v5813_v14  ;;  %v5938_v23 = vpop.f32.mrf.mxu0  ;;  %v8442_v27 = vld [vmem:[%s15366_s7 + $0x600] sm:$0xf]  ;;  %v10228_v2 = vld [vmem:[%s15366_s7 + $0xdf8] sm:$0xf0] }
 0x3b7   :  { %6216 = vmatpush.bf16.msrb.mxu0 %v8135_v46  ;;  %v9143_v52 = vor.u32 %v10151_v55, %v9142_v59  ;;  %v5939_v56 = vadd.f32 %v5938_v23, %v5925_v15  ;;  %v5815_v36 = vadd.f32 %v15092_v28, %v5801_v24  ;;  %v9115_v46 = vor.u32 %v10144_v37, %v9114_v29  ;;  %v8414_v28 = vld [vmem:[%s15366_s7 + $0x5c8] sm:$0xf]  ;;  %v9338_v24 = vld [vmem:[%s15366_s7 + $0xd00] sm:$0xf]  ;;  %v9282_v37 = vld [vmem:[%s15366_s7 + $0xc90] sm:$0xf] }
 0x3b8   :  { %6258 = vmatpush.bf16.msrb.mxu3 %v8807_v49  ;;  %v5841_v18 = vadd.f32 %v15075_v13, %v5827_v40  ;;  %v8443_v58 = vor.u32 %v9976_v45, %v8442_v27  ;;  %v9086_v13 = vld [vmem:[%s15366_s7 + $0xb08] sm:$0xf]  ;;  %v8415_v38 = vor.u32 %v9969_v17, %v8414_v28  ;;  %v9451_v43 = vor.u32 %v10228_v2, %v9450_v33  ;;  %v9254_v27 = vld [vmem:[%s15366_s7 + $0xc58] sm:$0xf]  ;;  %v10179_v45 = vld [vmem:[%s15366_s7 + $0xc70] sm:$0xf0] }
 0x3ba   :  { %6174 = vmatpush.bf16.msra.mxu1 %v9251_v35  ;;  %6217 = vmatmul.bf16.vlgmr.msrb.gmra.mxu0 %v12757_v12  ;;  %v9171_v12 = vor.u32 %v10158_v8, %v9170_v5  ;;  %v5952_v42 = vpop.f32.mrf.mxu1  ;;  %v10137_v35 = vld [vmem:[%s15366_s7 + $0xb20] sm:$0xf0]  ;;  %10240 = vtanh.f32 %v5841_v18  ;;  %v10123_v8 = vld [vmem:[%s15366_s7 + $0xab0] sm:$0xf0]  ;;  %v9283_v18 = vor.u32 %v10186_v30, %v9282_v37 }
 0x3bb   :  { %6265 = vmatpush.bf16.msra.mxu0 %v9227_v48  ;;  %6259 = vmatmul.bf16.vlgmr.msrb.gmra.mxu3 %v13054_v20  ;;  %v9983_v20 = vld [vmem:[%s15366_s7 + $0x650] sm:$0xf0]  ;;  %v5953_v11 = vadd.f32 %v5952_v42, %v5939_v56  ;;  %v5926_v48 = vpop.f32.mrf.mxu3  ;;  %v9087_v32 = vor.u32 %v10137_v35, %v9086_v13  ;;  %v9255_v56 = vor.u32 %v10179_v45, %v9254_v27 }
 0x3bc   :  { %v8471_v19 = vor.u32 %v9983_v20, %v8470_v47  ;;  %v5927_v49 = vadd.f32 %v5926_v48, %v5913_v62  ;;  %v9394_v47 = vld [vmem:[%s15366_s7 + $0xd70] sm:$0xf]  ;;  %v10214_v20 = vld [vmem:[%s15366_s7 + $0xd88] sm:$0xf0]  ;;  %v5966_v62 = vpop.f32.mrf.mxu2 }
 0x3bd   :  { %6175 = vmatmul.bf16.vlgmr.msra.gmra.mxu1 %v13366_v31  ;;  %10242 = vtanh.f32 %v5953_v11  ;;  %v9395_v15 = vor.u32 %v10214_v20, %v9394_v47 }
 0x3be   :  { %6223 = vmatpush.bf16.msrb.mxu1 %v8555_v1  ;;  %v5829_v1 = vadd.f32 %v15115_v44, %v5815_v36  ;;  %v5940_v41 = vpop.f32.mrf.mxu0  ;;  %v9962_v44 = vld [vmem:[%s15366_s7 + $0x5a8] sm:$0xf0] }
 0x3bf   :  { %6266 = vmatpush.bf16.msra.mxu0 %v9199_v4  ;;  %v5941_v3 = vadd.f32 %v5940_v41, %v5927_v49  ;;  %v9059_v4 = vor.u32 %v10130_v54, %v9058_v22  ;;  %v8387_v5 = vor.u32 %v9962_v44, %v8386_v34  ;;  %v3195_v54 = vperm.slane %v15138_v51, 4 }
 0x3c0   :  { %v5843_v57 = vadd.f32 %v15141_v50, %v5829_v1  ;;  %v10241_v6 = vpop.eup %10240  ;;  %v9030_v50 = vld [vmem:[%s15366_s7 + $0xa98] sm:$0xf]  ;;  %v3196_v41 = vperm.slane %v15138_v51, 5 }
 0x3c1   :  { %v9031_v14 = vor.u32 %v10123_v8, %v9030_v50  ;;  %v5967_v34 = vadd.f32 %v5966_v62, %v3195_v54 }
 0x3c2   :  { %6224 = vmatpush.bf16.msrb.mxu1 %v8527_v21  ;;  %v5954_v9 = vpop.f32.mrf.mxu1  ;;  %10244 = vtanh.f32 %v5843_v57 }
 0x3c3   :  { %6267 = vmatpush.bf16.msra.mxu0 %v9171_v12  ;;  %v10243_v0 = vpop.eup %10242  ;;  %v5955_v21 = vadd.f32 %v5954_v9, %v5941_v3  ;;  %v10221_v12 = vld [vmem:[%s15366_s7 + $0xdc0] sm:$0xf0]  ;;  %v5980_v36 = vpop.f32.mrf.mxu3 }
 0x3c4   :  { %v6308_v7 = vpack.c.bf16 %v10243_v0, %v10241_v6  ;;  %v9423_v55 = vor.u32 %v10221_v12, %v9422_v53  ;;  %v5981_v3 = vadd.f32 %v5980_v36, %v5967_v34 }
 0x3c5   :  { %10246 = vtanh.f32 %v5955_v21 }
 0x3c6   :  { %6225 = vmatpush.bf16.msrb.mxu1 %v8499_v39  ;;  %6316 = vst [vmem:[#allocation2 + $0x8] sm:$0xff] %v6308_v7  ;;  %v5994_v42 = vpop.f32.mrf.mxu0 }
 0x3c7   :  { %6268 = vmatpush.bf16.msra.mxu0 %v9143_v52  ;;  %v9310_v52 = vld [vmem:[%s15366_s7 + $0xcc8] sm:$0xf] }
 0x3c8   :  { %v10245_v63 = vpop.eup %10244 }
 0x3ca   :  { %6226 = vmatpush.bf16.msrb.mxu1 %v8471_v19  ;;  %v10193_v19 = vld [vmem:[%s15366_s7 + $0xce0] sm:$0xf0] }
 0x3cb   :  { %6269 = vmatpush.bf16.msra.mxu0 %v9115_v46  ;;  %v10247_v39 = vpop.eup %10246  ;;  %v9311_v29 = vor.u32 %v10193_v19, %v9310_v52  ;;  %v5968_v46 = vpop.f32.mrf.mxu2 }
 0x3cc   :  { %v6312_v59 = vpack.c.bf16 %v10247_v39, %v10245_v63  ;;  %v5969_v7 = vadd.f32 %v5968_v46, %v3195_v54 }
 0x3ce   :  { %6227 = vmatpush.bf16.msrb.mxu1 %v8443_v58  ;;  %6321 = vst [vmem:[#allocation2 + $0x24] sm:$0xff] %v6312_v59  ;;  %v5982_v58 = vpop.f32.mrf.mxu3  ;;  %v5996_v35 = vpop.f32.mrf.mxu0 }
 0x3cf   :  { %6270 = vmatpush.bf16.msra.mxu0 %v9087_v32  ;;  %v5983_v61 = vadd.f32 %v5982_v58, %v5969_v7 }
 0x3d2   :  { %6228 = vmatpush.bf16.msrb.mxu1 %v8415_v38 }
 0x3d3   :  { %6271 = vmatpush.bf16.msra.mxu0 %v9059_v4  ;;  %v6022_v13 = vpop.f32.mrf.mxu2  ;;  %v5995_v4 = vadd.f32 %v5994_v42, %v5981_v3 }
 0x3d6   :  { %6229 = vmatpush.bf16.msrb.mxu1 %v8387_v5  ;;  %v6036_v48 = vpop.f32.mrf.mxu3 }
 0x3d7   :  { %6272 = vmatpush.bf16.msra.mxu0 %v9031_v14  ;;  %v6050_v17 = vpop.f32.mrf.mxu0 }
 0x3da   :  { %6230 = vmatpush.bf16.msrb.mxu1 %v8359_v10  ;;  %6273 = vmatmul.bf16.vlgmr.msra.gmra.mxu0 %v13218_v60  ;;  %v10207_v60 = vld [vmem:[%s15366_s7 + $0xd50] sm:$0xf0]  ;;  %v6008_v11 = vpop.f32.mrf.mxu1 }
 0x3db   :  { %v9367_v40 = vor.u32 %v10207_v60, %v9366_v26  ;;  %v6024_v49 = vpop.f32.mrf.mxu2  ;;  %v6009_v5 = vadd.f32 %v6008_v11, %v5995_v4 }
 0x3dd   :  { %6231 = vmatmul.bf16.vlgmr.msrb.gmra.mxu1 %v12736_v16  ;;  %v10200_v16 = vld [vmem:[%s15366_s7 + $0xd18] sm:$0xf0]  ;;  %v6023_v33 = vadd.f32 %v6022_v13, %v6009_v5  ;;  %s10288_s7 = smov [#allocation2]  }
 0x3de   :  { %6279 = vmatpush.bf16.msra.mxu1 %v9451_v43  ;;  %v9339_v23 = vor.u32 %v10200_v16, %v9338_v24  ;;  %v6038_v32 = vpop.f32.mrf.mxu3  ;;  %v5997_v43 = vadd.f32 %v5996_v35, %v5983_v61  ;;  %s6328_s16 = sshll.u32 %s10288_s7, 4  ;;  %s6329_s16 = int_to_ptr.vmem [resolvable:$true] %s6328_s16 }
 0x3df   :  { %v6052_v22 = vpop.f32.mrf.mxu0  ;;  %v6037_v63 = vadd.f32 %v6036_v48, %v6023_v33 }
 0x3e1   :  { %v6051_v26 = vadd.f32 %v6050_v17, %v6037_v63 }
 0x3e2   :  { %6280 = vmatpush.bf16.msra.mxu1 %v9423_v55  ;;  %v6010_v28 = vpop.f32.mrf.mxu1 }
 0x3e3   :  { %v6078_v38 = vpop.f32.mrf.mxu2  ;;  %v6011_v39 = vadd.f32 %v6010_v28, %v5997_v43 }
 0x3e4   :  { %v6079_v9 = vadd.f32 %v6078_v38, %v3196_v41 }
 0x3e5   :  { %v6025_v60 = vadd.f32 %v6024_v49, %v6011_v39  ;;  %v3197_v49 = vperm.slane %v15138_v51, 6 }
 0x3e6   :  { %6281 = vmatpush.bf16.msra.mxu1 %v9395_v15  ;;  %v6092_v57 = vpop.f32.mrf.mxu3 }
 0x3e7   :  { %v6093_v21 = vadd.f32 %v6092_v57, %v6079_v9  ;;  %v6039_v19 = vadd.f32 %v6038_v32, %v6025_v60 }
 0x3e9   :  { %v6053_v27 = vadd.f32 %v6052_v22, %v6039_v19 }
 0x3ea   :  { %6282 = vmatpush.bf16.msra.mxu1 %v9367_v40 }
 0x3eb   :  { %v6080_v6 = vpop.f32.mrf.mxu2 }
 0x3ec   :  { %v6081_v10 = vadd.f32 %v6080_v6, %v3196_v41 }
 0x3ee   :  { %6283 = vmatpush.bf16.msra.mxu1 %v9339_v23  ;;  %v6094_v50 = vpop.f32.mrf.mxu3 }
 0x3ef   :  { %v6095_v53 = vadd.f32 %v6094_v50, %v6081_v10 }
 0x3f2   :  { %6284 = vmatpush.bf16.msra.mxu1 %v9311_v29 }
 0x3f6   :  { %6285 = vmatpush.bf16.msra.mxu1 %v9283_v18  ;;  %v6134_v2 = vpop.f32.mrf.mxu2 }
 0x3f7   :  { %v6106_v44 = vpop.f32.mrf.mxu0 }
 0x3f8   :  { %v6107_v8 = vadd.f32 %v6106_v44, %v6093_v21 }
 0x3fa   :  { %6286 = vmatpush.bf16.msra.mxu1 %v9255_v56  ;;  %v6064_v1 = vpop.f32.mrf.mxu1 }
 0x3fb   :  { %v6065_v16 = vadd.f32 %v6064_v1, %v6051_v26 }
 0x3fd   :  { %6287 = vmatmul.bf16.vlgmr.msra.gmra.mxu1 %v13366_v31  ;;  %10248 = vtanh.f32 %v6065_v16 }
 0x3fe   :  { %v6148_v59 = vpop.f32.mrf.mxu3  ;;  %v6136_v24 = vpop.f32.mrf.mxu2 }
 0x3ff   :  { %v6108_v14 = vpop.f32.mrf.mxu0 }
 0x400   :  { %v6109_v47 = vadd.f32 %v6108_v14, %v6095_v53 }
 0x402   :  { %v6066_v31 = vpop.f32.mrf.mxu1 }
 0x403   :  { %v6067_v45 = vadd.f32 %v6066_v31, %v6053_v27  ;;  %v10249_v36 = vpop.eup %10248 }
 0x406   :  { %v6150_v30 = vpop.f32.mrf.mxu3 }
 0x416   :  { %v6190_v28 = vpop.f32.mrf.mxu2 }
 0x417   :  { %v6162_v40 = vpop.f32.mrf.mxu0  ;;  %v6191_v38 = vadd.f32 %v6190_v28, %v3197_v49 }
 0x41a   :  { %v6120_v0 = vpop.f32.mrf.mxu1 }
 0x41b   :  { %v6121_v25 = vadd.f32 %v6120_v0, %v6107_v8 }
 0x41d   :  { %v6135_v12 = vadd.f32 %v6134_v2, %v6121_v25 }
 0x41e   :  { %v6204_v17 = vpop.f32.mrf.mxu3  ;;  %v6192_v32 = vpop.f32.mrf.mxu2 }
 0x41f   :  { %v6149_v20 = vadd.f32 %v6148_v59, %v6135_v12  ;;  %v6164_v56 = vpop.f32.mrf.mxu0  ;;  %v6205_v54 = vadd.f32 %v6204_v17, %v6191_v38  ;;  %v6193_v3 = vadd.f32 %v6192_v32, %v3197_v49 }
 0x421   :  { %v6163_v23 = vadd.f32 %v6162_v40, %v6149_v20 }
 0x422   :  { %v6122_v55 = vpop.f32.mrf.mxu1 }
 0x423   :  { %v6123_v15 = vadd.f32 %v6122_v55, %v6109_v47 }
 0x425   :  { %v6137_v52 = vadd.f32 %v6136_v24, %v6123_v15 }
 0x426   :  { %v6206_v57 = vpop.f32.mrf.mxu3 }
 0x427   :  { %v6151_v18 = vadd.f32 %v6150_v30, %v6137_v52  ;;  %v6207_v6 = vadd.f32 %v6206_v57, %v6193_v3 }
 0x429   :  { %v6165_v62 = vadd.f32 %v6164_v56, %v6151_v18 }
 0x436   :  { %v6246_v34 = vpop.f32.mrf.mxu2 }
 0x437   :  { %v6218_v1 = vpop.f32.mrf.mxu0 }
 0x438   :  { %v6219_v31 = vadd.f32 %v6218_v1, %v6205_v54 }
 0x43a   :  { %v6176_v29 = vpop.f32.mrf.mxu1 }
 0x43b   :  { %v6177_v37 = vadd.f32 %v6176_v29, %v6163_v23 }
 0x43d   :  { %10250 = vtanh.f32 %v6177_v37 }
 0x43e   :  { %10252 = vtanh.f32 %v6067_v45  ;;  %v6260_v4 = vpop.f32.mrf.mxu3  ;;  %v6248_v51 = vpop.f32.mrf.mxu2 }
 0x43f   :  { %v6220_v44 = vpop.f32.mrf.mxu0 }
 0x440   :  { %v6221_v21 = vadd.f32 %v6220_v44, %v6207_v6 }
 0x442   :  { %v6178_v42 = vpop.f32.mrf.mxu1 }
 0x443   :  { %v10251_v46 = vpop.eup %10250  ;;  %v6179_v11 = vadd.f32 %v6178_v42, %v6165_v62 }
 0x444   :  { %v6309_v58 = vpack.c.bf16 %v10251_v46, %v10249_v36  ;;  %v10253_v13 = vpop.eup %10252 }
 0x445   :  { %10254 = vtanh.f32 %v6179_v11 }
 0x446   :  { %6317 = vst [vmem:[#allocation2 + $0x10] sm:$0xff] %v6309_v58  ;;  %v6262_v2 = vpop.f32.mrf.mxu3 }
 0x44b   :  { %v10255_v35 = vpop.eup %10254 }
 0x44c   :  { %v6313_v48 = vpack.c.bf16 %v10255_v35, %v10253_v13 }
 0x44e   :  { %6322 = vst [vmem:[#allocation2 + $0x2c] sm:$0xff] %v6313_v48 }
 0x457   :  { %v6274_v8 = vpop.f32.mrf.mxu0 }
 0x45a   :  { %v6232_v22 = vpop.f32.mrf.mxu1 }
 0x45b   :  { %v6233_v41 = vadd.f32 %v6232_v22, %v6219_v31 }
 0x45d   :  { %v6247_v9 = vadd.f32 %v6246_v34, %v6233_v41 }
 0x45f   :  { %v6261_v5 = vadd.f32 %v6260_v4, %v6247_v9  ;;  %v6276_v10 = vpop.f32.mrf.mxu0 }
 0x461   :  { %v6275_v7 = vadd.f32 %v6274_v8, %v6261_v5 }
 0x462   :  { %v6234_v0 = vpop.f32.mrf.mxu1 }
 0x463   :  { %v6235_v50 = vadd.f32 %v6234_v0, %v6221_v21 }
 0x465   :  { %v6249_v25 = vadd.f32 %v6248_v51, %v6235_v50 }
 0x467   :  { %v6263_v14 = vadd.f32 %v6262_v2, %v6249_v25 }
 0x469   :  { %v6277_v43 = vadd.f32 %v6276_v10, %v6263_v14 }
 0x47a   :  { %v6288_v61 = vpop.f32.mrf.mxu1 }
 0x47b   :  { %v6289_v33 = vadd.f32 %v6288_v61, %v6275_v7 }
 0x47d   :  { %10256 = vtanh.f32 %v6289_v33 }
 0x482   :  { %v6290_v53 = vpop.f32.mrf.mxu1 }
 0x483   :  { %v10257_v12 = vpop.eup %10256  ;;  %v6291_v63 = vadd.f32 %v6290_v53, %v6277_v43 }
 0x484   :  { %v6310_v39 = vpack.c.bf16 %v10257_v12, %v10257_v12 }
 0x485   :  { %10258 = vtanh.f32 %v6291_v63 }
 0x486   :  { %6319 = vst.msk [vmem:[#allocation2 + $0x18] sm:$0xf] %vm6318_vm1, %v6310_v39 }
 0x48b   :  { %v10259_v59 = vpop.eup %10258 }
 0x48c   :  { %v6314_v55 = vpack.c.bf16 %v10259_v59, %v10259_v59 }
 0x48e   :  { %6323 = vst.msk [vmem:[#allocation2 + $0x34] sm:$0xf] %vm6318_vm1, %v6314_v55 }
 0x48f   :  { %6336 = dma.vmem_to_hbm [thread:$0]  %s6329_s16, 896, %s6331_s19, [#allocation3], %s10289_s20, %s10289_s20, %s10290_s21  }
 0x490   :  { %10286 = dma.done.wait [#allocation3], 896  }
 0x491   :  { %10287 = vsyncadd [#allocation3], 4294966400 }
 0x492   :  { %6341 = vsyncpa [#allocation3], 1 }

</bundles_post_ra>
